<compile_context>
chip_gen: v7x
topology: tpu7x:2x2x1
jax: 0.10.0
libtpu: 0.0.40
codegen_flags: <defaults>
</compile_context>

<pallas_src>
import functools
import math

import jax
import jax.numpy as jnp
import numpy as np
from jax.experimental import pallas as pl
from jax.experimental.pallas import tpu as pltpu

# Scaled-down but structurally identical config (small shapes for the demo).
CFG = dict(vocab_size=512, max_seq_length=16, d_model=256, nhead=4,
           dim_feedforward=512, num_layers=2)
LN_EPS = 1e-5


# --------------------------------------------------------------------------
# Pallas kernels
# --------------------------------------------------------------------------
def fused_layers_kernel(x_ref,
                        wq_ref, wk_ref, wv_ref, wo_ref,
                        bq_ref, bk_ref, bv_ref, bo_ref,
                        ln1g_ref, ln1b_ref,
                        w1_ref, b1_ref, w2_ref, b2_ref,
                        ln2g_ref, ln2b_ref,
                        o_ref, act_scr, *, nhead, batch_per_tile):
    """One grid step == (row tile, layer).  act_scr is the VMEM-resident
    [rows, D] f32 activation slab carried across the layer axis; the bf16
    output is written only at the last layer."""
    layer = pl.program_id(1)

    # First layer of this row tile: initialize the resident slab from the
    # (embedding + positional-encoding) input.
    @pl.when(layer == 0)
    def _():
        act_scr[...] = x_ref[...]

    x = act_scr[...]                                       # [rows, D] f32
    rows, D = x.shape
    S = rows // batch_per_tile
    hd = D // nhead

    # --- self-attention: QKV on the full row-tile slab (bf16 MXU, f32 acc).
    # 1/sqrt(hd) is already folded into wq / bq.
    xb = x.astype(jnp.bfloat16)
    q = jnp.dot(xb, wq_ref[0], preferred_element_type=jnp.float32) + bq_ref[0]
    k = jnp.dot(xb, wk_ref[0], preferred_element_type=jnp.float32) + bk_ref[0]
    v = jnp.dot(xb, wv_ref[0], preferred_element_type=jnp.float32) + bv_ref[0]

    # Causal mask generated in-kernel (no [S, S] f32 mask DMA).
    row_ids = jax.lax.broadcasted_iota(jnp.int32, (S, S), 0)
    col_ids = jax.lax.broadcasted_iota(jnp.int32, (S, S), 1)
    allowed = col_ids <= row_ids
    neg_inf = jnp.float32(-jnp.inf)

    batch_outs = []
    for b in range(batch_per_tile):                        # static unroll
        r0 = b * S
        qb = q[r0:r0 + S, :]
        kb = k[r0:r0 + S, :]
        vb = v[r0:r0 + S, :]
        head_outs = []
        for h in range(nhead):                             # static unroll
            c0 = h * hd
            qh = qb[:, c0:c0 + hd]
            kh = kb[:, c0:c0 + hd]
            vh = vb[:, c0:c0 + hd]
            s = jax.lax.dot_general(qh, kh, (((1,), (1,)), ((), ())),
                                    preferred_element_type=jnp.float32)
            s = jnp.where(allowed, s, neg_inf)
            m = jnp.max(s, axis=-1, keepdims=True)
            e = jnp.exp(s - m)
            p = e * pl.reciprocal(jnp.sum(e, axis=-1, keepdims=True),
                                  approx=True)
            head_outs.append(jnp.dot(p, vh,
                                     preferred_element_type=jnp.float32))
        # One lane-dense [S, D] block per batch (no masked 64-lane stores).
        batch_outs.append(jnp.concatenate(head_outs, axis=-1)
                          if nhead > 1 else head_outs[0])
    attn = (jnp.concatenate(batch_outs, axis=0)
            if batch_per_tile > 1 else batch_outs[0])      # [rows, D] f32

    attn = jnp.dot(attn.astype(jnp.bfloat16), wo_ref[0],
                   preferred_element_type=jnp.float32) + bo_ref[0]

    # residual + LayerNorm1 (dropout == identity); f32 elementwise
    y = x + attn
    mu = jnp.mean(y, axis=-1, keepdims=True)
    var = jnp.mean((y - mu) ** 2, axis=-1, keepdims=True)
    y = (y - mu) * jax.lax.rsqrt(var + LN_EPS) * ln1g_ref[0] + ln1b_ref[0]

    # feed-forward on the full slab (bf16 MXU, f32 acc)
    h1 = jnp.dot(y.astype(jnp.bfloat16), w1_ref[0],
                 preferred_element_type=jnp.float32) + b1_ref[0]
    h1 = jnp.maximum(h1, 0.0)
    ff = jnp.dot(h1.astype(jnp.bfloat16), w2_ref[0],
                 preferred_element_type=jnp.float32) + b2_ref[0]

    # residual + LayerNorm2
    z = y + ff
    mu2 = jnp.mean(z, axis=-1, keepdims=True)
    var2 = jnp.mean((z - mu2) ** 2, axis=-1, keepdims=True)
    z = ((z - mu2) * jax.lax.rsqrt(var2 + LN_EPS)
         * ln2g_ref[0] + ln2b_ref[0])

    act_scr[...] = z

    # Emit the final activations once, already in bf16 for the vocab matmul.
    @pl.when(layer == pl.num_programs(1) - 1)
    def _():
        o_ref[...] = z.astype(jnp.bfloat16)


def out_proj_kernel(x_ref, w_ref, b_ref, o_ref):
    # x_ref is already bf16 (cast once in the fused kernel, not per tile).
    o_ref[...] = (jnp.dot(x_ref[...], w_ref[...],
                          preferred_element_type=jnp.float32) + b_ref[...])


# --------------------------------------------------------------------------
# Wrappers
# --------------------------------------------------------------------------
def fused_decoder_stack(x2d, pp, nhead, batch, row_tiles=1):
    """Runs all decoder layers in one pallas_call.  grid=(row_tiles, L):
    row tiles are 'parallel' (set row_tiles=2 on v7x to use both
    TensorCores), layers are 'arbitrary' (sequential, resident slab)."""
    BS, D = x2d.shape
    assert batch % row_tiles == 0, "row_tiles must divide batch"
    rows_per_tile = BS // row_tiles
    batch_per_tile = batch // row_tiles
    L = pp['wq'].shape[0]
    weights = (pp['wq'], pp['wk'], pp['wv'], pp['wo'],
               pp['bq'], pp['bk'], pp['bv'], pp['bo'],
               pp['ln1g'], pp['ln1b'],
               pp['w1'], pp['b1'], pp['w2'], pp['b2'],
               pp['ln2g'], pp['ln2b'])
    # One layer-slice of each stacked weight per grid step (auto-prefetched).
    w_specs = [pl.BlockSpec((1,) + w.shape[1:], lambda r, l: (l, 0, 0))
               for w in weights]
    return pl.pallas_call(
        functools.partial(fused_layers_kernel, nhead=nhead,
                          batch_per_tile=batch_per_tile),
        out_shape=jax.ShapeDtypeStruct((BS, D), jnp.bfloat16),
        grid_spec=pltpu.PrefetchScalarGridSpec(
            num_scalar_prefetch=0,
            grid=(row_tiles, L),
            in_specs=[pl.BlockSpec((rows_per_tile, D),
                                   lambda r, l: (r, 0))]    # emb + PE
                     + w_specs,
            out_specs=pl.BlockSpec((rows_per_tile, D),
                                   lambda r, l: (r, 0)),    # bf16, written @L-1
            scratch_shapes=[pltpu.VMEM((rows_per_tile, D), jnp.float32)]),
        compiler_params=pltpu.CompilerParams(
            dimension_semantics=("parallel", "arbitrary"),
            vmem_limit_bytes=32 * 1024 * 1024),
    )(x2d, *weights)


def out_proj(x_bf16, w_t, b, tile_v=None):
    M, D = x_bf16.shape
    V = w_t.shape[1]
    if tile_v is None:
        # Lane-dense vocab tiles; 'parallel' axis lets v7x split across TCs.
        tile_v = 256 if V % 256 == 0 else V
    return pl.pallas_call(
        out_proj_kernel,
        out_shape=jax.ShapeDtypeStruct((M, V), jnp.float32),
        grid_spec=pltpu.PrefetchScalarGridSpec(
            num_scalar_prefetch=0,
            grid=(pl.cdiv(V, tile_v),),
            in_specs=[pl.BlockSpec((M, D), lambda j: (0, 0)),
                      pl.BlockSpec((D, tile_v), lambda j: (0, j)),
                      pl.BlockSpec((1, tile_v), lambda j: (0, j))],
            out_specs=pl.BlockSpec((M, tile_v), lambda j: (0, j))),
        compiler_params=pltpu.CompilerParams(
            dimension_semantics=("parallel",),
            vmem_limit_bytes=32 * 1024 * 1024),
    )(x_bf16, w_t, b)


# --------------------------------------------------------------------------
# Parameters / model glue
# --------------------------------------------------------------------------
def positional_encoding(max_len, d_model):
    pos = np.arange(max_len, dtype=np.float32)[:, None]
    div = np.exp(np.arange(0, d_model, 2, dtype=np.float32)
                 * (-math.log(10000.0) / d_model))
    pe = np.zeros((max_len, d_model), dtype=np.float32)
    pe[:, 0::2] = np.sin(pos * div)
    pe[:, 1::2] = np.cos(pos * div)
    return jnp.asarray(pe)


def init_params(key, cfg):
    """f32 'torch-like' parameters (weights pre-transposed to [in, out])."""
    D, F, V = cfg['d_model'], cfg['dim_feedforward'], cfg['vocab_size']
    n_layers = cfg['num_layers']

    def nrm(k, shape, std=0.02):
        return jax.random.normal(k, shape, jnp.float32) * std

    keys = iter(jax.random.split(key, 8 * n_layers + 4))
    params = dict(
        emb=nrm(next(keys), (V, D), std=0.02),
        pe=positional_encoding(cfg['max_seq_length'], D),
        wout_t=nrm(next(keys), (D, V)),
        bout=jnp.zeros((1, V), jnp.float32),
        layers=[],
    )
    for _ in range(n_layers):
        lp = dict(
            wq_t=nrm(next(keys), (D, D)), wk_t=nrm(next(keys), (D, D)),
            wv_t=nrm(next(keys), (D, D)), wo_t=nrm(next(keys), (D, D)),
            bq=jnp.zeros((1, D), jnp.float32), bk=jnp.zeros((1, D), jnp.float32),
            bv=jnp.zeros((1, D), jnp.float32), bo=jnp.zeros((1, D), jnp.float32),
            ln1_g=jnp.ones((1, D), jnp.float32), ln1_b=jnp.zeros((1, D), jnp.float32),
            w1_t=nrm(next(keys), (D, F)), b1=jnp.zeros((1, F), jnp.float32),
            w2_t=nrm(next(keys), (F, D)), b2=jnp.zeros((1, D), jnp.float32),
            ln2_g=jnp.ones((1, D), jnp.float32), ln2_b=jnp.zeros((1, D), jnp.float32),
        )
        params['layers'].append(lp)
    return params


def prepare_pallas_params(params, nhead):
    """Stack per-layer weights along a leading L axis; matrices -> bf16
    (MXU inputs), biases / LayerNorm params stay f32; pre-scale the
    embedding by sqrt(D) and fold 1/sqrt(head_dim) into wq / bq."""
    bf, f32 = jnp.bfloat16, jnp.float32
    D = params['emb'].shape[1]
    attn_scale = 1.0 / math.sqrt(D // nhead)

    def stack(name, dtype, s=1.0):
        return jnp.stack([lp[name] * s for lp in params['layers']]).astype(dtype)

    return dict(
        emb_scaled=params['emb'] * math.sqrt(D),
        pe=params['pe'],
        wq=stack('wq_t', bf, attn_scale), wk=stack('wk_t', bf),
        wv=stack('wv_t', bf), wo=stack('wo_t', bf),
        bq=stack('bq', f32, attn_scale), bk=stack('bk', f32),
        bv=stack('bv', f32), bo=stack('bo', f32),
        ln1g=stack('ln1_g', f32), ln1b=stack('ln1_b', f32),
        w1=stack('w1_t', bf), b1=stack('b1', f32),
        w2=stack('w2_t', bf), b2=stack('b2', f32),
        ln2g=stack('ln2_g', f32), ln2b=stack('ln2_b', f32),
        wout_t=params['wout_t'].astype(bf),
        bout=params['bout'],
    )


def forward(pp, input_ids, cfg, row_tiles=1):
    B, S = input_ids.shape
    D, V = cfg['d_model'], cfg['vocab_size']
    # Embedding gather (pre-scaled by sqrt(D)) with PE pre-added: fuses with
    # the gather in XLA, so the kernel needs no PE input / add.
    x = pp['emb_scaled'][input_ids] + pp['pe'][None, :S, :]
    x2d = x.reshape(B * S, D).astype(jnp.float32)
    y_bf16 = fused_decoder_stack(x2d, pp, cfg['nhead'], B, row_tiles=row_tiles)
    logits = out_proj(y_bf16, pp['wout_t'], pp['bout'])
    return logits.reshape(B, S, V)


# Pure-JAX f32 reference (mirrors the PyTorch forward, eval mode, causal mask)
def forward_ref(params, input_ids, cfg):
    B, S = input_ids.shape
    D, H = cfg['d_model'], cfg['nhead']
    hd = D // H
    x = params['emb'][input_ids] * math.sqrt(D) + params['pe'][None, :S, :]
    tgt_mask = jnp.where(jnp.triu(jnp.ones((S, S), jnp.bool_), k=1),
                         -jnp.inf, 0.0).astype(jnp.float32)

    def ln(v, g, b):
        mu = jnp.mean(v, axis=-1, keepdims=True)
        var = jnp.mean((v - mu) ** 2, axis=-1, keepdims=True)
        return (v - mu) * jax.lax.rsqrt(var + LN_EPS) * g + b

    for p in params['layers']:
        q = x @ p['wq_t'] + p['bq']
        k = x @ p['wk_t'] + p['bk']
        v = x @ p['wv_t'] + p['bv']
        q = q.reshape(B, S, H, hd).transpose(0, 2, 1, 3)
        k = k.reshape(B, S, H, hd).transpose(0, 2, 1, 3)
        v = v.reshape(B, S, H, hd).transpose(0, 2, 1, 3)
        s = jnp.einsum('bhqd,bhkd->bhqk', q, k) / math.sqrt(hd) + tgt_mask
        p_attn = jax.nn.softmax(s, axis=-1)
        o = jnp.einsum('bhqk,bhkd->bhqd', p_attn, v)
        o = o.transpose(0, 2, 1, 3).reshape(B, S, D)
        o = o @ p['wo_t'] + p['bo']
        x = ln(x + o, p['ln1_g'], p['ln1_b'])
        ff = jnp.maximum(x @ p['w1_t'] + p['b1'], 0.0) @ p['w2_t'] + p['b2']
        x = ln(x + ff, p['ln2_g'], p['ln2_b'])
    return x @ params['wout_t'] + params['bout']


# --------------------------------------------------------------------------
if __name__ == "__main__":
    key = jax.random.PRNGKey(0)
    pkey, dkey = jax.random.split(key)

    B, S = 2, 8
    params = init_params(pkey, CFG)
    pallas_params = prepare_pallas_params(params, CFG['nhead'])
    input_ids = jax.random.randint(dkey, (B, S), 0, CFG['vocab_size'],
                                   dtype=jnp.int32)

    out = forward(pallas_params, input_ids, CFG, row_tiles=1)
    out = jax.block_until_ready(out)
    assert out.shape == (B, S, CFG['vocab_size'])
    assert bool(jnp.all(jnp.isfinite(out)))

    ref = jax.block_until_ready(forward_ref(params, input_ids, CFG))
    np.testing.assert_allclose(np.asarray(out), np.asarray(ref),
                               rtol=5e-2, atol=5e-2)

    print("KERNEL_OK")
</pallas_src>

<mosaic_0001>
module attributes {stable_mosaic.version = 11 : i64} {
  func.func @fused_layers_kernel(%arg0: i32, %arg1: i32, %arg2: memref<16x256xf32, #tpu.memory_space<vmem>>, %arg3: memref<1x256x256xbf16, #tpu.memory_space<vmem>>, %arg4: memref<1x256x256xbf16, #tpu.memory_space<vmem>>, %arg5: memref<1x256x256xbf16, #tpu.memory_space<vmem>>, %arg6: memref<1x256x256xbf16, #tpu.memory_space<vmem>>, %arg7: memref<1x1x256xf32, #tpu.memory_space<vmem>>, %arg8: memref<1x1x256xf32, #tpu.memory_space<vmem>>, %arg9: memref<1x1x256xf32, #tpu.memory_space<vmem>>, %arg10: memref<1x1x256xf32, #tpu.memory_space<vmem>>, %arg11: memref<1x1x256xf32, #tpu.memory_space<vmem>>, %arg12: memref<1x1x256xf32, #tpu.memory_space<vmem>>, %arg13: memref<1x256x512xbf16, #tpu.memory_space<vmem>>, %arg14: memref<1x1x512xf32, #tpu.memory_space<vmem>>, %arg15: memref<1x512x256xbf16, #tpu.memory_space<vmem>>, %arg16: memref<1x1x256xf32, #tpu.memory_space<vmem>>, %arg17: memref<1x1x256xf32, #tpu.memory_space<vmem>>, %arg18: memref<1x1x256xf32, #tpu.memory_space<vmem>>, %arg19: memref<16x256xbf16, #tpu.memory_space<vmem>>, %arg20: memref<16x256xf32, #tpu.memory_space<vmem>>) attributes {dimension_semantics = [#tpu.dimension_semantics<parallel>, #tpu.dimension_semantics<arbitrary>], iteration_bounds = array<i64: 1, 2>, scalar_prefetch = 0 : i64, scratch_operands = 1 : i64, tpu.core_type = #tpu.core_type<tc>, window_params = [{transform_indices = @transform_0, window_bounds = array<i64: 16, 256>}, {transform_indices = @transform_1, window_bounds = array<i64: 1, 256, 256>}, {transform_indices = @transform_2, window_bounds = array<i64: 1, 256, 256>}, {transform_indices = @transform_3, window_bounds = array<i64: 1, 256, 256>}, {transform_indices = @transform_4, window_bounds = array<i64: 1, 256, 256>}, {transform_indices = @transform_5, window_bounds = array<i64: 1, 1, 256>}, {transform_indices = @transform_6, window_bounds = array<i64: 1, 1, 256>}, {transform_indices = @transform_7, window_bounds = array<i64: 1, 1, 256>}, {transform_indices = @transform_8, window_bounds = array<i64: 1, 1, 256>}, {transform_indices = @transform_9, window_bounds = array<i64: 1, 1, 256>}, {transform_indices = @transform_10, window_bounds = array<i64: 1, 1, 256>}, {transform_indices = @transform_11, window_bounds = array<i64: 1, 256, 512>}, {transform_indices = @transform_12, window_bounds = array<i64: 1, 1, 512>}, {transform_indices = @transform_13, window_bounds = array<i64: 1, 512, 256>}, {transform_indices = @transform_14, window_bounds = array<i64: 1, 1, 256>}, {transform_indices = @transform_15, window_bounds = array<i64: 1, 1, 256>}, {transform_indices = @transform_16, window_bounds = array<i64: 1, 1, 256>}, {transform_indices = @transform_17, window_bounds = array<i64: 16, 256>}]} {
    %c0_i32 = arith.constant 0 : i32
    %0 = arith.cmpi eq, %arg1, %c0_i32 : i32
    %1 = arith.extui %0 : i1 to i32
    %c0_i32_0 = arith.constant 0 : i32
    %2 = arith.cmpi ne, %1, %c0_i32_0 : i32
    scf.if %2 {
      %c0_109 = arith.constant 0 : index
      %c0_110 = arith.constant 0 : index
      %258 = vector.load %arg2[%c0_109, %c0_110] : memref<16x256xf32, #tpu.memory_space<vmem>>, vector<16x256xf32>
      %c0_111 = arith.constant 0 : index
      %c0_112 = arith.constant 0 : index
      %259 = vector.load %arg20[%c0_111, %c0_112] : memref<16x256xf32, #tpu.memory_space<vmem>>, vector<16x256xf32>
      tpu.vector_store %arg20[%c0_111, %c0_112], %258 {strides = array<i32>} : memref<16x256xf32, #tpu.memory_space<vmem>>, vector<16x256xf32>,
    } else {
    }
    %c0 = arith.constant 0 : index
    %c0_1 = arith.constant 0 : index
    %3 = vector.load %arg20[%c0, %c0_1] : memref<16x256xf32, #tpu.memory_space<vmem>>, vector<16x256xf32>
    %4 = arith.truncf %3 : vector<16x256xf32> to vector<16x256xbf16>
    %c0_2 = arith.constant 0 : index
    %c0_3 = arith.constant 0 : index
    %c0_4 = arith.constant 0 : index
    %5 = vector.load %arg3[%c0_2, %c0_3, %c0_4] : memref<1x256x256xbf16, #tpu.memory_space<vmem>>, vector<1x256x256xbf16>
    %6 = vector.shape_cast %5 : vector<1x256x256xbf16> to vector<256x256xbf16>
    %cst = arith.constant dense<0.000000e+00> : vector<16x256xf32>
    %7 = tpu.matmul %4, %6, %cst {dimension_numbers = #tpu.dot_dimension_numbers<[1], [0], [0], [1], [0, 0, 1, 1], [], []>} : vector<16x256xbf16>, vector<256x256xbf16>, vector<16x256xf32> -> vector<16x256xf32>
    %c0_5 = arith.constant 0 : index
    %c0_6 = arith.constant 0 : index
    %c0_7 = arith.constant 0 : index
    %8 = vector.load %arg7[%c0_5, %c0_6, %c0_7] : memref<1x1x256xf32, #tpu.memory_space<vmem>>, vector<1x1x256xf32>
    %9 = vector.shape_cast %8 : vector<1x1x256xf32> to vector<1x256xf32>
    %10 = vector.broadcast %9 : vector<1x256xf32> to vector<16x256xf32>
    %11 = arith.addf %7, %10 : vector<16x256xf32>
    %c0_8 = arith.constant 0 : index
    %c0_9 = arith.constant 0 : index
    %c0_10 = arith.constant 0 : index
    %12 = vector.load %arg4[%c0_8, %c0_9, %c0_10] : memref<1x256x256xbf16, #tpu.memory_space<vmem>>, vector<1x256x256xbf16>
    %13 = vector.shape_cast %12 : vector<1x256x256xbf16> to vector<256x256xbf16>
    %cst_11 = arith.constant dense<0.000000e+00> : vector<16x256xf32>
    %14 = tpu.matmul %4, %13, %cst_11 {dimension_numbers = #tpu.dot_dimension_numbers<[1], [0], [0], [1], [0, 0, 1, 1], [], []>} : vector<16x256xbf16>, vector<256x256xbf16>, vector<16x256xf32> -> vector<16x256xf32>
    %c0_12 = arith.constant 0 : index
    %c0_13 = arith.constant 0 : index
    %c0_14 = arith.constant 0 : index
    %15 = vector.load %arg8[%c0_12, %c0_13, %c0_14] : memref<1x1x256xf32, #tpu.memory_space<vmem>>, vector<1x1x256xf32>
    %16 = vector.shape_cast %15 : vector<1x1x256xf32> to vector<1x256xf32>
    %17 = vector.broadcast %16 : vector<1x256xf32> to vector<16x256xf32>
    %18 = arith.addf %14, %17 : vector<16x256xf32>
    %c0_15 = arith.constant 0 : index
    %c0_16 = arith.constant 0 : index
    %c0_17 = arith.constant 0 : index
    %19 = vector.load %arg5[%c0_15, %c0_16, %c0_17] : memref<1x256x256xbf16, #tpu.memory_space<vmem>>, vector<1x256x256xbf16>
    %20 = vector.shape_cast %19 : vector<1x256x256xbf16> to vector<256x256xbf16>
    %cst_18 = arith.constant dense<0.000000e+00> : vector<16x256xf32>
    %21 = tpu.matmul %4, %20, %cst_18 {dimension_numbers = #tpu.dot_dimension_numbers<[1], [0], [0], [1], [0, 0, 1, 1], [], []>} : vector<16x256xbf16>, vector<256x256xbf16>, vector<16x256xf32> -> vector<16x256xf32>
    %c0_19 = arith.constant 0 : index
    %c0_20 = arith.constant 0 : index
    %c0_21 = arith.constant 0 : index
    %22 = vector.load %arg9[%c0_19, %c0_20, %c0_21] : memref<1x1x256xf32, #tpu.memory_space<vmem>>, vector<1x1x256xf32>
    %23 = vector.shape_cast %22 : vector<1x1x256xf32> to vector<1x256xf32>
    %24 = vector.broadcast %23 : vector<1x256xf32> to vector<16x256xf32>
    %25 = arith.addf %21, %24 : vector<16x256xf32>
    %26 = tpu.iota {dimensions = array<i32: 0>} : vector<8x8xi32>
    %27 = tpu.iota {dimensions = array<i32: 1>} : vector<8x8xi32>
    %28 = arith.cmpi sle, %27, %26 : vector<8x8xi32>
    %29 = vector.extract_strided_slice %11 {offsets = [0, 0], sizes = [8, 256], strides = [1, 1]} : vector<16x256xf32> to vector<8x256xf32>
    %30 = vector.extract_strided_slice %18 {offsets = [0, 0], sizes = [8, 256], strides = [1, 1]} : vector<16x256xf32> to vector<8x256xf32>
    %31 = vector.extract_strided_slice %25 {offsets = [0, 0], sizes = [8, 256], strides = [1, 1]} : vector<16x256xf32> to vector<8x256xf32>
    %32 = vector.extract_strided_slice %29 {offsets = [0, 0], sizes = [8, 64], strides = [1, 1]} : vector<8x256xf32> to vector<8x64xf32>
    %33 = vector.extract_strided_slice %30 {offsets = [0, 0], sizes = [8, 64], strides = [1, 1]} : vector<8x256xf32> to vector<8x64xf32>
    %34 = vector.extract_strided_slice %31 {offsets = [0, 0], sizes = [8, 64], strides = [1, 1]} : vector<8x256xf32> to vector<8x64xf32>
    %cst_22 = arith.constant dense<0.000000e+00> : vector<8x8xf32>
    %35 = tpu.matmul %32, %33, %cst_22 {dimension_numbers = #tpu.dot_dimension_numbers<[1], [1], [0], [0], [0, 0, 1, 0], [], []>} : vector<8x64xf32>, vector<8x64xf32>, vector<8x8xf32> -> vector<8x8xf32>
    %cst_23 = arith.constant 0xFF800000 : f32
    %36 = vector.broadcast %cst_23 : f32 to vector<8x8xf32>
    %37 = arith.select %28, %35, %36 : vector<8x8xi1>, vector<8x8xf32>
    %cst_24 = arith.constant dense<0xFF800000> : vector<8xf32>
    %38 = vector.multi_reduction <maximumf>, %37, %cst_24 [1] : vector<8x8xf32> to vector<8xf32>
    %39 = vector.shape_cast %38 : vector<8xf32> to vector<8x1xf32>
    %40 = vector.broadcast %39 : vector<8x1xf32> to vector<8x8xf32>
    %41 = arith.subf %37, %40 : vector<8x8xf32>
    %42 = math.exp %41 : vector<8x8xf32>
    %cst_25 = arith.constant dense<0.000000e+00> : vector<8xf32>
    %43 = vector.multi_reduction <add>, %42, %cst_25 [1] : vector<8x8xf32> to vector<8xf32>
    %44 = vector.shape_cast %43 : vector<8xf32> to vector<8x1xf32>
    %45 = tpu.reciprocal %44 {approx = true} : vector<8x1xf32> -> vector<8x1xf32>
    %46 = vector.broadcast %45 : vector<8x1xf32> to vector<8x8xf32>
    %47 = arith.mulf %42, %46 : vector<8x8xf32>
    %cst_26 = arith.constant dense<0.000000e+00> : vector<8x64xf32>
    %48 = tpu.matmul %47, %34, %cst_26 {dimension_numbers = #tpu.dot_dimension_numbers<[1], [0], [0], [1], [0, 0, 1, 1], [], []>} : vector<8x8xf32>, vector<8x64xf32>, vector<8x64xf32> -> vector<8x64xf32>
    %49 = vector.extract_strided_slice %29 {offsets = [0, 64], sizes = [8, 64], strides = [1, 1]} : vector<8x256xf32> to vector<8x64xf32>
    %50 = vector.extract_strided_slice %30 {offsets = [0, 64], sizes = [8, 64], strides = [1, 1]} : vector<8x256xf32> to vector<8x64xf32>
    %51 = vector.extract_strided_slice %31 {offsets = [0, 64], sizes = [8, 64], strides = [1, 1]} : vector<8x256xf32> to vector<8x64xf32>
    %cst_27 = arith.constant dense<0.000000e+00> : vector<8x8xf32>
    %52 = tpu.matmul %49, %50, %cst_27 {dimension_numbers = #tpu.dot_dimension_numbers<[1], [1], [0], [0], [0, 0, 1, 0], [], []>} : vector<8x64xf32>, vector<8x64xf32>, vector<8x8xf32> -> vector<8x8xf32>
    %cst_28 = arith.constant 0xFF800000 : f32
    %53 = vector.broadcast %cst_28 : f32 to vector<8x8xf32>
    %54 = arith.select %28, %52, %53 : vector<8x8xi1>, vector<8x8xf32>
    %cst_29 = arith.constant dense<0xFF800000> : vector<8xf32>
    %55 = vector.multi_reduction <maximumf>, %54, %cst_29 [1] : vector<8x8xf32> to vector<8xf32>
    %56 = vector.shape_cast %55 : vector<8xf32> to vector<8x1xf32>
    %57 = vector.broadcast %56 : vector<8x1xf32> to vector<8x8xf32>
    %58 = arith.subf %54, %57 : vector<8x8xf32>
    %59 = math.exp %58 : vector<8x8xf32>
    %cst_30 = arith.constant dense<0.000000e+00> : vector<8xf32>
    %60 = vector.multi_reduction <add>, %59, %cst_30 [1] : vector<8x8xf32> to vector<8xf32>
    %61 = vector.shape_cast %60 : vector<8xf32> to vector<8x1xf32>
    %62 = tpu.reciprocal %61 {approx = true} : vector<8x1xf32> -> vector<8x1xf32>
    %63 = vector.broadcast %62 : vector<8x1xf32> to vector<8x8xf32>
    %64 = arith.mulf %59, %63 : vector<8x8xf32>
    %cst_31 = arith.constant dense<0.000000e+00> : vector<8x64xf32>
    %65 = tpu.matmul %64, %51, %cst_31 {dimension_numbers = #tpu.dot_dimension_numbers<[1], [0], [0], [1], [0, 0, 1, 1], [], []>} : vector<8x8xf32>, vector<8x64xf32>, vector<8x64xf32> -> vector<8x64xf32>
    %66 = vector.extract_strided_slice %29 {offsets = [0, 128], sizes = [8, 64], strides = [1, 1]} : vector<8x256xf32> to vector<8x64xf32>
    %67 = vector.extract_strided_slice %30 {offsets = [0, 128], sizes = [8, 64], strides = [1, 1]} : vector<8x256xf32> to vector<8x64xf32>
    %68 = vector.extract_strided_slice %31 {offsets = [0, 128], sizes = [8, 64], strides = [1, 1]} : vector<8x256xf32> to vector<8x64xf32>
    %cst_32 = arith.constant dense<0.000000e+00> : vector<8x8xf32>
    %69 = tpu.matmul %66, %67, %cst_32 {dimension_numbers = #tpu.dot_dimension_numbers<[1], [1], [0], [0], [0, 0, 1, 0], [], []>} : vector<8x64xf32>, vector<8x64xf32>, vector<8x8xf32> -> vector<8x8xf32>
    %cst_33 = arith.constant 0xFF800000 : f32
    %70 = vector.broadcast %cst_33 : f32 to vector<8x8xf32>
    %71 = arith.select %28, %69, %70 : vector<8x8xi1>, vector<8x8xf32>
    %cst_34 = arith.constant dense<0xFF800000> : vector<8xf32>
    %72 = vector.multi_reduction <maximumf>, %71, %cst_34 [1] : vector<8x8xf32> to vector<8xf32>
    %73 = vector.shape_cast %72 : vector<8xf32> to vector<8x1xf32>
    %74 = vector.broadcast %73 : vector<8x1xf32> to vector<8x8xf32>
    %75 = arith.subf %71, %74 : vector<8x8xf32>
    %76 = math.exp %75 : vector<8x8xf32>
    %cst_35 = arith.constant dense<0.000000e+00> : vector<8xf32>
    %77 = vector.multi_reduction <add>, %76, %cst_35 [1] : vector<8x8xf32> to vector<8xf32>
    %78 = vector.shape_cast %77 : vector<8xf32> to vector<8x1xf32>
    %79 = tpu.reciprocal %78 {approx = true} : vector<8x1xf32> -> vector<8x1xf32>
    %80 = vector.broadcast %79 : vector<8x1xf32> to vector<8x8xf32>
    %81 = arith.mulf %76, %80 : vector<8x8xf32>
    %cst_36 = arith.constant dense<0.000000e+00> : vector<8x64xf32>
    %82 = tpu.matmul %81, %68, %cst_36 {dimension_numbers = #tpu.dot_dimension_numbers<[1], [0], [0], [1], [0, 0, 1, 1], [], []>} : vector<8x8xf32>, vector<8x64xf32>, vector<8x64xf32> -> vector<8x64xf32>
    %83 = vector.extract_strided_slice %29 {offsets = [0, 192], sizes = [8, 64], strides = [1, 1]} : vector<8x256xf32> to vector<8x64xf32>
    %84 = vector.extract_strided_slice %30 {offsets = [0, 192], sizes = [8, 64], strides = [1, 1]} : vector<8x256xf32> to vector<8x64xf32>
    %85 = vector.extract_strided_slice %31 {offsets = [0, 192], sizes = [8, 64], strides = [1, 1]} : vector<8x256xf32> to vector<8x64xf32>
    %cst_37 = arith.constant dense<0.000000e+00> : vector<8x8xf32>
    %86 = tpu.matmul %83, %84, %cst_37 {dimension_numbers = #tpu.dot_dimension_numbers<[1], [1], [0], [0], [0, 0, 1, 0], [], []>} : vector<8x64xf32>, vector<8x64xf32>, vector<8x8xf32> -> vector<8x8xf32>
    %cst_38 = arith.constant 0xFF800000 : f32
    %87 = vector.broadcast %cst_38 : f32 to vector<8x8xf32>
    %88 = arith.select %28, %86, %87 : vector<8x8xi1>, vector<8x8xf32>
    %cst_39 = arith.constant dense<0xFF800000> : vector<8xf32>
    %89 = vector.multi_reduction <maximumf>, %88, %cst_39 [1] : vector<8x8xf32> to vector<8xf32>
    %90 = vector.shape_cast %89 : vector<8xf32> to vector<8x1xf32>
    %91 = vector.broadcast %90 : vector<8x1xf32> to vector<8x8xf32>
    %92 = arith.subf %88, %91 : vector<8x8xf32>
    %93 = math.exp %92 : vector<8x8xf32>
    %cst_40 = arith.constant dense<0.000000e+00> : vector<8xf32>
    %94 = vector.multi_reduction <add>, %93, %cst_40 [1] : vector<8x8xf32> to vector<8xf32>
    %95 = vector.shape_cast %94 : vector<8xf32> to vector<8x1xf32>
    %96 = tpu.reciprocal %95 {approx = true} : vector<8x1xf32> -> vector<8x1xf32>
    %97 = vector.broadcast %96 : vector<8x1xf32> to vector<8x8xf32>
    %98 = arith.mulf %93, %97 : vector<8x8xf32>
    %cst_41 = arith.constant dense<0.000000e+00> : vector<8x64xf32>
    %99 = tpu.matmul %98, %85, %cst_41 {dimension_numbers = #tpu.dot_dimension_numbers<[1], [0], [0], [1], [0, 0, 1, 1], [], []>} : vector<8x8xf32>, vector<8x64xf32>, vector<8x64xf32> -> vector<8x64xf32>
    %100 = tpu.concatenate %48, %65, %82, %99 in 1 : vector<8x64xf32>, vector<8x64xf32>, vector<8x64xf32>, vector<8x64xf32> -> vector<8x256xf32>
    %101 = vector.extract_strided_slice %11 {offsets = [8, 0], sizes = [8, 256], strides = [1, 1]} : vector<16x256xf32> to vector<8x256xf32>
    %102 = vector.extract_strided_slice %18 {offsets = [8, 0], sizes = [8, 256], strides = [1, 1]} : vector<16x256xf32> to vector<8x256xf32>
    %103 = vector.extract_strided_slice %25 {offsets = [8, 0], sizes = [8, 256], strides = [1, 1]} : vector<16x256xf32> to vector<8x256xf32>
    %104 = vector.extract_strided_slice %101 {offsets = [0, 0], sizes = [8, 64], strides = [1, 1]} : vector<8x256xf32> to vector<8x64xf32>
    %105 = vector.extract_strided_slice %102 {offsets = [0, 0], sizes = [8, 64], strides = [1, 1]} : vector<8x256xf32> to vector<8x64xf32>
    %106 = vector.extract_strided_slice %103 {offsets = [0, 0], sizes = [8, 64], strides = [1, 1]} : vector<8x256xf32> to vector<8x64xf32>
    %cst_42 = arith.constant dense<0.000000e+00> : vector<8x8xf32>
    %107 = tpu.matmul %104, %105, %cst_42 {dimension_numbers = #tpu.dot_dimension_numbers<[1], [1], [0], [0], [0, 0, 1, 0], [], []>} : vector<8x64xf32>, vector<8x64xf32>, vector<8x8xf32> -> vector<8x8xf32>
    %cst_43 = arith.constant 0xFF800000 : f32
    %108 = vector.broadcast %cst_43 : f32 to vector<8x8xf32>
    %109 = arith.select %28, %107, %108 : vector<8x8xi1>, vector<8x8xf32>
    %cst_44 = arith.constant dense<0xFF800000> : vector<8xf32>
    %110 = vector.multi_reduction <maximumf>, %109, %cst_44 [1] : vector<8x8xf32> to vector<8xf32>
    %111 = vector.shape_cast %110 : vector<8xf32> to vector<8x1xf32>
    %112 = vector.broadcast %111 : vector<8x1xf32> to vector<8x8xf32>
    %113 = arith.subf %109, %112 : vector<8x8xf32>
    %114 = math.exp %113 : vector<8x8xf32>
    %cst_45 = arith.constant dense<0.000000e+00> : vector<8xf32>
    %115 = vector.multi_reduction <add>, %114, %cst_45 [1] : vector<8x8xf32> to vector<8xf32>
    %116 = vector.shape_cast %115 : vector<8xf32> to vector<8x1xf32>
    %117 = tpu.reciprocal %116 {approx = true} : vector<8x1xf32> -> vector<8x1xf32>
    %118 = vector.broadcast %117 : vector<8x1xf32> to vector<8x8xf32>
    %119 = arith.mulf %114, %118 : vector<8x8xf32>
    %cst_46 = arith.constant dense<0.000000e+00> : vector<8x64xf32>
    %120 = tpu.matmul %119, %106, %cst_46 {dimension_numbers = #tpu.dot_dimension_numbers<[1], [0], [0], [1], [0, 0, 1, 1], [], []>} : vector<8x8xf32>, vector<8x64xf32>, vector<8x64xf32> -> vector<8x64xf32>
    %121 = vector.extract_strided_slice %101 {offsets = [0, 64], sizes = [8, 64], strides = [1, 1]} : vector<8x256xf32> to vector<8x64xf32>
    %122 = vector.extract_strided_slice %102 {offsets = [0, 64], sizes = [8, 64], strides = [1, 1]} : vector<8x256xf32> to vector<8x64xf32>
    %123 = vector.extract_strided_slice %103 {offsets = [0, 64], sizes = [8, 64], strides = [1, 1]} : vector<8x256xf32> to vector<8x64xf32>
    %cst_47 = arith.constant dense<0.000000e+00> : vector<8x8xf32>
    %124 = tpu.matmul %121, %122, %cst_47 {dimension_numbers = #tpu.dot_dimension_numbers<[1], [1], [0], [0], [0, 0, 1, 0], [], []>} : vector<8x64xf32>, vector<8x64xf32>, vector<8x8xf32> -> vector<8x8xf32>
    %cst_48 = arith.constant 0xFF800000 : f32
    %125 = vector.broadcast %cst_48 : f32 to vector<8x8xf32>
    %126 = arith.select %28, %124, %125 : vector<8x8xi1>, vector<8x8xf32>
    %cst_49 = arith.constant dense<0xFF800000> : vector<8xf32>
    %127 = vector.multi_reduction <maximumf>, %126, %cst_49 [1] : vector<8x8xf32> to vector<8xf32>
    %128 = vector.shape_cast %127 : vector<8xf32> to vector<8x1xf32>
    %129 = vector.broadcast %128 : vector<8x1xf32> to vector<8x8xf32>
    %130 = arith.subf %126, %129 : vector<8x8xf32>
    %131 = math.exp %130 : vector<8x8xf32>
    %cst_50 = arith.constant dense<0.000000e+00> : vector<8xf32>
    %132 = vector.multi_reduction <add>, %131, %cst_50 [1] : vector<8x8xf32> to vector<8xf32>
    %133 = vector.shape_cast %132 : vector<8xf32> to vector<8x1xf32>
    %134 = tpu.reciprocal %133 {approx = true} : vector<8x1xf32> -> vector<8x1xf32>
    %135 = vector.broadcast %134 : vector<8x1xf32> to vector<8x8xf32>
    %136 = arith.mulf %131, %135 : vector<8x8xf32>
    %cst_51 = arith.constant dense<0.000000e+00> : vector<8x64xf32>
    %137 = tpu.matmul %136, %123, %cst_51 {dimension_numbers = #tpu.dot_dimension_numbers<[1], [0], [0], [1], [0, 0, 1, 1], [], []>} : vector<8x8xf32>, vector<8x64xf32>, vector<8x64xf32> -> vector<8x64xf32>
    %138 = vector.extract_strided_slice %101 {offsets = [0, 128], sizes = [8, 64], strides = [1, 1]} : vector<8x256xf32> to vector<8x64xf32>
    %139 = vector.extract_strided_slice %102 {offsets = [0, 128], sizes = [8, 64], strides = [1, 1]} : vector<8x256xf32> to vector<8x64xf32>
    %140 = vector.extract_strided_slice %103 {offsets = [0, 128], sizes = [8, 64], strides = [1, 1]} : vector<8x256xf32> to vector<8x64xf32>
    %cst_52 = arith.constant dense<0.000000e+00> : vector<8x8xf32>
    %141 = tpu.matmul %138, %139, %cst_52 {dimension_numbers = #tpu.dot_dimension_numbers<[1], [1], [0], [0], [0, 0, 1, 0], [], []>} : vector<8x64xf32>, vector<8x64xf32>, vector<8x8xf32> -> vector<8x8xf32>
    %cst_53 = arith.constant 0xFF800000 : f32
    %142 = vector.broadcast %cst_53 : f32 to vector<8x8xf32>
    %143 = arith.select %28, %141, %142 : vector<8x8xi1>, vector<8x8xf32>
    %cst_54 = arith.constant dense<0xFF800000> : vector<8xf32>
    %144 = vector.multi_reduction <maximumf>, %143, %cst_54 [1] : vector<8x8xf32> to vector<8xf32>
    %145 = vector.shape_cast %144 : vector<8xf32> to vector<8x1xf32>
    %146 = vector.broadcast %145 : vector<8x1xf32> to vector<8x8xf32>
    %147 = arith.subf %143, %146 : vector<8x8xf32>
    %148 = math.exp %147 : vector<8x8xf32>
    %cst_55 = arith.constant dense<0.000000e+00> : vector<8xf32>
    %149 = vector.multi_reduction <add>, %148, %cst_55 [1] : vector<8x8xf32> to vector<8xf32>
    %150 = vector.shape_cast %149 : vector<8xf32> to vector<8x1xf32>
    %151 = tpu.reciprocal %150 {approx = true} : vector<8x1xf32> -> vector<8x1xf32>
    %152 = vector.broadcast %151 : vector<8x1xf32> to vector<8x8xf32>
    %153 = arith.mulf %148, %152 : vector<8x8xf32>
    %cst_56 = arith.constant dense<0.000000e+00> : vector<8x64xf32>
    %154 = tpu.matmul %153, %140, %cst_56 {dimension_numbers = #tpu.dot_dimension_numbers<[1], [0], [0], [1], [0, 0, 1, 1], [], []>} : vector<8x8xf32>, vector<8x64xf32>, vector<8x64xf32> -> vector<8x64xf32>
    %155 = vector.extract_strided_slice %101 {offsets = [0, 192], sizes = [8, 64], strides = [1, 1]} : vector<8x256xf32> to vector<8x64xf32>
    %156 = vector.extract_strided_slice %102 {offsets = [0, 192], sizes = [8, 64], strides = [1, 1]} : vector<8x256xf32> to vector<8x64xf32>
    %157 = vector.extract_strided_slice %103 {offsets = [0, 192], sizes = [8, 64], strides = [1, 1]} : vector<8x256xf32> to vector<8x64xf32>
    %cst_57 = arith.constant dense<0.000000e+00> : vector<8x8xf32>
    %158 = tpu.matmul %155, %156, %cst_57 {dimension_numbers = #tpu.dot_dimension_numbers<[1], [1], [0], [0], [0, 0, 1, 0], [], []>} : vector<8x64xf32>, vector<8x64xf32>, vector<8x8xf32> -> vector<8x8xf32>
    %cst_58 = arith.constant 0xFF800000 : f32
    %159 = vector.broadcast %cst_58 : f32 to vector<8x8xf32>
    %160 = arith.select %28, %158, %159 : vector<8x8xi1>, vector<8x8xf32>
    %cst_59 = arith.constant dense<0xFF800000> : vector<8xf32>
    %161 = vector.multi_reduction <maximumf>, %160, %cst_59 [1] : vector<8x8xf32> to vector<8xf32>
    %162 = vector.shape_cast %161 : vector<8xf32> to vector<8x1xf32>
    %163 = vector.broadcast %162 : vector<8x1xf32> to vector<8x8xf32>
    %164 = arith.subf %160, %163 : vector<8x8xf32>
    %165 = math.exp %164 : vector<8x8xf32>
    %cst_60 = arith.constant dense<0.000000e+00> : vector<8xf32>
    %166 = vector.multi_reduction <add>, %165, %cst_60 [1] : vector<8x8xf32> to vector<8xf32>
    %167 = vector.shape_cast %166 : vector<8xf32> to vector<8x1xf32>
    %168 = tpu.reciprocal %167 {approx = true} : vector<8x1xf32> -> vector<8x1xf32>
    %169 = vector.broadcast %168 : vector<8x1xf32> to vector<8x8xf32>
    %170 = arith.mulf %165, %169 : vector<8x8xf32>
    %cst_61 = arith.constant dense<0.000000e+00> : vector<8x64xf32>
    %171 = tpu.matmul %170, %157, %cst_61 {dimension_numbers = #tpu.dot_dimension_numbers<[1], [0], [0], [1], [0, 0, 1, 1], [], []>} : vector<8x8xf32>, vector<8x64xf32>, vector<8x64xf32> -> vector<8x64xf32>
    %172 = tpu.concatenate %120, %137, %154, %171 in 1 : vector<8x64xf32>, vector<8x64xf32>, vector<8x64xf32>, vector<8x64xf32> -> vector<8x256xf32>
    %173 = tpu.concatenate %100, %172 in 0 : vector<8x256xf32>, vector<8x256xf32> -> vector<16x256xf32>
    %174 = arith.truncf %173 : vector<16x256xf32> to vector<16x256xbf16>
    %c0_62 = arith.constant 0 : index
    %c0_63 = arith.constant 0 : index
    %c0_64 = arith.constant 0 : index
    %175 = vector.load %arg6[%c0_62, %c0_63, %c0_64] : memref<1x256x256xbf16, #tpu.memory_space<vmem>>, vector<1x256x256xbf16>
    %176 = vector.shape_cast %175 : vector<1x256x256xbf16> to vector<256x256xbf16>
    %cst_65 = arith.constant dense<0.000000e+00> : vector<16x256xf32>
    %177 = tpu.matmul %174, %176, %cst_65 {dimension_numbers = #tpu.dot_dimension_numbers<[1], [0], [0], [1], [0, 0, 1, 1], [], []>} : vector<16x256xbf16>, vector<256x256xbf16>, vector<16x256xf32> -> vector<16x256xf32>
    %c0_66 = arith.constant 0 : index
    %c0_67 = arith.constant 0 : index
    %c0_68 = arith.constant 0 : index
    %178 = vector.load %arg10[%c0_66, %c0_67, %c0_68] : memref<1x1x256xf32, #tpu.memory_space<vmem>>, vector<1x1x256xf32>
    %179 = vector.shape_cast %178 : vector<1x1x256xf32> to vector<1x256xf32>
    %180 = vector.broadcast %179 : vector<1x256xf32> to vector<16x256xf32>
    %181 = arith.addf %177, %180 : vector<16x256xf32>
    %182 = arith.addf %3, %181 : vector<16x256xf32>
    %cst_69 = arith.constant dense<0.000000e+00> : vector<16xf32>
    %183 = vector.multi_reduction <add>, %182, %cst_69 [1] : vector<16x256xf32> to vector<16xf32>
    %184 = vector.shape_cast %183 : vector<16xf32> to vector<16x1xf32>
    %cst_70 = arith.constant 2.560000e+02 : f32
    %185 = vector.broadcast %cst_70 : f32 to vector<16x1xf32>
    %186 = arith.divf %184, %185 : vector<16x1xf32>
    %187 = vector.broadcast %186 : vector<16x1xf32> to vector<16x256xf32>
    %188 = arith.subf %182, %187 : vector<16x256xf32>
    %189 = arith.mulf %188, %188 : vector<16x256xf32>
    %cst_71 = arith.constant dense<0.000000e+00> : vector<16xf32>
    %190 = vector.multi_reduction <add>, %189, %cst_71 [1] : vector<16x256xf32> to vector<16xf32>
    %191 = vector.shape_cast %190 : vector<16xf32> to vector<16x1xf32>
    %cst_72 = arith.constant 2.560000e+02 : f32
    %192 = vector.broadcast %cst_72 : f32 to vector<16x1xf32>
    %193 = arith.divf %191, %192 : vector<16x1xf32>
    %194 = vector.broadcast %186 : vector<16x1xf32> to vector<16x256xf32>
    %195 = arith.subf %182, %194 : vector<16x256xf32>
    %cst_73 = arith.constant 9.99999974E-6 : f32
    %196 = vector.broadcast %cst_73 : f32 to vector<16x1xf32>
    %197 = arith.addf %193, %196 : vector<16x1xf32>
    %198 = math.rsqrt %197 : vector<16x1xf32>
    %199 = vector.broadcast %198 : vector<16x1xf32> to vector<16x256xf32>
    %200 = arith.mulf %195, %199 : vector<16x256xf32>
    %c0_74 = arith.constant 0 : index
    %c0_75 = arith.constant 0 : index
    %c0_76 = arith.constant 0 : index
    %201 = vector.load %arg11[%c0_74, %c0_75, %c0_76] : memref<1x1x256xf32, #tpu.memory_space<vmem>>, vector<1x1x256xf32>
    %202 = vector.shape_cast %201 : vector<1x1x256xf32> to vector<1x256xf32>
    %203 = vector.broadcast %202 : vector<1x256xf32> to vector<16x256xf32>
    %204 = arith.mulf %200, %203 : vector<16x256xf32>
    %c0_77 = arith.constant 0 : index
    %c0_78 = arith.constant 0 : index
    %c0_79 = arith.constant 0 : index
    %205 = vector.load %arg12[%c0_77, %c0_78, %c0_79] : memref<1x1x256xf32, #tpu.memory_space<vmem>>, vector<1x1x256xf32>
    %206 = vector.shape_cast %205 : vector<1x1x256xf32> to vector<1x256xf32>
    %207 = vector.broadcast %206 : vector<1x256xf32> to vector<16x256xf32>
    %208 = arith.addf %204, %207 : vector<16x256xf32>
    %209 = arith.truncf %208 : vector<16x256xf32> to vector<16x256xbf16>
    %c0_80 = arith.constant 0 : index
    %c0_81 = arith.constant 0 : index
    %c0_82 = arith.constant 0 : index
    %210 = vector.load %arg13[%c0_80, %c0_81, %c0_82] : memref<1x256x512xbf16, #tpu.memory_space<vmem>>, vector<1x256x512xbf16>
    %211 = vector.shape_cast %210 : vector<1x256x512xbf16> to vector<256x512xbf16>
    %cst_83 = arith.constant dense<0.000000e+00> : vector<16x512xf32>
    %212 = tpu.matmul %209, %211, %cst_83 {dimension_numbers = #tpu.dot_dimension_numbers<[1], [0], [0], [1], [0, 0, 1, 1], [], []>} : vector<16x256xbf16>, vector<256x512xbf16>, vector<16x512xf32> -> vector<16x512xf32>
    %c0_84 = arith.constant 0 : index
    %c0_85 = arith.constant 0 : index
    %c0_86 = arith.constant 0 : index
    %213 = vector.load %arg14[%c0_84, %c0_85, %c0_86] : memref<1x1x512xf32, #tpu.memory_space<vmem>>, vector<1x1x512xf32>
    %214 = vector.shape_cast %213 : vector<1x1x512xf32> to vector<1x512xf32>
    %215 = vector.broadcast %214 : vector<1x512xf32> to vector<16x512xf32>
    %216 = arith.addf %212, %215 : vector<16x512xf32>
    %cst_87 = arith.constant 0.000000e+00 : f32
    %217 = vector.broadcast %cst_87 : f32 to vector<16x512xf32>
    %218 = arith.maximumf %216, %217 : vector<16x512xf32>
    %219 = arith.truncf %218 : vector<16x512xf32> to vector<16x512xbf16>
    %c0_88 = arith.constant 0 : index
    %c0_89 = arith.constant 0 : index
    %c0_90 = arith.constant 0 : index
    %220 = vector.load %arg15[%c0_88, %c0_89, %c0_90] : memref<1x512x256xbf16, #tpu.memory_space<vmem>>, vector<1x512x256xbf16>
    %221 = vector.shape_cast %220 : vector<1x512x256xbf16> to vector<512x256xbf16>
    %cst_91 = arith.constant dense<0.000000e+00> : vector<16x256xf32>
    %222 = tpu.matmul %219, %221, %cst_91 {dimension_numbers = #tpu.dot_dimension_numbers<[1], [0], [0], [1], [0, 0, 1, 1], [], []>} : vector<16x512xbf16>, vector<512x256xbf16>, vector<16x256xf32> -> vector<16x256xf32>
    %c0_92 = arith.constant 0 : index
    %c0_93 = arith.constant 0 : index
    %c0_94 = arith.constant 0 : index
    %223 = vector.load %arg16[%c0_92, %c0_93, %c0_94] : memref<1x1x256xf32, #tpu.memory_space<vmem>>, vector<1x1x256xf32>
    %224 = vector.shape_cast %223 : vector<1x1x256xf32> to vector<1x256xf32>
    %225 = vector.broadcast %224 : vector<1x256xf32> to vector<16x256xf32>
    %226 = arith.addf %222, %225 : vector<16x256xf32>
    %227 = arith.addf %208, %226 : vector<16x256xf32>
    %cst_95 = arith.constant dense<0.000000e+00> : vector<16xf32>
    %228 = vector.multi_reduction <add>, %227, %cst_95 [1] : vector<16x256xf32> to vector<16xf32>
    %229 = vector.shape_cast %228 : vector<16xf32> to vector<16x1xf32>
    %cst_96 = arith.constant 2.560000e+02 : f32
    %230 = vector.broadcast %cst_96 : f32 to vector<16x1xf32>
    %231 = arith.divf %229, %230 : vector<16x1xf32>
    %232 = vector.broadcast %231 : vector<16x1xf32> to vector<16x256xf32>
    %233 = arith.subf %227, %232 : vector<16x256xf32>
    %234 = arith.mulf %233, %233 : vector<16x256xf32>
    %cst_97 = arith.constant dense<0.000000e+00> : vector<16xf32>
    %235 = vector.multi_reduction <add>, %234, %cst_97 [1] : vector<16x256xf32> to vector<16xf32>
    %236 = vector.shape_cast %235 : vector<16xf32> to vector<16x1xf32>
    %cst_98 = arith.constant 2.560000e+02 : f32
    %237 = vector.broadcast %cst_98 : f32 to vector<16x1xf32>
    %238 = arith.divf %236, %237 : vector<16x1xf32>
    %239 = vector.broadcast %231 : vector<16x1xf32> to vector<16x256xf32>
    %240 = arith.subf %227, %239 : vector<16x256xf32>
    %cst_99 = arith.constant 9.99999974E-6 : f32
    %241 = vector.broadcast %cst_99 : f32 to vector<16x1xf32>
    %242 = arith.addf %238, %241 : vector<16x1xf32>
    %243 = math.rsqrt %242 : vector<16x1xf32>
    %244 = vector.broadcast %243 : vector<16x1xf32> to vector<16x256xf32>
    %245 = arith.mulf %240, %244 : vector<16x256xf32>
    %c0_100 = arith.constant 0 : index
    %c0_101 = arith.constant 0 : index
    %c0_102 = arith.constant 0 : index
    %246 = vector.load %arg17[%c0_100, %c0_101, %c0_102] : memref<1x1x256xf32, #tpu.memory_space<vmem>>, vector<1x1x256xf32>
    %247 = vector.shape_cast %246 : vector<1x1x256xf32> to vector<1x256xf32>
    %248 = vector.broadcast %247 : vector<1x256xf32> to vector<16x256xf32>
    %249 = arith.mulf %245, %248 : vector<16x256xf32>
    %c0_103 = arith.constant 0 : index
    %c0_104 = arith.constant 0 : index
    %c0_105 = arith.constant 0 : index
    %250 = vector.load %arg18[%c0_103, %c0_104, %c0_105] : memref<1x1x256xf32, #tpu.memory_space<vmem>>, vector<1x1x256xf32>
    %251 = vector.shape_cast %250 : vector<1x1x256xf32> to vector<1x256xf32>
    %252 = vector.broadcast %251 : vector<1x256xf32> to vector<16x256xf32>
    %253 = arith.addf %249, %252 : vector<16x256xf32>
    %c0_106 = arith.constant 0 : index
    %c0_107 = arith.constant 0 : index
    %254 = vector.load %arg20[%c0_106, %c0_107] : memref<16x256xf32, #tpu.memory_space<vmem>>, vector<16x256xf32>
    tpu.vector_store %arg20[%c0_106, %c0_107], %253 {strides = array<i32>} : memref<16x256xf32, #tpu.memory_space<vmem>>, vector<16x256xf32>,
    %c1_i32 = arith.constant 1 : i32
    %255 = arith.cmpi eq, %arg1, %c1_i32 : i32
    %256 = arith.extui %255 : i1 to i32
    %c0_i32_108 = arith.constant 0 : i32
    %257 = arith.cmpi ne, %256, %c0_i32_108 : i32
    scf.if %257 {
      %258 = arith.truncf %253 : vector<16x256xf32> to vector<16x256xbf16>
      %c0_109 = arith.constant 0 : index
      %c0_110 = arith.constant 0 : index
      %259 = vector.load %arg19[%c0_109, %c0_110] : memref<16x256xbf16, #tpu.memory_space<vmem>>, vector<16x256xbf16>
      tpu.vector_store %arg19[%c0_109, %c0_110], %258 {strides = array<i32>} : memref<16x256xbf16, #tpu.memory_space<vmem>>, vector<16x256xbf16>,
    } else {
    }
    return
  }
  func.func @transform_0(%arg0: i32, %arg1: i32) -> (i32, i32) {
    %c0_i32 = arith.constant 0 : i32
    %c0_i32_0 = arith.constant 0 : i32
    return %arg0, %c0_i32 : i32, i32
  }
  func.func @transform_1(%arg0: i32, %arg1: i32) -> (i32, i32, i32) {
    %c0_i32 = arith.constant 0 : i32
    %c0_i32_0 = arith.constant 0 : i32
    %c0_i32_1 = arith.constant 0 : i32
    return %arg1, %c0_i32, %c0_i32_0 : i32, i32, i32
  }
  func.func @transform_2(%arg0: i32, %arg1: i32) -> (i32, i32, i32) {
    %c0_i32 = arith.constant 0 : i32
    %c0_i32_0 = arith.constant 0 : i32
    %c0_i32_1 = arith.constant 0 : i32
    return %arg1, %c0_i32, %c0_i32_0 : i32, i32, i32
  }
  func.func @transform_3(%arg0: i32, %arg1: i32) -> (i32, i32, i32) {
    %c0_i32 = arith.constant 0 : i32
    %c0_i32_0 = arith.constant 0 : i32
    %c0_i32_1 = arith.constant 0 : i32
    return %arg1, %c0_i32, %c0_i32_0 : i32, i32, i32
  }
  func.func @transform_4(%arg0: i32, %arg1: i32) -> (i32, i32, i32) {
    %c0_i32 = arith.constant 0 : i32
    %c0_i32_0 = arith.constant 0 : i32
    %c0_i32_1 = arith.constant 0 : i32
    return %arg1, %c0_i32, %c0_i32_0 : i32, i32, i32
  }
  func.func @transform_5(%arg0: i32, %arg1: i32) -> (i32, i32, i32) {
    %c0_i32 = arith.constant 0 : i32
    %c0_i32_0 = arith.constant 0 : i32
    %c0_i32_1 = arith.constant 0 : i32
    return %arg1, %c0_i32, %c0_i32_0 : i32, i32, i32
  }
  func.func @transform_6(%arg0: i32, %arg1: i32) -> (i32, i32, i32) {
    %c0_i32 = arith.constant 0 : i32
    %c0_i32_0 = arith.constant 0 : i32
    %c0_i32_1 = arith.constant 0 : i32
    return %arg1, %c0_i32, %c0_i32_0 : i32, i32, i32
  }
  func.func @transform_7(%arg0: i32, %arg1: i32) -> (i32, i32, i32) {
    %c0_i32 = arith.constant 0 : i32
    %c0_i32_0 = arith.constant 0 : i32
    %c0_i32_1 = arith.constant 0 : i32
    return %arg1, %c0_i32, %c0_i32_0 : i32, i32, i32
  }
  func.func @transform_8(%arg0: i32, %arg1: i32) -> (i32, i32, i32) {
    %c0_i32 = arith.constant 0 : i32
    %c0_i32_0 = arith.constant 0 : i32
    %c0_i32_1 = arith.constant 0 : i32
    return %arg1, %c0_i32, %c0_i32_0 : i32, i32, i32
  }
  func.func @transform_9(%arg0: i32, %arg1: i32) -> (i32, i32, i32) {
    %c0_i32 = arith.constant 0 : i32
    %c0_i32_0 = arith.constant 0 : i32
    %c0_i32_1 = arith.constant 0 : i32
    return %arg1, %c0_i32, %c0_i32_0 : i32, i32, i32
  }
  func.func @transform_10(%arg0: i32, %arg1: i32) -> (i32, i32, i32) {
    %c0_i32 = arith.constant 0 : i32
    %c0_i32_0 = arith.constant 0 : i32
    %c0_i32_1 = arith.constant 0 : i32
    return %arg1, %c0_i32, %c0_i32_0 : i32, i32, i32
  }
  func.func @transform_11(%arg0: i32, %arg1: i32) -> (i32, i32, i32) {
    %c0_i32 = arith.constant 0 : i32
    %c0_i32_0 = arith.constant 0 : i32
    %c0_i32_1 = arith.constant 0 : i32
    return %arg1, %c0_i32, %c0_i32_0 : i32, i32, i32
  }
  func.func @transform_12(%arg0: i32, %arg1: i32) -> (i32, i32, i32) {
    %c0_i32 = arith.constant 0 : i32
    %c0_i32_0 = arith.constant 0 : i32
    %c0_i32_1 = arith.constant 0 : i32
    return %arg1, %c0_i32, %c0_i32_0 : i32, i32, i32
  }
  func.func @transform_13(%arg0: i32, %arg1: i32) -> (i32, i32, i32) {
    %c0_i32 = arith.constant 0 : i32
    %c0_i32_0 = arith.constant 0 : i32
    %c0_i32_1 = arith.constant 0 : i32
    return %arg1, %c0_i32, %c0_i32_0 : i32, i32, i32
  }
  func.func @transform_14(%arg0: i32, %arg1: i32) -> (i32, i32, i32) {
    %c0_i32 = arith.constant 0 : i32
    %c0_i32_0 = arith.constant 0 : i32
    %c0_i32_1 = arith.constant 0 : i32
    return %arg1, %c0_i32, %c0_i32_0 : i32, i32, i32
  }
  func.func @transform_15(%arg0: i32, %arg1: i32) -> (i32, i32, i32) {
    %c0_i32 = arith.constant 0 : i32
    %c0_i32_0 = arith.constant 0 : i32
    %c0_i32_1 = arith.constant 0 : i32
    return %arg1, %c0_i32, %c0_i32_0 : i32, i32, i32
  }
  func.func @transform_16(%arg0: i32, %arg1: i32) -> (i32, i32, i32) {
    %c0_i32 = arith.constant 0 : i32
    %c0_i32_0 = arith.constant 0 : i32
    %c0_i32_1 = arith.constant 0 : i32
    return %arg1, %c0_i32, %c0_i32_0 : i32, i32, i32
  }
  func.func @transform_17(%arg0: i32, %arg1: i32) -> (i32, i32) {
    %c0_i32 = arith.constant 0 : i32
    %c0_i32_0 = arith.constant 0 : i32
    return %arg0, %c0_i32 : i32, i32
  }
}

</mosaic_0001>

<bundles_post_ra>
// kernel: tpu_custom_call.1
= control target key start
LH: loop header
LB: loop body
LE: loop exit
PB: predicated region body
PF: predicated region fallthrough
CT: control target
= control target key end

     0   :  { %s7222_s0 = inlined_call_operand.hbm [shape: f32[16,256], index: 0, kind: input, shape index: {}]   ;;  %s7223_s1 = inlined_call_operand.hbm [shape: bf16[2,256,256], index: 1, kind: input, shape index: {}]   ;;  %s7224_s2 = inlined_call_operand.hbm [shape: bf16[2,256,256], index: 2, kind: input, shape index: {}]   ;;  %s7225_s3 = inlined_call_operand.hbm [shape: bf16[2,256,256], index: 3, kind: input, shape index: {}]   ;;  %s7226_s4 = inlined_call_operand.hbm [shape: bf16[2,256,256], index: 4, kind: input, shape index: {}]   ;;  %s7227_s5 = inlined_call_operand.vmem [shape: f32[2,1,256], index: 5, kind: input, shape index: {}]   ;;  %s7228_s6 = inlined_call_operand.vmem [shape: f32[2,1,256], index: 6, kind: input, shape index: {}]   ;;  %s7229_s7 = inlined_call_operand.vmem [shape: f32[2,1,256], index: 7, kind: input, shape index: {}]   ;;  %s7230_s8 = inlined_call_operand.vmem [shape: f32[2,1,256], index: 8, kind: input, shape index: {}]   ;;  %s7231_s9 = inlined_call_operand.vmem [shape: f32[2,1,256], index: 9, kind: input, shape index: {}]   ;;  %s7232_s10 = inlined_call_operand.vmem [shape: f32[2,1,256], index: 10, kind: input, shape index: {}]   ;;  %s7233_s11 = inlined_call_operand.hbm [shape: bf16[2,256,512], index: 11, kind: input, shape index: {}]   ;;  %s7234_s12 = inlined_call_operand.vmem [shape: f32[2,1,512], index: 12, kind: input, shape index: {}]   ;;  %s7235_s13 = inlined_call_operand.hbm [shape: bf16[2,512,256], index: 13, kind: input, shape index: {}]   ;;  %s7236_s14 = inlined_call_operand.vmem [shape: f32[2,1,256], index: 14, kind: input, shape index: {}]   ;;  %s7237_s15 = inlined_call_operand.vmem [shape: f32[2,1,256], index: 15, kind: input, shape index: {}]   ;;  %s7238_s16 = inlined_call_operand.vmem [shape: f32[2,1,256], index: 16, kind: input, shape index: {}]   ;;  %s7239_s17 = inlined_call_operand.hbm [shape: bf16[16,256], index: 17, kind: output, shape index: {}]  }
   0x1   :  { %7270 = sst [smem:[#allocation29_spill]] %s7222_s0 }
   0x2   :  { %7271 = sst [smem:[#allocation30_spill]] %s7223_s1 }
   0x3   :  { %7272 = sst [smem:[#allocation31_spill]] %s7224_s2 }
   0x4   :  { %7273 = sst [smem:[#allocation32_spill]] %s7225_s3 }
   0x5   :  { %7274 = sst [smem:[#allocation33_spill]] %s7226_s4 }
   0x6   :  { %7275 = sst [smem:[#allocation34_spill]] %s7228_s6 }
   0x7   :  { %7276 = sst [smem:[#allocation35_spill]] %s7229_s7 }
   0x8   :  { %7277 = sst [smem:[#allocation36_spill]] %s7230_s8 }
   0x9   :  { %7278 = sst [smem:[#allocation37_spill]] %s7231_s9 }
   0xa   :  { %7279 = sst [smem:[#allocation38_spill]] %s7232_s10 }
   0xb   :  { %7280 = sst [smem:[#allocation39_spill]] %s7233_s11 }
   0xc   :  { %7281 = sst [smem:[#allocation40_spill]] %s7234_s12 }
   0xd   :  { %7282 = sst [smem:[#allocation41_spill]] %s7235_s13 }
   0xe   :  { %7283 = sst [smem:[#allocation42_spill]] %s7236_s14 }
   0xf   :  { %7284 = sst [smem:[#allocation43_spill]] %s7237_s15 }
  0x10   :  { %7285 = sst [smem:[#allocation44_spill]] %s7238_s16 }
  0x11   :  { %7286 = sst [smem:[#allocation45_spill]] %s7239_s17 }
  0x12   :  { %22 = vsyncpa [#allocation4], 0 }
  0x13   :  { %23 = vsyncpa [#allocation7], 0 }
  0x14   :  { %25 = vsyncpa [#allocation7 + $0x1], 0 }
  0x15   :  { %26 = vsyncpa [#allocation10], 0 }
  0x16   :  { %28 = vsyncpa [#allocation10 + $0x1], 0 }
  0x17   :  { %29 = vsyncpa [#allocation13], 0 }
  0x18   :  { %31 = vsyncpa [#allocation13 + $0x1], 0 }
  0x19   :  { %32 = vsyncpa [#allocation5], 0  ;;  %s6177_s24 = smov 0   ;;  %s6179_s25 = smov 0  }
  0x1a   :  { %s6181_s26 = smov 0   ;;  %s6183_s27 = smov 0  }
  0x1b   :  { %s6185_s28 = smov 0   ;;  %s6187_s29 = smov 0  }
  0x1c LB: > { %7287 = sst [smem:[#allocation21_spill]] %s6052_s25  ;;  %s47_s0 = sadd.s32 1, %s6064_s28  ;;  %s6068_s29 = sphi %s6187_s29, %s38_s29   ;;  %s6064_s28 = sphi %s6185_s28, %s7355_s28   ;;  %s6060_s27 = sphi %s6183_s27, %s7354_s27   ;;  %s6056_s26 = sphi %s6181_s26, %s7353_s26   ;;  %s6052_s25 = sphi %s6179_s25, %s7352_s25   ;;  %s6048_s24 = sphi %s6177_s24, %s7351_s24  }
  0x1d   : > { %7288 = sst [smem:[#allocation22_spill]] %s6056_s26  ;;  %s83_s30 = sadd.s32 1, %s6056_s26 }
  0x1e   : > { %7289 = sst [smem:[#allocation23_spill]] %s6064_s28  ;;  %p48_p0 = scmp.ge.s32.totalorder %s47_s0, 2 }
  0x1f   : > { %7290 = sst [smem:[#allocation24_spill]] %s6068_s29  ;;  %p90_p1 = scmp.ne.s32.totalorder %s6056_s26, %s6052_s25 }
  0x20   : > { %p91_p2 = scmp.eq.s32.totalorder %s6068_s29, 0  ;;  %s7357_s0 = smov (%p48_p0, %s47_s0), 0 }
  0x21   : > { %7291 = sst [smem:[#allocation25_spill]] %s7357_s0  ;;  %p5267_p4 = scmp.lt.s32.totalorder %s6068_s29, 2 }
  0x22   : > { %p92_p3 = por %p91_p2, %p90_p1  ;;  %s80_s18 = ssub.s32 %s6064_s28, %s7357_s0 }
  0x23   : > { %s6218_s19 = sand.u32 1, %s6068_s29   ;;  %p81_p5 = scmp.eq.s32.totalorder %s80_s18, 0 }
  0x24   : > { %s7244_s1 = sand.u32 1, %s6056_s26   ;;  %s6222_s20 = sshll.u32 %s6064_s28, 12 }
  0x25   : > { %s6225_s21 = scalar_select %p81_p5, %s6056_s26, %s83_s30  }
  0x26   : > { %s6229_s22 = sshll.u32 %s7244_s1, 8  ;;  %s7293_s16 = sld [smem:[#allocation30_spill]] }
  0x27   : > { %7292 = sst [smem:[#allocation26_spill]] %s6225_s21  ;;  %p6237_p6 = pnand %p5267_p4, %p92_p3 }
  0x28   : > { %s557_s30 = scalar_lea.vmem [#allocation6], %s6229_s22 }
  0x29   : > { %s7294_s18 = scalar_select %p6237_p6, 1, 0 }
  0x2a   : > { %s564_s0 = sshll.u32 %s557_s30, 4  ;;  %p6249_p8 = pneg %p6237_p6  ;;  %s6242_s0 = int_to_ptr.vmem [resolvable:$true] %s564_s0 }
  0x2c   : > { %s6235_s15 = scalar_lea.hbm %s7293_s16, %s6222_s20  ;;  %s5773_s12 = scalar_lea.hbm %s7293_s16, 8192 }
  0x2d   : > { %s5768_s21 = scalar_lea.hbm %s6235_s15, 4096  ;;  %p5774_p11 = scmp.lt.u32.totalorder %s6235_s15, %s7293_s16 }
  0x2e   : > { %p5769_p7 = scmp.ne.s32.totalorder %s6235_s15, %s5768_s21  ;;  %p5775_p12 = scmp.lt.u32.totalorder %s5773_s12, %s5768_s21 }
  0x2f   : > { %s7295_s17 = scalar_select %p6249_p8, 1, 0 }
  0x30   : > { %p5771_p9 = pnand %p6249_p8, %p5769_p7  ;;  %p5776_p13 = por %p5775_p12, %p5774_p11 }
  0x31   : > { %p5777_p0 = scmp.lt.u32.totalorder %s5768_s21, %s6235_s15 }
  0x32   : > { %p5772_p10 = pneg %p5771_p9 }
  0x33   : > { %p5778_p1 = por %p5777_p0, %p5776_p13 }
  0x35   : > { %p5779_p2 = pnand %p5778_p1, %p5772_p10 }
  0x37   : > { %5782 = shalt.err (!%p5779_p2)
}
  0x38   : > { %s5783_s1 = scalar_lea.vmem %s6242_s0, 4096  ;;  %s6070_s14 = smov [#allocation6]  }
  0x39   : > { %p5784_p3 = scmp.ne.s32.totalorder %s6242_s0, %s5783_s1  ;;  %s5788_s23 = sshll.u32 %s6070_s14, 4  ;;  %s5789_s23 = int_to_ptr.vmem [resolvable:$false] %s5788_s23 }
  0x3a   : > { %s5790_s10 = scalar_lea.vmem %s5789_s23, 8192  ;;  %p5791_p7 = scmp.lt.s32.totalorder %s6242_s0, %s5789_s23 }
  0x3b   : > { %p5786_p4 = pnand %p5784_p3, %p6249_p8  ;;  %p5792_p9 = scmp.lt.s32.totalorder %s5790_s10, %s5783_s1 }
  0x3d   : > { %p5787_p5 = pneg %p5786_p4  ;;  %p5793_p11 = por %p5792_p9, %p5791_p7 }
  0x3f   : > { %p5794_p12 = pnand %p5793_p11, %p5787_p5 }
  0x41   : > { %5797 = shalt.err (!%p5794_p12)
}
  0x42   : > { %s7247_s12 = smov 128   ;;  %s7249_s21 = smov 8  }
  0x43   : > { %s7296_s30 = scalar_lea.sflag [#allocation7], %s6218_s19  ;;  %s7297_s3 = sld [smem:[#allocation32_spill]] }
  0x44   : > { %5250 = dma.hbm_to_vmem [thread:$0]  (!%p6237_p6), %s6235_s15, 4096, %s6242_s0, %s7296_s30, %s7247_s12, %s7247_s12, %s7249_s21  }
  0x45   : > { %s599_s10 = scalar_lea.vmem [#allocation9], %s6229_s22  ;;  %s7246_s9 = scalar_lea.sflag [#allocation10], %s6218_s19 }
  0x46   : > { %s606_s16 = sshll.u32 %s599_s10, 4  ;;  %s6284_s16 = int_to_ptr.vmem [resolvable:$true] %s606_s16 }
  0x49   : > { %s6281_s23 = scalar_lea.hbm %s7297_s3, %s6222_s20  ;;  %s5803_s30 = scalar_lea.hbm %s7297_s3, 8192 }
  0x4a   : > { %s5798_s8 = scalar_lea.hbm %s6281_s23, 4096  ;;  %p5804_p1 = scmp.lt.u32.totalorder %s6281_s23, %s7297_s3 }
  0x4b   : > { %p5799_p10 = scmp.ne.s32.totalorder %s6281_s23, %s5798_s8  ;;  %p5805_p2 = scmp.lt.u32.totalorder %s5803_s30, %s5798_s8 }
  0x4c   : > { %p5807_p4 = scmp.lt.u32.totalorder %s5798_s8, %s6281_s23 }
  0x4d   : > { %p5801_p13 = pnand %p5799_p10, %p6249_p8  ;;  %p5806_p3 = por %p5805_p2, %p5804_p1 }
  0x4f   : > { %p5802_p0 = pneg %p5801_p13  ;;  %p5808_p5 = por %p5807_p4, %p5806_p3 }
  0x51   : > { %p5809_p7 = pnand %p5808_p5, %p5802_p0 }
  0x53   : > { %5812 = shalt.err (!%p5809_p7)
}
  0x54   : > { %s5813_s10 = scalar_lea.vmem %s6284_s16, 4096  ;;  %s6073_s15 = smov [#allocation9]  }
  0x55   : > { %p5814_p9 = scmp.ne.s32.totalorder %s6284_s16, %s5813_s10  ;;  %s5818_s0 = sshll.u32 %s6073_s15, 4  ;;  %s5819_s0 = int_to_ptr.vmem [resolvable:$false] %s5818_s0 }
  0x56   : > { %s5820_s1 = scalar_lea.vmem %s5819_s0, 8192  ;;  %p5821_p10 = scmp.lt.s32.totalorder %s6284_s16, %s5819_s0 }
  0x57   : > { %p5816_p11 = pnand %p5814_p9, %p6249_p8  ;;  %p5822_p13 = scmp.lt.s32.totalorder %s5820_s1, %s5813_s10 }
  0x59   : > { %p5817_p12 = pneg %p5816_p11  ;;  %p5823_p1 = por %p5822_p13, %p5821_p10 }
  0x5b   : > { %p5824_p2 = pnand %p5823_p1, %p5817_p12 }
  0x5d   : > { %5827 = shalt.err (!%p5824_p2)
}
  0x5e   : > { %5256 = dma.hbm_to_vmem [thread:$0]  (!%p6237_p6), %s6281_s23, 4096, %s6284_s16, %s7246_s9, %s7247_s12, %s7247_s12, %s7249_s21  }
  0x5f   : > { %s7298_s8 = sand.u32 1, %s6056_s26   ;;  %s5099_s14 = sshll.u32 %s6064_s28, 13 }
  0x60   : > { %s6315_s30 = sshll.u32 %s7298_s8, 9  ;;  %s7299_s11 = sld [smem:[#allocation39_spill]] }
  0x61   : > { %s683_s1 = scalar_lea.vmem [#allocation12], %s6315_s30  ;;  %s7251_s16 = scalar_lea.sflag [#allocation13], %s6218_s19 }
  0x62   : > { %s690_s3 = sshll.u32 %s683_s1, 4  ;;  %s6326_s3 = int_to_ptr.vmem [resolvable:$true] %s690_s3 }
  0x66   : > { %s6323_s0 = scalar_lea.hbm %s7299_s11, %s5099_s14  ;;  %s5833_s10 = scalar_lea.hbm %s7299_s11, 16384 }
  0x67   : > { %s5828_s23 = scalar_lea.hbm %s6323_s0, 8192  ;;  %p5834_p5 = scmp.lt.u32.totalorder %s6323_s0, %s7299_s11 }
  0x68   : > { %p5829_p0 = scmp.ne.s32.totalorder %s6323_s0, %s5828_s23  ;;  %p5835_p7 = scmp.lt.u32.totalorder %s5833_s10, %s5828_s23 }
  0x69   : > { %p5837_p11 = scmp.lt.u32.totalorder %s5828_s23, %s6323_s0 }
  0x6a   : > { %p5831_p3 = pnand %p5829_p0, %p6249_p8  ;;  %p5836_p9 = por %p5835_p7, %p5834_p5 }
  0x6c   : > { %p5832_p4 = pneg %p5831_p3  ;;  %p5838_p12 = por %p5837_p11, %p5836_p9 }
  0x6e   : > { %p5839_p10 = pnand %p5838_p12, %p5832_p4 }
  0x70   : > { %5842 = shalt.err (!%p5839_p10)
}
  0x71   : > { %s5843_s1 = scalar_lea.vmem %s6326_s3, 8192  ;;  %s6074_s9 = smov [#allocation12]  }
  0x72   : > { %p5844_p13 = scmp.ne.s32.totalorder %s6326_s3, %s5843_s1  ;;  %s5848_s8 = sshll.u32 %s6074_s9, 4  ;;  %s5849_s8 = int_to_ptr.vmem [resolvable:$false] %s5848_s8 }
  0x73   : > { %s5850_s12 = scalar_lea.vmem %s5849_s8, 16384  ;;  %p5851_p0 = scmp.lt.s32.totalorder %s6326_s3, %s5849_s8 }
  0x74   : > { %p5846_p1 = pnand %p5844_p13, %p6249_p8  ;;  %p5852_p3 = scmp.lt.s32.totalorder %s5850_s12, %s5843_s1 }
  0x76   : > { %p5847_p2 = pneg %p5846_p1  ;;  %p5853_p5 = por %p5852_p3, %p5851_p0 }
  0x78   : > { %p5854_p7 = pnand %p5853_p5, %p5847_p2 }
  0x7a   : > { %5857 = shalt.err (!%p5854_p7)
}
  0x7b   : > { %s7252_s23 = smov 256   ;;  %s7253_s10 = smov 16  }
  0x7c   : > { %5262 = dma.hbm_to_vmem [thread:$0]  (!%p6237_p6), %s6323_s0, 8192, %s6326_s3, %s7251_s16, %s7252_s23, %s7252_s23, %s7253_s10  }
  0x7d   : > { %s7300_s13 = sld [smem:[#allocation41_spill]]  ;;  %s711_s8 = scalar_lea.vmem [#allocation14], %s6315_s30 }
  0x7e   : > { %s718_s12 = sshll.u32 %s711_s8, 4  ;;  %s6366_s21 = sadd.s32 4294967295, %s6068_s29   ;;  %s6363_s12 = int_to_ptr.vmem [resolvable:$true] %s718_s12 }
  0x7f   : > { %7301 = sst [smem:[#allocation27_spill]] %s6366_s21  ;;  %p96_p4 = scmp.ne.s32.totalorder %s6052_s25, %s6048_s24 }
  0x80   : > { %p7255_p9 = scmp.eq.s32.totalorder %s6366_s21, 0  ;;  %p4768_p11 = scmp.ge.s32.totalorder %s6068_s29, 1 }
  0x81   : > { %p523_p12 = scmp.lt.s32.totalorder %s6068_s29, 3  ;;  %s7304_s2 = sld [smem:[#allocation31_spill]] }
  0x82   : > { %p6375_p10 = por %p7255_p9, %p96_p4  ;;  %s578_s8 = scalar_lea.vmem [#allocation8], %s6229_s22 }
  0x83   : > { %s6360_s9 = scalar_lea.hbm %s7300_s13, %s5099_s14  ;;  %p6379_p13 = pnand %p4768_p11, %p523_p12 }
  0x84   : > { %s7302_s3 = scalar_select %p6375_p10, 1, 0 }
  0x85   : > { %s7303_s30 = scalar_select %p6379_p13, 1, 0 }
  0x86   : > { %s6077_s14 = smov [#allocation3]   ;;  %p5243_p1 = pneg %p6379_p13 }
  0x87   : > { %s539_s0 = sshll.u32 %s6077_s14, 4  ;;  %s6391_s1 = scalar_lea.hbm %s7304_s2, %s6222_s20  ;;  %s6385_s0 = int_to_ptr.vmem [resolvable:$true] %s539_s0 }
  0x88   : > { %s585_s16 = sshll.u32 %s578_s8, 4  ;;  %p6396_p2 = pnand %p5243_p1, %p7255_p9  ;;  %s6400_s16 = int_to_ptr.vmem [resolvable:$true] %s585_s16 }
  0x89   : > { %s5858_s14 = scalar_lea.hbm %s6391_s1, 4096  ;;  %s5863_s10 = scalar_lea.hbm %s7304_s2, 8192 }
  0x8a   : > { %s7305_s23 = scalar_select %p6396_p2, 1, 0 }
  0x8b   : > { %p5859_p0 = scmp.ne.s32.totalorder %s6391_s1, %s5858_s14  ;;  %p5864_p7 = scmp.lt.u32.totalorder %s6391_s1, %s7304_s2 }
  0x8c   : > { %p5865_p4 = scmp.lt.u32.totalorder %s5863_s10, %s5858_s14  ;;  %p5867_p12 = scmp.lt.u32.totalorder %s5858_s14, %s6391_s1 }
  0x8d   : > { %p5861_p3 = pnand %p5859_p0, %p6249_p8 }
  0x8e   : > { %p5866_p11 = por %p5865_p4, %p5864_p7 }
  0x8f   : > { %p5862_p5 = pneg %p5861_p3 }
  0x90   : > { %p5868_p1 = por %p5867_p12, %p5866_p11 }
  0x92   : > { %p5869_p9 = pnand %p5868_p1, %p5862_p5 }
  0x94   : > { %5872 = shalt.err (!%p5869_p9)
}
  0x95   : > { %s5873_s8 = scalar_lea.vmem %s6400_s16, 4096  ;;  %s6078_s24 = smov [#allocation8]  }
  0x96   : > { %p5874_p0 = scmp.ne.s32.totalorder %s6400_s16, %s5873_s8  ;;  %s5878_s15 = sshll.u32 %s6078_s24, 4  ;;  %s5879_s15 = int_to_ptr.vmem [resolvable:$false] %s5878_s15 }
  0x97   : > { %s5880_s11 = scalar_lea.vmem %s5879_s15, 8192  ;;  %p5881_p13 = scmp.lt.s32.totalorder %s6400_s16, %s5879_s15 }
  0x98   : > { %p5876_p3 = pnand %p5874_p0, %p6249_p8  ;;  %p5882_p2 = scmp.lt.s32.totalorder %s5880_s11, %s5873_s8 }
  0x9a   : > { %p5877_p10 = pneg %p5876_p3  ;;  %p5883_p7 = por %p5882_p2, %p5881_p13 }
  0x9c   : > { %p5884_p4 = pnand %p5883_p7, %p5877_p10 }
  0x9e   : > { %5887 = shalt.err (!%p5884_p4)
}
  0x9f   : > { %s7306_s28 = smov 8   ;;  %s7307_s10 = smov 128  }
  0xa0   : > { %s7308_s14 = scalar_lea.sflag [#allocation7], %s6218_s19  ;;  %s7309_s26 = sld [smem:[#allocation29_spill]] }
  0xa1   : > { %5253 = dma.hbm_to_vmem [thread:$0]  (!%p6237_p6), %s6391_s1, 4096, %s6400_s16, %s7308_s14, %s7307_s10, %s7307_s10, %s7306_s28  }
  0xa2   : > { %p7311_p10 = scmp.ne.s32.totalorder %s7305_s23, 0 }
  0xa4   : > { %p5890_p13 = pneg %p7311_p10 }
  0xa6   : > { %s7310_s7 = smov %s7309_s26  ;;  %s5888_s29 = scalar_lea.hbm %s7309_s26, 512 }
  0xa7   : > { %p5889_p9 = scmp.ne.s32.totalorder %s7310_s7, %s5888_s29  ;;  %p5895_p11 = scmp.lt.u32.totalorder %s5888_s29, %s7310_s7 }
  0xa9   : > { %p5891_p2 = pnand %p5890_p13, %p5889_p9 }
  0xab   : > { %p5892_p5 = pneg %p5891_p2 }
  0xad   : > { %p5897_p12 = pnand %p5895_p11, %p5892_p5 }
  0xaf   : > { %5900 = shalt.err (!%p5897_p12)
}
  0xb0   : > { %s5901_s16 = scalar_lea.vmem %s6385_s0, 512  ;;  %p5909_p7 = scmp.lt.s32.totalorder %s6385_s0, %s6385_s0 }
  0xb1   : > { %p5902_p1 = scmp.ne.s32.totalorder %s6385_s0, %s5901_s16  ;;  %p5910_p4 = scmp.lt.s32.totalorder %s5901_s16, %s5901_s16 }
  0xb3   : > { %p5904_p0 = pnand %p5902_p1, %p5890_p13  ;;  %p5911_p6 = por %p5910_p4, %p5909_p7 }
  0xb5   : > { %p5905_p3 = pneg %p5904_p0 }
  0xb7   : > { %p5912_p8 = pnand %p5911_p6, %p5905_p3 }
  0xb9   : > { %5915 = shalt.err (!%p5912_p8)
}
  0xba   : > { %s7312_s2 = smov 16   ;;  %s7313_s6 = smov 256  }
  0xbb   : > { %5246 = dma.hbm_to_vmem [thread:$0]  (!%p7311_p10), %s7310_s7, 512, %s6385_s0, [#allocation4], %s7313_s6, %s7313_s6, %s7312_s2  }
  0xbc   : > { %s7314_s4 = sld [smem:[#allocation33_spill]]  ;;  %s620_s23 = scalar_lea.vmem [#allocation11], %s6229_s22 }
  0xbd   : > { %s627_s15 = sshll.u32 %s620_s23, 4  ;;  %p7315_p8 = scmp.ne.s32.totalorder %s7295_s17, 0  ;;  %s6459_s15 = int_to_ptr.vmem [resolvable:$true] %s627_s15 }
  0xc2   : > { %s6456_s24 = scalar_lea.hbm %s7314_s4, %s6222_s20  ;;  %s5921_s16 = scalar_lea.hbm %s7314_s4, 8192 }
  0xc3   : > { %s5916_s8 = scalar_lea.hbm %s6456_s24, 4096  ;;  %p5922_p10 = scmp.lt.u32.totalorder %s6456_s24, %s7314_s4 }
  0xc4   : > { %p5917_p6 = scmp.ne.s32.totalorder %s6456_s24, %s5916_s8  ;;  %p5923_p2 = scmp.lt.u32.totalorder %s5921_s16, %s5916_s8 }
  0xc5   : > { %p5925_p11 = scmp.lt.u32.totalorder %s5916_s8, %s6456_s24 }
  0xc6   : > { %p5919_p9 = pnand %p5917_p6, %p7315_p8  ;;  %p5924_p5 = por %p5923_p2, %p5922_p10 }
  0xc8   : > { %p5920_p13 = pneg %p5919_p9  ;;  %p5926_p12 = por %p5925_p11, %p5924_p5 }
  0xca   : > { %p5927_p1 = pnand %p5926_p12, %p5920_p13 }
  0xcc   : > { %5930 = shalt.err (!%p5927_p1)
}
  0xcd   : > { %s5931_s22 = scalar_lea.vmem %s6459_s15, 4096  ;;  %s6079_s6 = smov [#allocation11]  }
  0xce   : > { %p5932_p0 = scmp.ne.s32.totalorder %s6459_s15, %s5931_s22  ;;  %s5936_s26 = sshll.u32 %s6079_s6, 4  ;;  %s5937_s26 = int_to_ptr.vmem [resolvable:$false] %s5936_s26 }
  0xcf   : > { %s5938_s29 = scalar_lea.vmem %s5937_s26, 8192  ;;  %p5939_p4 = scmp.lt.s32.totalorder %s6459_s15, %s5937_s26 }
  0xd0   : > { %p5934_p3 = pnand %p5932_p0, %p7315_p8  ;;  %p5940_p6 = scmp.lt.s32.totalorder %s5938_s29, %s5931_s22 }
  0xd2   : > { %p5935_p7 = pneg %p5934_p3  ;;  %p5941_p9 = por %p5940_p6, %p5939_p4 }
  0xd4   : > { %p5942_p10 = pnand %p5941_p9, %p5935_p7 }
  0xd6   : > { %5945 = shalt.err (!%p5942_p10)
}
  0xd7   : > { %p7316_p13 = scmp.ne.s32.totalorder %s7294_s18, 0  ;;  %s7317_s1 = scalar_lea.sflag [#allocation10], %s6218_s19 }
  0xd8   : > { %s5946_s14 = scalar_lea.hbm %s6360_s9, 8192  ;;  %s5951_s11 = scalar_lea.hbm %s7300_s13, 16384 }
  0xd9   : > { %5259 = dma.hbm_to_vmem [thread:$0]  (!%p7316_p13), %s6456_s24, 4096, %s6459_s15, %s7317_s1, %s7307_s10, %s7307_s10, %s7306_s28  }
  0xda   : > { %p5947_p2 = scmp.ne.s32.totalorder %s6360_s9, %s5946_s14  ;;  %p5952_p12 = scmp.lt.u32.totalorder %s6360_s9, %s7300_s13 }
  0xdb   : > { %p5953_p1 = scmp.lt.u32.totalorder %s5951_s11, %s5946_s14  ;;  %p5955_p3 = scmp.lt.u32.totalorder %s5946_s14, %s6360_s9 }
  0xdc   : > { %p5949_p5 = pnand %p5947_p2, %p7315_p8 }
  0xdd   : > { %p5954_p0 = por %p5953_p1, %p5952_p12 }
  0xde   : > { %p5950_p11 = pneg %p5949_p5 }
  0xdf   : > { %p5956_p7 = por %p5955_p3, %p5954_p0 }
  0xe1   : > { %p5957_p4 = pnand %p5956_p7, %p5950_p11 }
  0xe3   : > { %5960 = shalt.err (!%p5957_p4)
}
  0xe4   : > { %s5961_s24 = scalar_lea.vmem %s6363_s12, 8192  ;;  %s6080_s15 = smov [#allocation14]  }
  0xe5   : > { %p5962_p6 = scmp.ne.s32.totalorder %s6363_s12, %s5961_s24  ;;  %s5966_s2 = sshll.u32 %s6080_s15, 4  ;;  %s5967_s2 = int_to_ptr.vmem [resolvable:$false] %s5966_s2 }
  0xe6   : > { %s5968_s20 = scalar_lea.vmem %s5967_s2, 16384  ;;  %p5969_p2 = scmp.lt.s32.totalorder %s6363_s12, %s5967_s2 }
  0xe7   : > { %p5964_p9 = pnand %p5962_p6, %p7315_p8  ;;  %p5970_p5 = scmp.lt.s32.totalorder %s5968_s20, %s5961_s24 }
  0xe9   : > { %p5965_p10 = pneg %p5964_p9  ;;  %p5971_p12 = por %p5970_p5, %p5969_p2 }
  0xeb   : > { %p5972_p1 = pnand %p5971_p12, %p5965_p10 }
  0xed   : > { %5975 = shalt.err (!%p5972_p1)
}
  0xee   : > { %s7318_s22 = scalar_lea.sflag [#allocation13], %s6218_s19  ;;  %p7319_p8 = scmp.ne.s32.totalorder %s7303_s30, 0 }
  0xef   : > { %5265 = dma.hbm_to_vmem [thread:$0]  (!%p7316_p13), %s6360_s9, 8192, %s6363_s12, %s7318_s22, %s7307_s10, %s7307_s10, %s7306_s28  }
  0xf0   : > { %751 = sbr.rel (%p7319_p8) target bundleno = 6604 (0x19cc), region = 88 }
  0xf7   : > { %p7320_p11 = scmp.eq.s32.totalorder %s6366_s21, 0 }
  0xf9   : > { %6027 = dma.done.wait (%p7320_p11), [#allocation4], 512   ;;  %p7321_p0 = pmov %p7320_p11 }
  0xfa   : > { %s757_s18 = sand.u32 1, %s6366_s21   ;;  %s759_s17 = sand.u32 1, %s6052_s25  }
  0xfb   : > { %6029 = vsyncadd (%p7321_p0), [#allocation4], 4294966784  ;;  %s4791_s6 = sshll.u32 %s759_s17, 8  ;;  %s758_s26 = scalar_lea.sflag [#allocation7], %s757_s18 }
  0xfc   : > { %s6521_s19 = scalar_lea.vmem [#allocation6], %s4791_s6  ;;  %p7322_p3 = scmp.ne.s32.totalorder %s7302_s3, 0 }
  0xfe   : > { %6031 = dma.done.wait (%p7322_p3), %s758_s26, 8192  }
  0xff   : > { %6033 = vsyncadd (%p7322_p3), %s758_s26, 4294959104  ;;  %s6527_s9 = scalar_lea.vmem [#allocation8], %s4791_s6  ;;  %s776_s12 = scalar_lea.sflag [#allocation10], %s757_s18 }
 0x100   : > { %s6529_s30 = scalar_lea.vmem [#allocation9], %s4791_s6 }
 0x101   : > { %6035 = dma.done.wait (%p7322_p3), %s776_s12, 8192  }
 0x102   : > { %6037 = vsyncadd (%p7322_p3), %s776_s12, 4294959104  ;;  %s4795_s28 = sshll.u32 %s759_s17, 9  ;;  %s6535_s10 = scalar_lea.vmem [#allocation11], %s4791_s6 }
 0x103   : > { %s794_s29 = scalar_lea.sflag [#allocation13], %s757_s18  ;;  %s6537_s1 = scalar_lea.vmem [#allocation12], %s4795_s28 }
 0x104   : > { %7323 = sst [smem:[#allocation28_spill]] %s6537_s1 }
 0x105   : > { %6039 = dma.done.wait (%p7322_p3), %s794_s29, 16384  }
 0x106   : > { %6041 = vsyncadd (%p7322_p3), %s794_s29, 4294950912  ;;  %p918_p13 = scmp.lt.s32.totalorder %s6060_s27, 1  ;;  %s7324_s15 = sld [smem:[#allocation34_spill]] }
 0x107   : > { %s7328_s11 = sld [smem:[#allocation38_spill]]  ;;  %s7329_s16 = sld [smem:[#allocation40_spill]] }
 0x108   : > { %s919_s14 = scalar_select %p918_p13, %s6060_s27, 1 }
 0x109   : > { %s7330_s22 = sld [smem:[#allocation42_spill]]  ;;  %s7331_s26 = sld [smem:[#allocation43_spill]] }
 0x10a   : > { %s6545_s23 = sshll.u32 %s919_s14, 1  ;;  %s4803_s8 = sshll.u32 %s919_s14, 2 }
 0x10b   : > { %s7332_s7 = sld [smem:[#allocation44_spill]]  ;;  %s6588_s14 = scalar_lea.vmem [#allocation14], %s4795_s28 }
 0x10c   : > { %s925_s2 = scalar_lea.vmem %s7324_s15, %s6545_s23  ;;  %p4807_p7 = scmp.ne.s32.totalorder %s6060_s27, 0 }
 0x10d   : > { %s941_s0 = scalar_lea.vmem %s7328_s11, %s6545_s23  ;;  %s6574_s24 = scalar_lea.vmem %s7329_s16, %s4803_s8  ;;  %v963_v0 = vld [vmem:[#allocation3] sm:$0xff] (!%p4807_p7)  ;;  %v964_v1 = vld [vmem:[#allocation3 + $0x8] sm:$0xff] (!%p4807_p7)  ;;  %v965_v2 = vld [vmem:[#allocation3 + $0x10] sm:$0xff] (!%p4807_p7) }
 0x10e   : > { %962 = sbr.rel (%p4807_p7) target bundleno = 277 (0x115), region = 120  ;;  %967 = vst [vmem:[#allocation2] sm:$0xff] (!%p4807_p7), %v963_v0  ;;  %968 = vst [vmem:[#allocation2 + $0x8] sm:$0xff] (!%p4807_p7), %v964_v1  ;;  %v966_v3 = vld [vmem:[#allocation3 + $0x18] sm:$0xff] (!%p4807_p7) }
 0x10f   : > { %s949_s18 = scalar_lea.vmem %s7330_s22, %s6545_s23  ;;  %s953_s12 = scalar_lea.vmem %s7331_s26, %s6545_s23  ;;  %969 = vst [vmem:[#allocation2 + $0x10] sm:$0xff] (!%p4807_p7), %v965_v2  ;;  %970 = vst [vmem:[#allocation2 + $0x18] sm:$0xff] (!%p4807_p7), %v966_v3 }
 0x111   : > { %s957_s13 = scalar_lea.vmem %s7332_s7, %s6545_s23 }
 0x115 PF: > { %v5340_v4 = vld [vmem:[%s6521_s19 + $0x4] ss:$8 sps:$4 sm:$0xff]   ;;  %v5342_v5 = vld [vmem:[%s6521_s19] ss:$8 sps:$4 sm:$0xff]   ;;  %v5343_v6 = vld [vmem:[%s6521_s19 + $0x14] ss:$8 sps:$4 sm:$0xff]  }
 0x116   : > { %1181 = vmatprep.subr.bf16.mxu0 %v5340_v4  ;;  %v5345_v7 = vld [vmem:[%s6521_s19 + $0x10] ss:$8 sps:$4 sm:$0xff]   ;;  %v5346_v8 = vld [vmem:[%s6521_s19 + $0x24] ss:$8 sps:$4 sm:$0xff]   ;;  %v5348_v9 = vld [vmem:[%s6521_s19 + $0x20] ss:$8 sps:$4 sm:$0xff]  }
 0x117   : > { %1182 = vmatpush1.bf16.msra.mxu0 %v5342_v5  ;;  %v5349_v10 = vld [vmem:[%s6521_s19 + $0x34] ss:$8 sps:$4 sm:$0xff]   ;;  %v5351_v11 = vld [vmem:[%s6521_s19 + $0x30] ss:$8 sps:$4 sm:$0xff]   ;;  %v5352_v12 = vld [vmem:[%s6521_s19 + $0x44] ss:$8 sps:$4 sm:$0xff]  }
 0x118   : > { %1183 = vmatprep.subr.bf16.mxu0 %v5343_v6  ;;  %v5354_v13 = vld [vmem:[%s6521_s19 + $0x40] ss:$8 sps:$4 sm:$0xff]   ;;  %v5355_v14 = vld [vmem:[%s6521_s19 + $0x54] ss:$8 sps:$4 sm:$0xff]   ;;  %v5357_v15 = vld [vmem:[%s6521_s19 + $0x50] ss:$8 sps:$4 sm:$0xff]  }
 0x119   : > { %v5358_v16 = vld [vmem:[%s6521_s19 + $0x64] ss:$8 sps:$4 sm:$0xff]   ;;  %v974_v18 = vld [vmem:[#allocation2 + $0x18] sm:$0xff]  ;;  %v5360_v20 = vld [vmem:[%s6521_s19 + $0x60] ss:$8 sps:$4 sm:$0xff]   ;;  %vm6082_vm0 = vmmov 0  }
 0x11a   : > { %v972_v17 = vld [vmem:[#allocation2 + $0x8] sm:$0xff]  ;;  %v5361_v21 = vld [vmem:[%s6521_s19 + $0x74] ss:$8 sps:$4 sm:$0xff]   ;;  %v5363_v22 = vld [vmem:[%s6521_s19 + $0x70] ss:$8 sps:$4 sm:$0xff]   ;;  %vm1723_vm1 = vcmask 523264  }
 0x11b   : > { %1184 = vmatpush1.bf16.msra.mxu0 %v5345_v7  ;;  %v6604_v19 = vpack.c.bf16 %v974_v18, %v972_v17  ;;  %v5364_v23 = vld [vmem:[%s6521_s19 + $0x84] ss:$8 sps:$4 sm:$0xff]   ;;  %v5366_v24 = vld [vmem:[%s6521_s19 + $0x80] ss:$8 sps:$4 sm:$0xff]   ;;  %v5367_v25 = vld [vmem:[%s6521_s19 + $0x94] ss:$8 sps:$4 sm:$0xff]  }
 0x11c   : > { %1185 = vmatprep.subr.bf16.mxu0 %v5346_v8  ;;  %v5369_v26 = vld [vmem:[%s6521_s19 + $0x90] ss:$8 sps:$4 sm:$0xff]   ;;  %v5370_v27 = vld [vmem:[%s6521_s19 + $0xa4] ss:$8 sps:$4 sm:$0xff]   ;;  %v5372_v28 = vld [vmem:[%s6521_s19 + $0xa0] ss:$8 sps:$4 sm:$0xff]  }
 0x11d   : > { %1213 = vmatprep.mubr.bf16.mxu0 %v6604_v19  ;;  %v5373_v29 = vld [vmem:[%s6521_s19 + $0xb4] ss:$8 sps:$4 sm:$0xff]   ;;  %v5375_v30 = vld [vmem:[%s6521_s19 + $0xb0] ss:$8 sps:$4 sm:$0xff]   ;;  %v5376_v31 = vld [vmem:[%s6521_s19 + $0xc4] ss:$8 sps:$4 sm:$0xff]  }
 0x11e   : > { %v5378_v32 = vld [vmem:[%s6521_s19 + $0xc0] ss:$8 sps:$4 sm:$0xff]   ;;  %v5379_v33 = vld [vmem:[%s6521_s19 + $0xd4] ss:$8 sps:$4 sm:$0xff]   ;;  %v5381_v34 = vld [vmem:[%s6521_s19 + $0xd0] ss:$8 sps:$4 sm:$0xff]  }
 0x11f   : > { %1186 = vmatpush1.bf16.msra.mxu0 %v5348_v9  ;;  %v5382_v35 = vld [vmem:[%s6521_s19 + $0xe4] ss:$8 sps:$4 sm:$0xff]   ;;  %v5384_v36 = vld [vmem:[%s6521_s19 + $0xe0] ss:$8 sps:$4 sm:$0xff]   ;;  %v5385_v37 = vld [vmem:[%s6521_s19 + $0xf4] ss:$8 sps:$4 sm:$0xff]  }
 0x120   : > { %1187 = vmatprep.subr.bf16.mxu0 %v5349_v10  ;;  %v5387_v38 = vld [vmem:[%s6521_s19 + $0xf0] ss:$8 sps:$4 sm:$0xff]   ;;  %v971_v39 = vld [vmem:[#allocation2] sm:$0xff]  ;;  %v5393_v44 = vld [vmem:[%s6527_s9 + $0x14] ss:$8 sps:$4 sm:$0xff]   ;;  %v6081_v10 = vmov 0.0   ;;  %s7333_s19 = scalar_lea.vmem %s7227_s5, %s6545_s23 }
 0x121   : > { %v973_v40 = vld [vmem:[#allocation2 + $0x10] sm:$0xff]  ;;  %v5390_v41 = vld [vmem:[%s6527_s9 + $0x4] ss:$8 sps:$4 sm:$0xff]   ;;  %v5388_v42 = vld [vmem:[%s6527_s9] ss:$8 sps:$4 sm:$0xff]   ;;  %5135 = vmatprep.subr.mxu1 %v6081_v10  ;;  %5137 = vmatprep.mubr.msk.f32.mxu1 %vm6082_vm0, %v6081_v10  ;;  %s6083_s8 = smov 64  }
 0x122   : > { %v6628_v43 = vpack.c.bf16 %v973_v40, %v971_v39  ;;  %v5391_v45 = vld [vmem:[%s6527_s9 + $0x10] ss:$8 sps:$4 sm:$0xff]   ;;  %v5396_v46 = vld [vmem:[%s6527_s9 + $0x24] ss:$8 sps:$4 sm:$0xff]   ;;  %v5394_v47 = vld [vmem:[%s6527_s9 + $0x20] ss:$8 sps:$4 sm:$0xff]  }
 0x123   : > { %1188 = vmatpush1.bf16.msra.mxu0 %v5351_v11  ;;  %v5399_v48 = vld [vmem:[%s6527_s9 + $0x34] ss:$8 sps:$4 sm:$0xff]   ;;  %v5397_v49 = vld [vmem:[%s6527_s9 + $0x30] ss:$8 sps:$4 sm:$0xff]   ;;  %v5402_v50 = vld [vmem:[%s6527_s9 + $0x44] ss:$8 sps:$4 sm:$0xff]   ;;  %v1011_v11 = vlaneseq }
 0x124   : > { %1189 = vmatprep.subr.bf16.mxu0 %v5352_v12  ;;  %v5400_v51 = vld [vmem:[%s6527_s9 + $0x40] ss:$8 sps:$4 sm:$0xff]   ;;  %v5405_v52 = vld [vmem:[%s6527_s9 + $0x54] ss:$8 sps:$4 sm:$0xff]   ;;  %v5403_v53 = vld [vmem:[%s6527_s9 + $0x50] ss:$8 sps:$4 sm:$0xff]  }
 0x125   : > { %v5408_v54 = vld [vmem:[%s6527_s9 + $0x64] ss:$8 sps:$4 sm:$0xff]   ;;  %v5406_v55 = vld [vmem:[%s6527_s9 + $0x60] ss:$8 sps:$4 sm:$0xff]   ;;  %v5411_v56 = vld [vmem:[%s6527_s9 + $0x74] ss:$8 sps:$4 sm:$0xff]  }
 0x126   : > { %v5409_v57 = vld [vmem:[%s6527_s9 + $0x70] ss:$8 sps:$4 sm:$0xff]   ;;  %v5414_v58 = vld [vmem:[%s6527_s9 + $0x84] ss:$8 sps:$4 sm:$0xff]   ;;  %v5412_v59 = vld [vmem:[%s6527_s9 + $0x80] ss:$8 sps:$4 sm:$0xff]  }
 0x127   : > { %1190 = vmatpush1.bf16.msra.mxu0 %v5354_v13  ;;  %v5417_v60 = vld [vmem:[%s6527_s9 + $0x94] ss:$8 sps:$4 sm:$0xff]   ;;  %v5415_v61 = vld [vmem:[%s6527_s9 + $0x90] ss:$8 sps:$4 sm:$0xff]   ;;  %v5420_v62 = vld [vmem:[%s6527_s9 + $0xa4] ss:$8 sps:$4 sm:$0xff]  }
 0x128   : > { %1191 = vmatprep.subr.bf16.mxu0 %v5355_v14  ;;  %v5418_v63 = vld [vmem:[%s6527_s9 + $0xa0] ss:$8 sps:$4 sm:$0xff]   ;;  %v5423_v0 = vld [vmem:[%s6527_s9 + $0xb4] ss:$8 sps:$4 sm:$0xff]   ;;  %v5421_v1 = vld [vmem:[%s6527_s9 + $0xb0] ss:$8 sps:$4 sm:$0xff]  }
 0x129   : > { %v5426_v2 = vld [vmem:[%s6527_s9 + $0xc4] ss:$8 sps:$4 sm:$0xff]   ;;  %v5424_v3 = vld [vmem:[%s6527_s9 + $0xc0] ss:$8 sps:$4 sm:$0xff]   ;;  %v5429_v4 = vld [vmem:[%s6527_s9 + $0xd4] ss:$8 sps:$4 sm:$0xff]  }
 0x12a   : > { %v5427_v5 = vld [vmem:[%s6527_s9 + $0xd0] ss:$8 sps:$4 sm:$0xff]   ;;  %v5432_v6 = vld [vmem:[%s6527_s9 + $0xe4] ss:$8 sps:$4 sm:$0xff]   ;;  %v5430_v7 = vld [vmem:[%s6527_s9 + $0xe0] ss:$8 sps:$4 sm:$0xff]  }
 0x12b   : > { %1192 = vmatpush1.bf16.msra.mxu0 %v5357_v15  ;;  %v5435_v8 = vld [vmem:[%s6527_s9 + $0xf4] ss:$8 sps:$4 sm:$0xff]   ;;  %v5433_v9 = vld [vmem:[%s6527_s9 + $0xf0] ss:$8 sps:$4 sm:$0xff]   ;;  %v6668_v12 = vshrl.u32 %v1011_v11, 7  ;;  %vm1801_vm3 = vcmask 64512  }
 0x12c   : > { %1193 = vmatprep.subr.bf16.mxu0 %v5358_v16  ;;  %v1009_v14 = vld [vmem:[%s7333_s19] sm:$0x3]  ;;  %v5439_v39 = vld [vmem:[%s6529_s30 + $0x10] ss:$8 sps:$4 sm:$0xff]   ;;  %v5444_v40 = vld [vmem:[%s6529_s30 + $0x24] ss:$8 sps:$4 sm:$0xff]  }
 0x12d   : > { %v6671_v13 = vsub.s32 0, %v6668_v12  ;;  %v6679_v15 = vsub.s32 1, %v6668_v12  ;;  %s7339_s11 = sld [smem:[#allocation36_spill]]  ;;  %s7341_s15 = sld [smem:[#allocation28_spill]] }
 0x12e   : > { %s7342_s6 = sld [smem:[#allocation37_spill]]  ;;  %p5088_p4 = scmp.ne.s32.totalorder %s6060_s27, 1 }
 0x12f   : > { %1194 = vmatpush1.bf16.msra.mxu0 %v5360_v20  ;;  %v1014_v16 = vrot.slane %v1009_v14, %v6671_v13 }
 0x130   : > { %1195 = vmatprep.subr.bf16.mxu0 %v5361_v21 }
 0x133   : > { %1196 = vmatpush1.bf16.msra.mxu0 %v5363_v22  ;;  %s7340_s16 = scalar_lea.vmem %s7339_s11, %s6545_s23 }
 0x134   : > { %1197 = vmatprep.subr.bf16.mxu0 %v5364_v23  ;;  %s7343_s26 = scalar_lea.vmem %s7342_s6, %s6545_s23 }
 0x137   : > { %1198 = vmatpush1.bf16.msra.mxu0 %v5366_v24  ;;  %v1256_v24 = vld [vmem:[%s925_s2] sm:$0x3]  ;;  %s7337_s2 = sld [smem:[#allocation35_spill]] }
 0x138   : > { %1199 = vmatprep.subr.bf16.mxu0 %v5367_v25  ;;  %v1261_v25 = vrot.slane %v1256_v24, %v6671_v13 }
 0x13b   : > { %1200 = vmatpush1.bf16.msra.mxu0 %v5369_v26  ;;  %v1265_v26 = vrot.slane %v1256_v24, %v6679_v15 }
 0x13c   : > { %1201 = vmatprep.subr.bf16.mxu0 %v5370_v27 }
 0x13d   : > { %s7338_s17 = scalar_lea.vmem %s7337_s2, %s6545_s23 }
 0x13f   : > { %1202 = vmatpush1.bf16.msra.mxu0 %v5372_v28 }
 0x140   : > { %1203 = vmatprep.subr.bf16.mxu0 %v5373_v29 }
 0x143   : > { %1204 = vmatpush1.bf16.msra.mxu0 %v5375_v30 }
 0x144   : > { %1205 = vmatprep.subr.bf16.mxu0 %v5376_v31 }
 0x147   : > { %1206 = vmatpush1.bf16.msra.mxu0 %v5378_v32 }
 0x148   : > { %1207 = vmatprep.subr.bf16.mxu0 %v5379_v33 }
 0x14b   : > { %1208 = vmatpush1.bf16.msra.mxu0 %v5381_v34 }
 0x14c   : > { %1209 = vmatprep.subr.bf16.mxu0 %v5382_v35 }
 0x14f   : > { %1210 = vmatpush1.bf16.msra.mxu0 %v5384_v36  ;;  %v5436_v36 = vld [vmem:[%s6529_s30] ss:$8 sps:$4 sm:$0xff]  }
 0x150   : > { %1211 = vmatprep.subr.bf16.mxu0 %v5385_v37  ;;  %v5438_v37 = vld [vmem:[%s6529_s30 + $0x4] ss:$8 sps:$4 sm:$0xff]  }
 0x153   : > { %1212 = vmatpush1.bf16.msra.mxu0 %v5387_v38  ;;  %v5441_v38 = vld [vmem:[%s6529_s30 + $0x14] ss:$8 sps:$4 sm:$0xff]  }
 0x154   : > { %1428 = vmatprep.subr.bf16.mxu0 %v5390_v41  ;;  %v5442_v41 = vld [vmem:[%s6529_s30 + $0x20] ss:$8 sps:$4 sm:$0xff]  }
 0x156   : > { %1214 = vmatmul.mubr.bf16.vlgmr.msra.gmra.mrb[0].mxu0 %v6628_v43 }
 0x157   : > { %1429 = vmatpush1.bf16.msra.mxu0 %v5388_v42  ;;  %1460 = vmatprep.mubr.bf16.mxu0 %v6604_v19  ;;  %v5447_v42 = vld [vmem:[%s6529_s30 + $0x34] ss:$8 sps:$4 sm:$0xff]  }
 0x158   : > { %1430 = vmatprep.subr.bf16.mxu0 %v5393_v44  ;;  %v5445_v44 = vld [vmem:[%s6529_s30 + $0x30] ss:$8 sps:$4 sm:$0xff]  }
 0x15b   : > { %1431 = vmatpush1.bf16.msra.mxu0 %v5391_v45  ;;  %v5450_v45 = vld [vmem:[%s6529_s30 + $0x44] ss:$8 sps:$4 sm:$0xff]  }
 0x15c   : > { %1432 = vmatprep.subr.bf16.mxu0 %v5396_v46  ;;  %v5448_v46 = vld [vmem:[%s6529_s30 + $0x40] ss:$8 sps:$4 sm:$0xff]  }
 0x15f   : > { %1433 = vmatpush1.bf16.msra.mxu0 %v5394_v47  ;;  %v5453_v47 = vld [vmem:[%s6529_s30 + $0x54] ss:$8 sps:$4 sm:$0xff]  }
 0x160   : > { %1434 = vmatprep.subr.bf16.mxu0 %v5399_v48  ;;  %v5451_v48 = vld [vmem:[%s6529_s30 + $0x50] ss:$8 sps:$4 sm:$0xff]  }
 0x163   : > { %1435 = vmatpush1.bf16.msra.mxu0 %v5397_v49  ;;  %v5456_v49 = vld [vmem:[%s6529_s30 + $0x64] ss:$8 sps:$4 sm:$0xff]  }
 0x164   : > { %1436 = vmatprep.subr.bf16.mxu0 %v5402_v50  ;;  %v5454_v50 = vld [vmem:[%s6529_s30 + $0x60] ss:$8 sps:$4 sm:$0xff]  }
 0x167   : > { %1437 = vmatpush1.bf16.msra.mxu0 %v5400_v51  ;;  %v5459_v51 = vld [vmem:[%s6529_s30 + $0x74] ss:$8 sps:$4 sm:$0xff]  }
 0x168   : > { %1438 = vmatprep.subr.bf16.mxu0 %v5405_v52  ;;  %v5457_v52 = vld [vmem:[%s6529_s30 + $0x70] ss:$8 sps:$4 sm:$0xff]  }
 0x16b   : > { %1439 = vmatpush1.bf16.msra.mxu0 %v5403_v53  ;;  %v5462_v53 = vld [vmem:[%s6529_s30 + $0x84] ss:$8 sps:$4 sm:$0xff]  }
 0x16c   : > { %1440 = vmatprep.subr.bf16.mxu0 %v5408_v54  ;;  %v5460_v54 = vld [vmem:[%s6529_s30 + $0x80] ss:$8 sps:$4 sm:$0xff]  }
 0x16f   : > { %1441 = vmatpush1.bf16.msra.mxu0 %v5406_v55  ;;  %v5465_v55 = vld [vmem:[%s6529_s30 + $0x94] ss:$8 sps:$4 sm:$0xff]  }
 0x170   : > { %1442 = vmatprep.subr.bf16.mxu0 %v5411_v56  ;;  %v5463_v56 = vld [vmem:[%s6529_s30 + $0x90] ss:$8 sps:$4 sm:$0xff]  }
 0x173   : > { %1443 = vmatpush1.bf16.msra.mxu0 %v5409_v57  ;;  %v5468_v57 = vld [vmem:[%s6529_s30 + $0xa4] ss:$8 sps:$4 sm:$0xff]  }
 0x174   : > { %1444 = vmatprep.subr.bf16.mxu0 %v5414_v58  ;;  %v5466_v58 = vld [vmem:[%s6529_s30 + $0xa0] ss:$8 sps:$4 sm:$0xff]  }
 0x177   : > { %1445 = vmatpush1.bf16.msra.mxu0 %v5412_v59  ;;  %v5471_v59 = vld [vmem:[%s6529_s30 + $0xb4] ss:$8 sps:$4 sm:$0xff]  }
 0x178   : > { %1446 = vmatprep.subr.bf16.mxu0 %v5417_v60  ;;  %v5469_v60 = vld [vmem:[%s6529_s30 + $0xb0] ss:$8 sps:$4 sm:$0xff]  }
 0x17b   : > { %1447 = vmatpush1.bf16.msra.mxu0 %v5415_v61  ;;  %v5474_v61 = vld [vmem:[%s6529_s30 + $0xc4] ss:$8 sps:$4 sm:$0xff]  }
 0x17c   : > { %1448 = vmatprep.subr.bf16.mxu0 %v5420_v62  ;;  %v5472_v62 = vld [vmem:[%s6529_s30 + $0xc0] ss:$8 sps:$4 sm:$0xff]  }
 0x17f   : > { %1449 = vmatpush1.bf16.msra.mxu0 %v5418_v63  ;;  %v5477_v63 = vld [vmem:[%s6529_s30 + $0xd4] ss:$8 sps:$4 sm:$0xff]  }
 0x180   : > { %1450 = vmatprep.subr.bf16.mxu0 %v5423_v0  ;;  %v5475_v0 = vld [vmem:[%s6529_s30 + $0xd0] ss:$8 sps:$4 sm:$0xff]  }
 0x183   : > { %1451 = vmatpush1.bf16.msra.mxu0 %v5421_v1  ;;  %v5480_v1 = vld [vmem:[%s6529_s30 + $0xe4] ss:$8 sps:$4 sm:$0xff]  }
 0x184   : > { %1452 = vmatprep.subr.bf16.mxu0 %v5426_v2  ;;  %v5478_v2 = vld [vmem:[%s6529_s30 + $0xe0] ss:$8 sps:$4 sm:$0xff]  }
 0x187   : > { %1453 = vmatpush1.bf16.msra.mxu0 %v5424_v3  ;;  %v5483_v3 = vld [vmem:[%s6529_s30 + $0xf4] ss:$8 sps:$4 sm:$0xff]  }
 0x188   : > { %1454 = vmatprep.subr.bf16.mxu0 %v5429_v4  ;;  %v5481_v4 = vld [vmem:[%s6529_s30 + $0xf0] ss:$8 sps:$4 sm:$0xff]  }
 0x18b   : > { %1455 = vmatpush1.bf16.msra.mxu0 %v5427_v5  ;;  %v1721_v5 = vand.u32 127, %v1011_v11 }
 0x18c   : > { %1456 = vmatprep.subr.bf16.mxu0 %v5432_v6 }
 0x18d   : > { %vm6747_vm2 = vcmp.le.s32.totalorder %v1721_v5, %v6668_v12 }
 0x18f   : > { %1457 = vmatpush1.bf16.msra.mxu0 %v5430_v7 }
 0x190   : > { %1458 = vmatprep.subr.bf16.mxu0 %v5435_v8 }
 0x193   : > { %1459 = vmatpush1.bf16.msra.mxu0 %v5433_v9 }
 0x194   : > { %1675 = vmatprep.subr.bf16.mxu0 %v5438_v37 }
 0x196   : > { %1461 = vmatmul.mubr.bf16.vlgmr.msra.gmra.mrb[4].mxu0 %v6628_v43 }
 0x197   : > { %1707 = vmatprep.mubr.bf16.mxu0 %v6604_v19  ;;  %v6685_v19 = vrot.slane %v1009_v14, %v6679_v15  ;;  %1676 = vmatpush1.bf16.msra.mxu0 %v5436_v36 }
 0x198   : > { %1677 = vmatprep.subr.bf16.mxu0 %v5441_v38 }
 0x19b   : > { %1678 = vmatpush1.bf16.msra.mxu0 %v5439_v39 }
 0x19c   : > { %1679 = vmatprep.subr.bf16.mxu0 %v5444_v40 }
 0x19f   : > { %1680 = vmatpush1.bf16.msra.mxu0 %v5442_v41 }
 0x1a0   : > { %1681 = vmatprep.subr.bf16.mxu0 %v5447_v42 }
 0x1a3   : > { %1682 = vmatpush1.bf16.msra.mxu0 %v5445_v44 }
 0x1a4   : > { %1683 = vmatprep.subr.bf16.mxu0 %v5450_v45 }
 0x1a7   : > { %1684 = vmatpush1.bf16.msra.mxu0 %v5448_v46 }
 0x1a8   : > { %1685 = vmatprep.subr.bf16.mxu0 %v5453_v47 }
 0x1ab   : > { %1686 = vmatpush1.bf16.msra.mxu0 %v5451_v48 }
 0x1ac   : > { %1687 = vmatprep.subr.bf16.mxu0 %v5456_v49 }
 0x1af   : > { %1688 = vmatpush1.bf16.msra.mxu0 %v5454_v50 }
 0x1b0   : > { %1689 = vmatprep.subr.bf16.mxu0 %v5459_v51 }
 0x1b3   : > { %1690 = vmatpush1.bf16.msra.mxu0 %v5457_v52 }
 0x1b4   : > { %1691 = vmatprep.subr.bf16.mxu0 %v5462_v53 }
 0x1b7   : > { %1692 = vmatpush1.bf16.msra.mxu0 %v5460_v54 }
 0x1b8   : > { %1693 = vmatprep.subr.bf16.mxu0 %v5465_v55 }
 0x1bb   : > { %1694 = vmatpush1.bf16.msra.mxu0 %v5463_v56 }
 0x1bc   : > { %1695 = vmatprep.subr.bf16.mxu0 %v5468_v57 }
 0x1bf   : > { %1696 = vmatpush1.bf16.msra.mxu0 %v5466_v58 }
 0x1c0   : > { %1697 = vmatprep.subr.bf16.mxu0 %v5471_v59 }
 0x1c3   : > { %1698 = vmatpush1.bf16.msra.mxu0 %v5469_v60 }
 0x1c4   : > { %1699 = vmatprep.subr.bf16.mxu0 %v5474_v61 }
 0x1c7   : > { %1700 = vmatpush1.bf16.msra.mxu0 %v5472_v62 }
 0x1c8   : > { %1701 = vmatprep.subr.bf16.mxu0 %v5477_v63 }
 0x1cb   : > { %1702 = vmatpush1.bf16.msra.mxu0 %v5475_v0 }
 0x1cc   : > { %1703 = vmatprep.subr.bf16.mxu0 %v5480_v1 }
 0x1cf   : > { %1704 = vmatpush1.bf16.msra.mxu0 %v5478_v2 }
 0x1d0   : > { %1705 = vmatprep.subr.bf16.mxu0 %v5483_v3 }
 0x1d3   : > { %1706 = vmatpush1.bf16.msra.mxu0 %v5481_v4 }
 0x1d6   : > { %1708 = vmatmul.mubr.bf16.vlgmr.msra.gmra.mrb[8].mxu0 %v6628_v43 }
 0x229   : > { %v1215_v17 = vpop.f32.mrb[0].mxu0 }
 0x22a   : > { %v6682_v18 = vpop.f32.mrb[1].mxu0  ;;  %v1216_v34 = vadd.f32 %v1215_v17, %v1014_v16 }
 0x22b   : > { %v1219_v20 = vpop.f32.mrb[2].mxu0  ;;  %v1218_v58 = vadd.f32 %v6682_v18, %v6685_v19 }
 0x22c   : > { %v6687_v21 = vadd.f32 %v1219_v20, %v1014_v16  ;;  %v1221_v22 = vpop.f32.mrb[3].mxu0 }
 0x22d   : > { %v6690_v23 = vadd.f32 %v1221_v22, %v6685_v19  ;;  %v1503_v22 = vld [vmem:[%s7338_s17] sm:$0x3] }
 0x269   : > { %v1462_v27 = vpop.f32.mrb[4].mxu0 }
 0x26a   : > { %v1463_v28 = vadd.f32 %v1462_v27, %v1261_v25  ;;  %v1464_v29 = vpop.f32.mrb[5].mxu0  ;;  %v1512_v27 = vrot.slane %v1503_v22, %v6679_v15 }
 0x26b   : > { %v6699_v30 = vadd.f32 %v1464_v29, %v1265_v26  ;;  %v1466_v31 = vpop.f32.mrb[6].mxu0 }
 0x26c   : > { %v6701_v32 = vadd.f32 %v1466_v31, %v1261_v25  ;;  %v1468_v33 = vpop.f32.mrb[7].mxu0  ;;  %1888 = vrot.lane.b32.xlu1 %v1463_v28, %s6083_s8  ;;  %5136 = vmatpush3.xpose.msk.msra.mxu1 %vm1723_vm1, %v1463_v28  ;;  %v1508_v25 = vrot.slane %v1503_v22, %v6671_v13 }
 0x26d   : > { %v6705_v35 = vadd.f32 %v1468_v33, %v1265_v26  ;;  %5140 = vmatprep.subr.mxu1 %v6081_v10 }
 0x26f   : > { %5138 = vmatmul.mubr.msk.f32.vlgmr.msra.gmra.mrb[0].mxu1 %vm1723_vm1, %v1216_v34 }
 0x270   : > { %1886 = vrot.lane.b32.xlu1 %v1216_v34, %s6083_s8  ;;  %5142 = vmatprep.mubr.msk.f32.mxu1 %vm6082_vm0, %v6081_v10 }
 0x2a9   : > { %v1709_v24 = vpop.f32.mrb[8].mxu0 }
 0x2aa   : > { %v1711_v26 = vpop.f32.mrb[9].mxu0  ;;  %v1710_v29 = vadd.f32 %v1709_v24, %v1508_v25 }
 0x2ab   : > { %v1713_v28 = vpop.f32.mrb[10].mxu0  ;;  %v6762_v33 = vadd.f32 %v1711_v26, %v1512_v27 }
 0x2ac   : > { %v1715_v31 = vpop.f32.mrb[11].mxu0  ;;  %v6764_v34 = vadd.f32 %v1713_v28, %v1508_v25  ;;  %5141 = vmatpush3.msra.mxu1 %v1710_v29 }
 0x2ad   : > { %v6766_v36 = vadd.f32 %v1715_v31, %v1512_v27  ;;  %5145 = vmatprep.subr.mxu1 %v6081_v10 }
 0x2de   : > { %v1889_v39 = vpop.permute.xlu1 %1888 }
 0x2e2   : > { %v1887_v41 = vpop.permute.xlu1 %1886 }
 0x342   : > { %v1796_v7 = vpop.f32.mrb[0].mxu1 }
 0x343   : > { %v1800_v8 = vsel %vm6747_vm2, %v1796_v7, -inf  ;;  %v5139_v9 = vpop.f32.mrb[1].mxu1 }
 0x344   : > { %v1802_v14 = vsel %vm1801_vm3, %v1800_v8, -inf }
 0x345   : > { %1803 = vmax.xlane.f32.xlu0 %v1802_v14 }
 0x3d2   : > { %v1804_v16 = vpop.xlane.xlu0 %1803 }
 0x3d3   : > { %v1805_v17 = vsub.f32 %v1800_v8, %v1804_v16 }
 0x3d5   : > { %v1806_v43 = vmul.f32 1.442695, %v1805_v17 }
 0x3d7   : > { %5724 = vpow2.f32 %v1806_v43 }
 0x3e1   : > { %v5725_v20 = vpop.eup %5724 }
 0x3e2   : > { %v1808_v11 = vsel %vm1801_vm3, %v5725_v20, 0.0 }
 0x3e3   : > { %1809 = vadd.xlane.f32.xlu0 %v1808_v11 }
 0x470   : > { %v1810_v37 = vpop.xlane.xlu0 %1809 }
 0x471   : > { %5726 = vrcp.f32 %v1810_v37 }
 0x47b   : > { %v5727_v38 = vpop.eup %5726 }
 0x47c   : > { %v1812_v40 = vmul.f32 %v5727_v38, %v5725_v20 }
 0x47e   : > { %5143 = vmatmul.mubr.msk.f32.vlgmr.msra.gmra.mrb[2].mxu1 %vm1801_vm3, %v1812_v40 }
 0x47f   : > { %5146 = vmatpush3.xpose.msk.msra.mxu1 %vm1723_vm1, %v1889_v39  ;;  %5147 = vmatprep.mubr.msk.f32.mxu1 %vm6082_vm0, %v6081_v10 }
 0x480   : > { %5150 = vmatprep.subr.mxu1 %v6081_v10 }
 0x482   : > { %5148 = vmatmul.mubr.msk.f32.vlgmr.msra.gmra.mrb[4].mxu1 %vm1723_vm1, %v1887_v41 }
 0x483   : > { %5152 = vmatprep.mubr.msk.f32.mxu1 %vm6082_vm0, %v6081_v10 }
 0x551   : > { %v6777_v42 = vpop.f32.mrb[2].mxu1 }
 0x552   : > { %v5144_v44 = vpop.f32.mrb[3].mxu1 }
 0x555   : > { %v1960_v45 = vpop.f32.mrb[4].mxu1 }
 0x556   : > { %v1964_v46 = vsel %vm6747_vm2, %v1960_v45, -inf  ;;  %v5149_v47 = vpop.f32.mrb[5].mxu1 }
 0x557   : > { %v1965_v48 = vsel %vm1801_vm3, %v1964_v46, -inf }
 0x558   : > { %1966 = vmax.xlane.f32.xlu0 %v1965_v48 }
 0x56e   : > { %1977 = vrot.lane.b32.xlu0 %v1710_v29, %s6083_s8 }
 0x5e5   : > { %v1967_v49 = vpop.xlane.xlu0 %1966 }
 0x5e6   : > { %v1968_v50 = vsub.f32 %v1964_v46, %v1967_v49 }
 0x5e8   : > { %v1969_v51 = vmul.f32 1.442695, %v1968_v50 }
 0x5e9   : > { %v1978_v52 = vpop.permute.xlu0 %1977 }
 0x5ea   : > { %5728 = vpow2.f32 %v1969_v51  ;;  %5151 = vmatpush3.msra.mxu1 %v1978_v52 }
 0x5eb   : > { %5155 = vmatprep.subr.mxu1 %v6081_v10 }
 0x5f4   : > { %v5729_v53 = vpop.eup %5728 }
 0x5f5   : > { %v1971_v54 = vsel %vm1801_vm3, %v5729_v53, 0.0 }
 0x5f6   : > { %1972 = vadd.xlane.f32.xlu1 %v1971_v54 }
 0x683   : > { %v1973_v55 = vpop.xlane.xlu1 %1972 }
 0x684   : > { %5730 = vrcp.f32 %v1973_v55 }
 0x68e   : > { %v5731_v56 = vpop.eup %5730 }
 0x68f   : > { %v1975_v57 = vmul.f32 %v5731_v56, %v5729_v53 }
 0x691   : > { %5153 = vmatmul.mubr.msk.f32.vlgmr.msra.gmra.mrb[6].mxu1 %vm1801_vm3, %v1975_v57 }
 0x692   : > { %5156 = vmatpush3.xpose.msk.msra.mxu1 %vm1723_vm1, %v6699_v30  ;;  %5157 = vmatprep.mubr.msk.f32.mxu1 %vm6082_vm0, %v6081_v10 }
 0x693   : > { %5160 = vmatprep.subr.mxu1 %v6081_v10 }
 0x695   : > { %5158 = vmatmul.mubr.msk.f32.vlgmr.msra.gmra.mrb[8].mxu1 %vm1723_vm1, %v1218_v58 }
 0x696   : > { %5161 = vmatpush3.msra.mxu1 %v6762_v33  ;;  %5162 = vmatprep.mubr.msk.f32.mxu1 %vm6082_vm0, %v6081_v10 }
 0x697   : > { %5165 = vmatprep.subr.mxu1 %v6081_v10 }
 0x764   : > { %v6798_v59 = vpop.f32.mrb[6].mxu1 }
 0x765   : > { %v5154_v60 = vpop.f32.mrb[7].mxu1 }
 0x768   : > { %v2125_v61 = vpop.f32.mrb[8].mxu1 }
 0x769   : > { %v2129_v62 = vsel %vm6747_vm2, %v2125_v61, -inf  ;;  %v5159_v63 = vpop.f32.mrb[9].mxu1 }
 0x76a   : > { %v2130_v18 = vsel %vm1801_vm3, %v2129_v62, -inf }
 0x76b   : > { %2131 = vmax.xlane.f32.xlu0 %v2130_v18 }
 0x781   : > { %2214 = vrot.lane.b32.xlu0 %v1218_v58, %s6083_s8 }
 0x7f8   : > { %v2132_v19 = vpop.xlane.xlu0 %2131 }
 0x7f9   : > { %v2133_v0 = vsub.f32 %v2129_v62, %v2132_v19 }
 0x7fb   : > { %v2134_v1 = vmul.f32 1.442695, %v2133_v0 }
 0x7fc   : > { %v2215_v9 = vpop.permute.xlu0 %2214 }
 0x7fd   : > { %5732 = vpow2.f32 %v2134_v1 }
 0x807   : > { %v5733_v2 = vpop.eup %5732 }
 0x808   : > { %v2136_v3 = vsel %vm1801_vm3, %v5733_v2, 0.0 }
 0x809   : > { %2137 = vadd.xlane.f32.xlu1 %v2136_v3 }
 0x81a   : > { %2216 = vrot.lane.b32.xlu1 %v6699_v30, %s6083_s8 }
 0x896   : > { %v2138_v4 = vpop.xlane.xlu1 %2137 }
 0x897   : > { %5734 = vrcp.f32 %v2138_v4 }
 0x89a   : > { %v2217_v8 = vpop.permute.xlu1 %2216 }
 0x8a1   : > { %v5735_v5 = vpop.eup %5734 }
 0x8a2   : > { %v2140_v7 = vmul.f32 %v5735_v5, %v5733_v2 }
 0x8a4   : > { %5163 = vmatmul.mubr.msk.f32.vlgmr.msra.gmra.mrb[10].mxu1 %vm1801_vm3, %v2140_v7 }
 0x8a5   : > { %5166 = vmatpush3.xpose.msk.msra.mxu1 %vm1723_vm1, %v2217_v8  ;;  %5167 = vmatprep.mubr.msk.f32.mxu1 %vm6082_vm0, %v6081_v10 }
 0x8a6   : > { %5170 = vmatprep.subr.mxu1 %v6081_v10 }
 0x8a8   : > { %5168 = vmatmul.mubr.msk.f32.vlgmr.msra.gmra.mrb[12].mxu1 %vm1723_vm1, %v2215_v9 }
 0x8a9   : > { %5172 = vmatprep.mubr.msk.f32.mxu1 %vm6082_vm0, %v6081_v10 }
 0x977   : > { %v6815_v30 = vpop.f32.mrb[10].mxu1 }
 0x978   : > { %v5164_v14 = vpop.f32.mrb[11].mxu1 }
 0x97b   : > { %v2288_v16 = vpop.f32.mrb[12].mxu1 }
 0x97c   : > { %v2292_v17 = vsel %vm6747_vm2, %v2288_v16, -inf  ;;  %v5169_v43 = vpop.f32.mrb[13].mxu1 }
 0x97d   : > { %v2293_v20 = vsel %vm1801_vm3, %v2292_v17, -inf }
 0x97e   : > { %2294 = vmax.xlane.f32.xlu1 %v2293_v20 }
 0x98f   : > { %2305 = vrot.lane.b32.xlu1 %v6762_v33, %s6083_s8 }
 0xa0b   : > { %v2295_v11 = vpop.xlane.xlu1 %2294 }
 0xa0c   : > { %v2296_v22 = vsub.f32 %v2292_v17, %v2295_v11 }
 0xa0e   : > { %v2297_v24 = vmul.f32 1.442695, %v2296_v22 }
 0xa0f   : > { %v2306_v25 = vpop.permute.xlu1 %2305 }
 0xa10   : > { %5736 = vpow2.f32 %v2297_v24  ;;  %5171 = vmatpush3.msra.mxu1 %v2306_v25 }
 0xa11   : > { %5175 = vmatprep.subr.mxu1 %v6081_v10 }
 0xa1a   : > { %v5737_v26 = vpop.eup %5736 }
 0xa1b   : > { %v2299_v27 = vsel %vm1801_vm3, %v5737_v26, 0.0 }
 0xa1c   : > { %2300 = vadd.xlane.f32.xlu0 %v2299_v27 }
 0xaa9   : > { %v2301_v28 = vpop.xlane.xlu0 %2300 }
 0xaaa   : > { %5738 = vrcp.f32 %v2301_v28 }
 0xab4   : > { %v5739_v29 = vpop.eup %5738 }
 0xab5   : > { %v2303_v31 = vmul.f32 %v5739_v29, %v5737_v26 }
 0xab7   : > { %5173 = vmatmul.mubr.msk.f32.vlgmr.msra.gmra.mrb[14].mxu1 %vm1801_vm3, %v2303_v31 }
 0xab8   : > { %5176 = vmatpush3.xpose.msk.msra.mxu1 %vm1723_vm1, %v6701_v32  ;;  %5177 = vmatprep.mubr.msk.f32.mxu1 %vm6082_vm0, %v6081_v10 }
 0xab9   : > { %5180 = vmatprep.subr.mxu1 %v6081_v10 }
 0xabb   : > { %5178 = vmatmul.mubr.msk.f32.vlgmr.msra.gmra.mrb[16].mxu1 %vm1723_vm1, %v6687_v21 }
 0xabc   : > { %5181 = vmatpush3.msra.mxu1 %v6764_v34  ;;  %5182 = vmatprep.mubr.msk.f32.mxu1 %vm6082_vm0, %v6081_v10 }
 0xabd   : > { %5185 = vmatprep.subr.mxu1 %v6081_v10 }
 0xb8a   : > { %v6836_v33 = vpop.f32.mrb[14].mxu1 }
 0xb8b   : > { %v5174_v37 = vpop.f32.mrb[15].mxu1 }
 0xb8e   : > { %v2463_v38 = vpop.f32.mrb[16].mxu1 }
 0xb8f   : > { %v2467_v39 = vsel %vm6747_vm2, %v2463_v38, -inf  ;;  %v5179_v40 = vpop.f32.mrb[17].mxu1 }
 0xb90   : > { %v2468_v41 = vsel %vm1801_vm3, %v2467_v39, -inf }
 0xb91   : > { %2469 = vmax.xlane.f32.xlu0 %v2468_v41 }
 0xba7   : > { %2554 = vrot.lane.b32.xlu0 %v6701_v32, %s6083_s8 }
 0xbab   : > { %2552 = vrot.lane.b32.xlu0 %v6687_v21, %s6083_s8 }
 0xc1e   : > { %v2470_v44 = vpop.xlane.xlu0 %2469 }
 0xc1f   : > { %v2471_v45 = vsub.f32 %v2467_v39, %v2470_v44 }
 0xc21   : > { %v2472_v46 = vmul.f32 1.442695, %v2471_v45  ;;  %v5484_v45 = vld [vmem:[%s6535_s10] ss:$8 sps:$4 sm:$0xff]  }
 0xc22   : > { %v2555_v51 = vpop.permute.xlu0 %2554 }
 0xc23   : > { %5740 = vpow2.f32 %v2472_v46  ;;  %v5486_v46 = vld [vmem:[%s6535_s10 + $0x4] ss:$8 sps:$4 sm:$0xff]  }
 0xc24   : > { %3263 = vmatprep.subr.bf16.mxu0 %v5486_v46  ;;  %v5766_v46 = vld [vmem:[#allocation2 + $0x10] sm:$0xff] }
 0xc25   : > { %3264 = vmatpush1.bf16.msra.mxu0 %v5484_v45 }
 0xc26   : > { %v2553_v21 = vpop.permute.xlu0 %2552 }
 0xc2d   : > { %v5741_v47 = vpop.eup %5740 }
 0xc2e   : > { %v2474_v48 = vsel %vm1801_vm3, %v5741_v47, 0.0 }
 0xc2f   : > { %2475 = vadd.xlane.f32.xlu1 %v2474_v48  ;;  %v5492_v48 = vld [vmem:[%s6535_s10 + $0x24] ss:$8 sps:$4 sm:$0xff]  }
 0xcbc   : > { %v2476_v49 = vpop.xlane.xlu1 %2475 }
 0xcbd   : > { %5742 = vrcp.f32 %v2476_v49  ;;  %v5490_v49 = vld [vmem:[%s6535_s10 + $0x20] ss:$8 sps:$4 sm:$0xff]  }
 0xcc7   : > { %v5743_v50 = vpop.eup %5742 }
 0xcc8   : > { %v2478_v52 = vmul.f32 %v5743_v50, %v5741_v47  ;;  %v5489_v47 = vld [vmem:[%s6535_s10 + $0x14] ss:$8 sps:$4 sm:$0xff]  }
 0xcc9   : > { %3265 = vmatprep.subr.bf16.mxu0 %v5489_v47  ;;  %v5495_v50 = vld [vmem:[%s6535_s10 + $0x34] ss:$8 sps:$4 sm:$0xff]  }
 0xcca   : > { %5183 = vmatmul.mubr.msk.f32.vlgmr.msra.gmra.mrb[18].mxu1 %vm1801_vm3, %v2478_v52  ;;  %v5498_v52 = vld [vmem:[%s6535_s10 + $0x44] ss:$8 sps:$4 sm:$0xff]  }
 0xccb   : > { %5186 = vmatpush3.xpose.msk.msra.mxu1 %vm1723_vm1, %v2555_v51  ;;  %5187 = vmatprep.mubr.msk.f32.mxu1 %vm6082_vm0, %v6081_v10  ;;  %v5493_v51 = vld [vmem:[%s6535_s10 + $0x30] ss:$8 sps:$4 sm:$0xff]  }
 0xccc   : > { %5190 = vmatprep.subr.mxu1 %v6081_v10 }
 0xcce   : > { %5188 = vmatmul.mubr.msk.f32.vlgmr.msra.gmra.mrb[20].mxu1 %vm1723_vm1, %v2553_v21  ;;  %v5496_v21 = vld [vmem:[%s6535_s10 + $0x40] ss:$8 sps:$4 sm:$0xff]  }
 0xccf   : > { %5192 = vmatprep.mubr.msk.f32.mxu1 %vm6082_vm0, %v6081_v10 }
 0xd9d   : > { %v6854_v32 = vpop.f32.mrb[18].mxu1 }
 0xd9e   : > { %v5184_v53 = vpop.f32.mrb[19].mxu1 }
 0xd9f   : > { %v5501_v53 = vld [vmem:[%s6535_s10 + $0x54] ss:$8 sps:$4 sm:$0xff]  }
 0xda1   : > { %v2626_v54 = vpop.f32.mrb[20].mxu1 }
 0xda2   : > { %v2630_v55 = vsel %vm6747_vm2, %v2626_v54, -inf  ;;  %v5189_v56 = vpop.f32.mrb[21].mxu1  ;;  %v5499_v54 = vld [vmem:[%s6535_s10 + $0x50] ss:$8 sps:$4 sm:$0xff]  }
 0xda3   : > { %v2631_v57 = vsel %vm1801_vm3, %v2630_v55, -inf  ;;  %v5502_v56 = vld [vmem:[%s6535_s10 + $0x60] ss:$8 sps:$4 sm:$0xff]  }
 0xda4   : > { %2632 = vmax.xlane.f32.xlu0 %v2631_v57  ;;  %v5507_v57 = vld [vmem:[%s6535_s10 + $0x74] ss:$8 sps:$4 sm:$0xff]  }
 0xdba   : > { %2882 = vrot.lane.b32.xlu0 %v6705_v35, %s6083_s8 }
 0xe31   : > { %v2633_v58 = vpop.xlane.xlu0 %2632 }
 0xe32   : > { %v2634_v60 = vsub.f32 %v2630_v55, %v2633_v58  ;;  %v5504_v55 = vld [vmem:[%s6535_s10 + $0x64] ss:$8 sps:$4 sm:$0xff]   ;;  %v5505_v58 = vld [vmem:[%s6535_s10 + $0x70] ss:$8 sps:$4 sm:$0xff]  }
 0xe34   : > { %v2635_v61 = vmul.f32 1.442695, %v2634_v60  ;;  %v5510_v60 = vld [vmem:[%s6535_s10 + $0x84] ss:$8 sps:$4 sm:$0xff]  }
 0xe35   : > { %v2883_v43 = vpop.permute.xlu0 %2882 }
 0xe36   : > { %5744 = vpow2.f32 %v2635_v61  ;;  %v5508_v61 = vld [vmem:[%s6535_s10 + $0x80] ss:$8 sps:$4 sm:$0xff]  }
 0xe40   : > { %v5745_v62 = vpop.eup %5744 }
 0xe41   : > { %v2637_v63 = vsel %vm1801_vm3, %v5745_v62, 0.0 }
 0xe42   : > { %2638 = vadd.xlane.f32.xlu1 %v2637_v63  ;;  %v5511_v63 = vld [vmem:[%s6535_s10 + $0x90] ss:$8 sps:$4 sm:$0xff]  }
 0xe53   : > { %2643 = vrot.lane.b32.xlu1 %v6764_v34, %s6083_s8 }
 0xecf   : > { %v2639_v18 = vpop.xlane.xlu1 %2638 }
 0xed0   : > { %5746 = vrcp.f32 %v2639_v18  ;;  %v5516_v18 = vld [vmem:[%s6535_s10 + $0xa4] ss:$8 sps:$4 sm:$0xff]  }
 0xed3   : > { %v2644_v19 = vpop.permute.xlu1 %2643 }
 0xed4   : > { %5191 = vmatpush3.msra.mxu1 %v2644_v19  ;;  %v5514_v19 = vld [vmem:[%s6535_s10 + $0xa0] ss:$8 sps:$4 sm:$0xff]  }
 0xed5   : > { %5195 = vmatprep.subr.mxu1 %v6081_v10 }
 0xeda   : > { %v5747_v0 = vpop.eup %5746 }
 0xedb   : > { %v2641_v1 = vmul.f32 %v5747_v0, %v5745_v62  ;;  %v5513_v62 = vld [vmem:[%s6535_s10 + $0x94] ss:$8 sps:$4 sm:$0xff]  }
 0xedc   : > { %v5519_v0 = vld [vmem:[%s6535_s10 + $0xb4] ss:$8 sps:$4 sm:$0xff]  }
 0xedd   : > { %5193 = vmatmul.mubr.msk.f32.vlgmr.msra.gmra.mrb[22].mxu1 %vm1801_vm3, %v2641_v1  ;;  %v5517_v1 = vld [vmem:[%s6535_s10 + $0xb0] ss:$8 sps:$4 sm:$0xff]  }
 0xede   : > { %5196 = vmatpush3.xpose.msk.msra.mxu1 %vm1723_vm1, %v6705_v35  ;;  %5197 = vmatprep.mubr.msk.f32.mxu1 %vm6082_vm0, %v6081_v10 }
 0xedf   : > { %5200 = vmatprep.subr.mxu1 %v6081_v10 }
 0xee1   : > { %5198 = vmatmul.mubr.msk.f32.vlgmr.msra.gmra.mrb[24].mxu1 %vm1723_vm1, %v6690_v23 }
 0xee2   : > { %5201 = vmatpush3.msra.mxu1 %v6766_v36  ;;  %5202 = vmatprep.mubr.msk.f32.mxu1 %vm6082_vm0, %v6081_v10 }
 0xee3   : > { %5205 = vmatprep.subr.mxu1 %v6081_v10 }
 0xfb0   : > { %v6877_v34 = vpop.f32.mrb[22].mxu1 }
 0xfb1   : > { %v5335_v35 = vpack.i.bf16 %v6877_v34, %v6798_v59  ;;  %v5194_v2 = vpop.f32.mrb[23].mxu1 }
 0xfb2   : > { %v5522_v2 = vld [vmem:[%s6535_s10 + $0xc4] ss:$8 sps:$4 sm:$0xff]  }
 0xfb4   : > { %v2791_v3 = vpop.f32.mrb[24].mxu1 }
 0xfb5   : > { %v2795_v4 = vsel %vm6747_vm2, %v2791_v3, -inf  ;;  %v5199_v5 = vpop.f32.mrb[25].mxu1  ;;  %v5520_v3 = vld [vmem:[%s6535_s10 + $0xc0] ss:$8 sps:$4 sm:$0xff]  }
 0xfb6   : > { %v2796_v7 = vsel %vm1801_vm3, %v2795_v4, -inf  ;;  %v5523_v5 = vld [vmem:[%s6535_s10 + $0xd0] ss:$8 sps:$4 sm:$0xff]  }
 0xfb7   : > { %2797 = vmax.xlane.f32.xlu1 %v2796_v7  ;;  %v5526_v7 = vld [vmem:[%s6535_s10 + $0xe0] ss:$8 sps:$4 sm:$0xff]  }
0x1044   : > { %v2798_v8 = vpop.xlane.xlu1 %2797 }
0x1045   : > { %v2799_v9 = vsub.f32 %v2795_v4, %v2798_v8  ;;  %v5525_v4 = vld [vmem:[%s6535_s10 + $0xd4] ss:$8 sps:$4 sm:$0xff]   ;;  %v5528_v8 = vld [vmem:[%s6535_s10 + $0xe4] ss:$8 sps:$4 sm:$0xff]  }
0x1047   : > { %v2800_v14 = vmul.f32 1.442695, %v2799_v9  ;;  %v5531_v9 = vld [vmem:[%s6535_s10 + $0xf4] ss:$8 sps:$4 sm:$0xff]  }
0x1049   : > { %5748 = vpow2.f32 %v2800_v14  ;;  %v5529_v14 = vld [vmem:[%s6535_s10 + $0xf0] ss:$8 sps:$4 sm:$0xff]  }
0x1053   : > { %v5749_v16 = vpop.eup %5748 }
0x1054   : > { %v2802_v17 = vsel %vm1801_vm3, %v5749_v16, 0.0 }
0x1055   : > { %2803 = vadd.xlane.f32.xlu0 %v2802_v17 }
0x106b   : > { %2880 = vrot.lane.b32.xlu0 %v6690_v23, %s6083_s8 }
0x10e2   : > { %v2804_v20 = vpop.xlane.xlu0 %2803 }
0x10e3   : > { %5750 = vrcp.f32 %v2804_v20 }
0x10e6   : > { %v2881_v24 = vpop.permute.xlu0 %2880 }
0x10ed   : > { %v5751_v11 = vpop.eup %5750 }
0x10ee   : > { %v2806_v22 = vmul.f32 %v5751_v11, %v5749_v16 }
0x10f0   : > { %5203 = vmatmul.mubr.msk.f32.vlgmr.msra.gmra.mrb[26].mxu1 %vm1801_vm3, %v2806_v22 }
0x10f1   : > { %5206 = vmatpush3.xpose.msk.msra.mxu1 %vm1723_vm1, %v2883_v43  ;;  %5207 = vmatprep.mubr.msk.f32.mxu1 %vm6082_vm0, %v6081_v10 }
0x10f2   : > { %5210 = vmatprep.subr.mxu1 %v6081_v10 }
0x10f4   : > { %5208 = vmatmul.mubr.msk.f32.vlgmr.msra.gmra.mrb[28].mxu1 %vm1723_vm1, %v2881_v24 }
0x10f5   : > { %5212 = vmatprep.mubr.msk.f32.mxu1 %vm6082_vm0, %v6081_v10 }
0x11c3   : > { %v6895_v23 = vpop.f32.mrb[26].mxu1 }
0x11c4   : > { %v5204_v25 = vpop.f32.mrb[27].mxu1 }
0x11c7   : > { %v2954_v26 = vpop.f32.mrb[28].mxu1 }
0x11c8   : > { %v2958_v27 = vsel %vm6747_vm2, %v2954_v26, -inf  ;;  %v5209_v28 = vpop.f32.mrb[29].mxu1 }
0x11c9   : > { %v2959_v29 = vsel %vm1801_vm3, %v2958_v27, -inf }
0x11ca   : > { %2960 = vmax.xlane.f32.xlu0 %v2959_v29 }
0x1257   : > { %v2961_v31 = vpop.xlane.xlu0 %2960 }
0x1258   : > { %v2962_v37 = vsub.f32 %v2958_v27, %v2961_v31 }
0x125a   : > { %v2963_v38 = vmul.f32 1.442695, %v2962_v37 }
0x125c   : > { %5752 = vpow2.f32 %v2963_v38 }
0x1266   : > { %v5753_v39 = vpop.eup %5752 }
0x1267   : > { %v2965_v10 = vsel %vm1801_vm3, %v5753_v39, 0.0 }
0x1268   : > { %2966 = vadd.xlane.f32.xlu1 %v2965_v10 }
0x1279   : > { %2971 = vrot.lane.b32.xlu1 %v6766_v36, %s6083_s8  ;;  %v5487_v36 = vld [vmem:[%s6535_s10 + $0x10] ss:$8 sps:$4 sm:$0xff]  }
0x127a   : > { %3266 = vmatpush1.bf16.msra.mxu0 %v5487_v36  ;;  %v5767_v36 = vld [vmem:[#allocation2 + $0x18] sm:$0xff] }
0x127b   : > { %3267 = vmatprep.subr.bf16.mxu0 %v5492_v48 }
0x127e   : > { %3268 = vmatpush1.bf16.msra.mxu0 %v5490_v49 }
0x127f   : > { %3269 = vmatprep.subr.bf16.mxu0 %v5495_v50 }
0x1282   : > { %3270 = vmatpush1.bf16.msra.mxu0 %v5493_v51  ;;  %v5532_v51 = vld [vmem:[%s7341_s15] ss:$16 sps:$4 sm:$0xff]  }
0x1283   : > { %3271 = vmatprep.subr.bf16.mxu0 %v5498_v52  ;;  %v5534_v52 = vld [vmem:[%s7341_s15 + $0x4] ss:$16 sps:$4 sm:$0xff]  }
0x1286   : > { %3272 = vmatpush1.bf16.msra.mxu0 %v5496_v21  ;;  %v5535_v21 = vld [vmem:[%s7341_s15 + $0x8] ss:$16 sps:$4 sm:$0xff]  }
0x1287   : > { %3273 = vmatprep.subr.bf16.mxu0 %v5501_v53  ;;  %v5537_v53 = vld [vmem:[%s7341_s15 + $0xc] ss:$16 sps:$4 sm:$0xff]  }
0x128a   : > { %3274 = vmatpush1.bf16.msra.mxu0 %v5499_v54  ;;  %v5540_v54 = vld [vmem:[%s7341_s15 + $0x24] ss:$16 sps:$4 sm:$0xff]  }
0x128b   : > { %3275 = vmatprep.subr.bf16.mxu0 %v5504_v55  ;;  %v5543_v55 = vld [vmem:[%s7341_s15 + $0x2c] ss:$16 sps:$4 sm:$0xff]  }
0x128e   : > { %3276 = vmatpush1.bf16.msra.mxu0 %v5502_v56  ;;  %v5538_v56 = vld [vmem:[%s7341_s15 + $0x20] ss:$16 sps:$4 sm:$0xff]  }
0x128f   : > { %3277 = vmatprep.subr.bf16.mxu0 %v5507_v57  ;;  %v5541_v57 = vld [vmem:[%s7341_s15 + $0x28] ss:$16 sps:$4 sm:$0xff]  }
0x1292   : > { %3278 = vmatpush1.bf16.msra.mxu0 %v5505_v58  ;;  %v5546_v58 = vld [vmem:[%s7341_s15 + $0x44] ss:$16 sps:$4 sm:$0xff]  }
0x1293   : > { %3279 = vmatprep.subr.bf16.mxu0 %v5510_v60  ;;  %v5549_v60 = vld [vmem:[%s7341_s15 + $0x4c] ss:$16 sps:$4 sm:$0xff]  }
0x1296   : > { %3280 = vmatpush1.bf16.msra.mxu0 %v5508_v61  ;;  %v5544_v61 = vld [vmem:[%s7341_s15 + $0x40] ss:$16 sps:$4 sm:$0xff]  }
0x1297   : > { %3281 = vmatprep.subr.bf16.mxu0 %v5513_v62  ;;  %v5547_v62 = vld [vmem:[%s7341_s15 + $0x48] ss:$16 sps:$4 sm:$0xff]  }
0x129a   : > { %3282 = vmatpush1.bf16.msra.mxu0 %v5511_v63  ;;  %v5552_v63 = vld [vmem:[%s7341_s15 + $0x64] ss:$16 sps:$4 sm:$0xff]  }
0x129b   : > { %3283 = vmatprep.subr.bf16.mxu0 %v5516_v18  ;;  %v5555_v18 = vld [vmem:[%s7341_s15 + $0x6c] ss:$16 sps:$4 sm:$0xff]  }
0x129e   : > { %3284 = vmatpush1.bf16.msra.mxu0 %v5514_v19  ;;  %v5550_v19 = vld [vmem:[%s7341_s15 + $0x60] ss:$16 sps:$4 sm:$0xff]  }
0x129f   : > { %3285 = vmatprep.subr.bf16.mxu0 %v5519_v0  ;;  %v5553_v0 = vld [vmem:[%s7341_s15 + $0x68] ss:$16 sps:$4 sm:$0xff]  }
0x12a2   : > { %3286 = vmatpush1.bf16.msra.mxu0 %v5517_v1  ;;  %v5558_v1 = vld [vmem:[%s7341_s15 + $0x84] ss:$16 sps:$4 sm:$0xff]  }
0x12a3   : > { %3287 = vmatprep.subr.bf16.mxu0 %v5522_v2  ;;  %v5561_v2 = vld [vmem:[%s7341_s15 + $0x8c] ss:$16 sps:$4 sm:$0xff]  }
0x12a6   : > { %3288 = vmatpush1.bf16.msra.mxu0 %v5520_v3  ;;  %v5556_v3 = vld [vmem:[%s7341_s15 + $0x80] ss:$16 sps:$4 sm:$0xff]  }
0x12a7   : > { %3289 = vmatprep.subr.bf16.mxu0 %v5525_v4  ;;  %v5559_v4 = vld [vmem:[%s7341_s15 + $0x88] ss:$16 sps:$4 sm:$0xff]  }
0x12aa   : > { %3290 = vmatpush1.bf16.msra.mxu0 %v5523_v5  ;;  %v5564_v5 = vld [vmem:[%s7341_s15 + $0xa4] ss:$16 sps:$4 sm:$0xff]  }
0x12ab   : > { %3291 = vmatprep.subr.bf16.mxu0 %v5528_v8  ;;  %v5562_v8 = vld [vmem:[%s7341_s15 + $0xa0] ss:$16 sps:$4 sm:$0xff]  }
0x12ae   : > { %3292 = vmatpush1.bf16.msra.mxu0 %v5526_v7  ;;  %v5567_v7 = vld [vmem:[%s7341_s15 + $0xac] ss:$16 sps:$4 sm:$0xff]  }
0x12af   : > { %3293 = vmatprep.subr.bf16.mxu0 %v5531_v9  ;;  %v5565_v9 = vld [vmem:[%s7341_s15 + $0xa8] ss:$16 sps:$4 sm:$0xff]  }
0x12b2   : > { %3294 = vmatpush1.bf16.msra.mxu0 %v5529_v14  ;;  %v5570_v14 = vld [vmem:[%s7341_s15 + $0xc4] ss:$16 sps:$4 sm:$0xff]  }
0x12b3   : > { %3826 = vmatprep.subr.bf16.mxu0 %v5537_v53  ;;  %v5604_v53 = vld [vmem:[%s7341_s15 + $0x180] ss:$16 sps:$4 sm:$0xff]  }
0x12f5   : > { %v2967_v6 = vpop.xlane.xlu1 %2966 }
0x12f6   : > { %5754 = vrcp.f32 %v2967_v6 }
0x12f9   : > { %v2972_v40 = vpop.permute.xlu1 %2971 }
0x12fa   : > { %5211 = vmatpush3.msra.mxu1 %v2972_v40 }
0x12fb   : > { %3783 = vmatprep.subr.bf16.mxu1 %v5534_v52  ;;  %v5606_v52 = vld [vmem:[%s7341_s15 + $0x184] ss:$16 sps:$4 sm:$0xff]  }
0x1300   : > { %v5755_v41 = vpop.eup %5754 }
0x1301   : > { %v2969_v44 = vmul.f32 %v5755_v41, %v5753_v39  ;;  %v5765_v41 = vld [vmem:[#allocation2 + $0x8] sm:$0xff] }
0x1303   : > { %5213 = vmatmul.mubr.msk.f32.vlgmr.msra.gmra.mrb[30].mxu1 %vm1801_vm3, %v2969_v44 }
0x1304   : > { %3784 = vmatpush1.bf16.msra.mxu1 %v5532_v51  ;;  %v5601_v51 = vld [vmem:[%s7341_s15 + $0x168] ss:$16 sps:$4 sm:$0xff]  }
0x1305   : > { %3785 = vmatprep.subr.bf16.mxu1 %v5540_v54  ;;  %v5607_v54 = vld [vmem:[%s7341_s15 + $0x188] ss:$16 sps:$4 sm:$0xff]  }
0x1308   : > { %3786 = vmatpush1.bf16.msra.mxu1 %v5538_v56  ;;  %v5615_v56 = vld [vmem:[%s7341_s15 + $0x1ac] ss:$16 sps:$4 sm:$0xff]  }
0x1309   : > { %3787 = vmatprep.subr.bf16.mxu1 %v5546_v58  ;;  %v5613_v58 = vld [vmem:[%s7341_s15 + $0x1a8] ss:$16 sps:$4 sm:$0xff]  }
0x130c   : > { %3788 = vmatpush1.bf16.msra.mxu1 %v5544_v61  ;;  %v5618_v61 = vld [vmem:[%s7341_s15 + $0x1c4] ss:$16 sps:$4 sm:$0xff]  }
0x130d   : > { %3789 = vmatprep.subr.bf16.mxu1 %v5552_v63  ;;  %v5621_v63 = vld [vmem:[%s7341_s15 + $0x1cc] ss:$16 sps:$4 sm:$0xff]  }
0x1310   : > { %3790 = vmatpush1.bf16.msra.mxu1 %v5550_v19  ;;  %v5627_v19 = vld [vmem:[%s7341_s15 + $0x1ec] ss:$16 sps:$4 sm:$0xff]  }
0x1311   : > { %3791 = vmatprep.subr.bf16.mxu1 %v5558_v1  ;;  %v5625_v1 = vld [vmem:[%s7341_s15 + $0x1e8] ss:$16 sps:$4 sm:$0xff]  }
0x1314   : > { %3792 = vmatpush1.bf16.msra.mxu1 %v5556_v3 }
0x1315   : > { %3793 = vmatprep.subr.bf16.mxu1 %v5564_v5 }
0x1318   : > { %3794 = vmatpush1.bf16.msra.mxu1 %v5562_v8 }
0x1319   : > { %3795 = vmatprep.subr.bf16.mxu1 %v5570_v14  ;;  %v3343_v14 = vld [vmem:[%s7343_s26] sm:$0x3] }
0x13d6   : > { %v3043_v16 = vpop.f32.mrb[30].mxu1 }
0x13d7   : > { %v5330_v17 = vpack.i.bf16 %v3043_v16, %v6836_v33  ;;  %v5214_v43 = vpop.f32.mrb[31].mxu1  ;;  %v5573_v16 = vld [vmem:[%s7341_s15 + $0xcc] ss:$16 sps:$4 sm:$0xff]  }
0x13d8   : > { %v5571_v43 = vld [vmem:[%s7341_s15 + $0xc8] ss:$16 sps:$4 sm:$0xff]  }
0x13d9   : > { %5331 = vrot.lane.b32.xlu1 %v5330_v17, %s6083_s8  ;;  %v5568_v17 = vld [vmem:[%s7341_s15 + $0xc0] ss:$16 sps:$4 sm:$0xff]  }
0x13da   : > { %3796 = vmatpush1.bf16.msra.mxu1 %v5568_v17 }
0x13dd   : > { %5336 = vrot.lane.b32.xlu1 %v5335_v35, %s6083_s8 }
0x144b   : > { %v5332_v20 = vpop.permute.xlu1 %5331 }
0x144c   : > { %v5334_v11 = vunpack.i.h.bf16 %v5332_v20  ;;  %v5333_v22 = vunpack.i.l.bf16 %v5332_v20  ;;  %v5576_v20 = vld [vmem:[%s7341_s15 + $0xe4] ss:$16 sps:$4 sm:$0xff]  }
0x144d   : > { %3797 = vmatprep.subr.bf16.mxu1 %v5576_v20  ;;  %v3348_v20 = vrot.slane %v3343_v14, %v6671_v13 }
0x144e   : > { %v2390_v24 = vsel %vm1723_vm1, %v6815_v30, %v5333_v22  ;;  %v3056_v25 = vsel %vm1723_vm1, %v6895_v23, %v5334_v11  ;;  %v3091_v30 = vld [vmem:[%s7340_s16] sm:$0x3]  ;;  %v5579_v11 = vld [vmem:[%s7341_s15 + $0xec] ss:$16 sps:$4 sm:$0xff]  }
0x144f   : > { %v5337_v26 = vpop.permute.xlu1 %5336  ;;  %v3058_v33 = vpack.c.bf16 %v3056_v25, %v2390_v24  ;;  %v3096_v35 = vrot.slane %v3091_v30, %v6671_v13  ;;  %v3100_v23 = vrot.slane %v3091_v30, %v6679_v15  ;;  %v5574_v22 = vld [vmem:[%s7341_s15 + $0xe0] ss:$16 sps:$4 sm:$0xff]   ;;  %v5577_v24 = vld [vmem:[%s7341_s15 + $0xe8] ss:$16 sps:$4 sm:$0xff]   ;;  %v5582_v25 = vld [vmem:[%s7341_s15 + $0x104] ss:$16 sps:$4 sm:$0xff]  }
0x1450   : > { %v5339_v27 = vunpack.i.h.bf16 %v5337_v26  ;;  %v5338_v28 = vunpack.i.l.bf16 %v5337_v26  ;;  %v5585_v26 = vld [vmem:[%s7341_s15 + $0x10c] ss:$16 sps:$4 sm:$0xff]   ;;  %3798 = vmatpush1.bf16.msra.mxu1 %v5574_v22  ;;  %v3359_v22 = vld [vmem:[%s941_s0] sm:$0x3] }
0x1451   : > { %3295 = vmatprep.mubr.bf16.mxu0 %v3058_v33  ;;  %v5580_v33 = vld [vmem:[%s7341_s15 + $0x100] ss:$16 sps:$4 sm:$0xff]   ;;  %3799 = vmatprep.subr.bf16.mxu1 %v5582_v25  ;;  %v3364_v25 = vrot.slane %v3359_v22, %v6671_v13 }
0x1452   : > { %v3055_v29 = vsel %vm1723_vm1, %v6854_v32, %v5339_v27  ;;  %v2389_v59 = vsel %vm1723_vm1, %v6777_v42, %v5338_v28  ;;  %v5764_v32 = vld [vmem:[#allocation2] sm:$0xff]  ;;  %v5583_v27 = vld [vmem:[%s7341_s15 + $0x108] ss:$16 sps:$4 sm:$0xff]  }
0x1453   : > { %v3057_v34 = vpack.c.bf16 %v3055_v29, %v2389_v59 }
0x1454   : > { %3800 = vmatpush1.bf16.msra.mxu1 %v5580_v33 }
0x1455   : > { %3296 = vmatmul.mubr.bf16.vlgmr.msra.gmra.mrb[12].mxu0 %v3057_v34 }
0x1456   : > { %3827 = vmatpush1.bf16.msra.mxu0 %v5535_v21  ;;  %v5609_v21 = vld [vmem:[%s7341_s15 + $0x18c] ss:$16 sps:$4 sm:$0xff]  }
0x1457   : > { %3828 = vmatprep.subr.bf16.mxu0 %v5543_v55  ;;  %v5612_v55 = vld [vmem:[%s7341_s15 + $0x1a4] ss:$16 sps:$4 sm:$0xff]  }
0x145a   : > { %3829 = vmatpush1.bf16.msra.mxu0 %v5541_v57  ;;  %v5610_v57 = vld [vmem:[%s7341_s15 + $0x1a0] ss:$16 sps:$4 sm:$0xff]  }
0x145b   : > { %3830 = vmatprep.subr.bf16.mxu0 %v5549_v60  ;;  %v5616_v60 = vld [vmem:[%s7341_s15 + $0x1c0] ss:$16 sps:$4 sm:$0xff]  }
0x145e   : > { %3831 = vmatpush1.bf16.msra.mxu0 %v5547_v62  ;;  %v5619_v62 = vld [vmem:[%s7341_s15 + $0x1c8] ss:$16 sps:$4 sm:$0xff]  }
0x145f   : > { %3832 = vmatprep.subr.bf16.mxu0 %v5555_v18  ;;  %v5624_v18 = vld [vmem:[%s7341_s15 + $0x1e4] ss:$16 sps:$4 sm:$0xff]  }
0x1462   : > { %3833 = vmatpush1.bf16.msra.mxu0 %v5553_v0  ;;  %v5622_v0 = vld [vmem:[%s7341_s15 + $0x1e0] ss:$16 sps:$4 sm:$0xff]  }
0x1463   : > { %3834 = vmatprep.subr.bf16.mxu0 %v5561_v2  ;;  %v5630_v2 = vld [vmem:[%s6588_s14 + $0x4] ss:$8 sps:$4 sm:$0xff]  }
0x1466   : > { %3835 = vmatpush1.bf16.msra.mxu0 %v5559_v4 }
0x1467   : > { %3836 = vmatprep.subr.bf16.mxu0 %v5567_v7 }
0x146a   : > { %3837 = vmatpush1.bf16.msra.mxu0 %v5565_v9 }
0x146b   : > { %3838 = vmatprep.subr.bf16.mxu0 %v5573_v16 }
0x146e   : > { %3839 = vmatpush1.bf16.msra.mxu0 %v5571_v43 }
0x146f   : > { %3840 = vmatprep.subr.bf16.mxu0 %v5579_v11  ;;  %v3352_v11 = vrot.slane %v3343_v14, %v6679_v15 }
0x1472   : > { %3841 = vmatpush1.bf16.msra.mxu0 %v5577_v24 }
0x1473   : > { %3842 = vmatprep.subr.bf16.mxu0 %v5585_v26  ;;  %v3368_v26 = vrot.slane %v3359_v22, %v6679_v15 }
0x1476   : > { %3843 = vmatpush1.bf16.msra.mxu0 %v5583_v27 }
0x1528   : > { %v3297_v31 = vpop.f32.mrb[12].mxu0 }
0x1529   : > { %v3298_v37 = vadd.f32 %v3297_v31, %v3096_v35  ;;  %v3299_v38 = vpop.f32.mrb[13].mxu0 }
0x152a   : > { %v3300_v39 = vadd.f32 %v3299_v38, %v3100_v23  ;;  %v3301_v10 = vpop.f32.mrb[14].mxu0 }
0x152b   : > { %v6957_v42 = vadd.f32 %v5764_v32, %v3298_v37  ;;  %v3302_v6 = vadd.f32 %v3301_v10, %v3096_v35  ;;  %v3303_v40 = vpop.f32.mrb[15].mxu0 }
0x152c   : > { %v6959_v44 = vadd.f32 %v5765_v41, %v3300_v39  ;;  %v3304_v45 = vadd.f32 %v3303_v40, %v3100_v23  ;;  %v5591_v40 = vld [vmem:[%s7341_s15 + $0x12c] ss:$16 sps:$4 sm:$0xff]   ;;  %v5586_v41 = vld [vmem:[%s7341_s15 + $0x120] ss:$16 sps:$4 sm:$0xff]  }
0x152d   : > { %v6961_v47 = vadd.f32 %v5766_v46, %v3302_v6  ;;  %v5588_v6 = vld [vmem:[%s7341_s15 + $0x124] ss:$16 sps:$4 sm:$0xff]   ;;  %3844 = vmatprep.subr.bf16.mxu0 %v5591_v40  ;;  %v5597_v46 = vld [vmem:[%s7341_s15 + $0x14c] ss:$16 sps:$4 sm:$0xff]  }
0x152e   : > { %v6963_v48 = vadd.f32 %v5767_v36, %v3304_v45  ;;  %v3310_v49 = vadd.f32 %v6959_v44, %v6957_v42  ;;  %3801 = vmatprep.subr.bf16.mxu1 %v5588_v6  ;;  %v5594_v45 = vld [vmem:[%s7341_s15 + $0x144] ss:$16 sps:$4 sm:$0xff]   ;;  %v5595_v36 = vld [vmem:[%s7341_s15 + $0x148] ss:$16 sps:$4 sm:$0xff]  }
0x152f   : > { %3802 = vmatpush1.bf16.msra.mxu1 %v5586_v41  ;;  %v5634_v6 = vld [vmem:[%s6588_s14 + $0x20] ss:$8 sps:$4 sm:$0xff]   ;;  %v5639_v40 = vld [vmem:[%s6588_s14 + $0x34] ss:$8 sps:$4 sm:$0xff]   ;;  %v5637_v41 = vld [vmem:[%s6588_s14 + $0x30] ss:$8 sps:$4 sm:$0xff]  }
0x1530   : > { %3311 = vadd.xlane.f32.xlu0 %v3310_v49  ;;  %v3313_v50 = vadd.f32 %v6963_v48, %v6961_v47  ;;  %3803 = vmatprep.subr.bf16.mxu1 %v5594_v45  ;;  %v5603_v49 = vld [vmem:[%s7341_s15 + $0x16c] ss:$16 sps:$4 sm:$0xff]   ;;  %v5640_v45 = vld [vmem:[%s6588_s14 + $0x40] ss:$8 sps:$4 sm:$0xff]  }
0x1532   : > { %3314 = vadd.xlane.f32.xlu1 %v3313_v50  ;;  %v5598_v50 = vld [vmem:[%s7341_s15 + $0x160] ss:$16 sps:$4 sm:$0xff]  }
0x15bd   : > { %v3312_v28 = vpop.xlane.xlu0 %3311 }
0x15be   : > { %v3317_v29 = vmul.f32 0.00390625, %v3312_v28 }
0x15bf   : > { %v3315_v59 = vpop.xlane.xlu1 %3314 }
0x15c0   : > { %v7006_v34 = vsub.f32 %v6957_v42, %v3317_v29  ;;  %v7009_v30 = vsub.f32 %v6959_v44, %v3317_v29  ;;  %v3318_v35 = vmul.f32 0.00390625, %v3315_v59  ;;  %v5589_v44 = vld [vmem:[%s7341_s15 + $0x128] ss:$16 sps:$4 sm:$0xff]  }
0x15c1   : > { %3845 = vmatpush1.bf16.msra.mxu0 %v5589_v44  ;;  %v5642_v44 = vld [vmem:[%s6588_s14 + $0x44] ss:$8 sps:$4 sm:$0xff]  }
0x15c2   : > { %v7012_v23 = vsub.f32 %v6961_v47, %v3318_v35  ;;  %v7015_v31 = vsub.f32 %v6963_v48, %v3318_v35  ;;  %v3323_v37 = vmul.f32 %v7006_v34, %v7006_v34  ;;  %v3324_v38 = vmul.f32 %v7009_v30, %v7009_v30  ;;  %v5592_v47 = vld [vmem:[%s7341_s15 + $0x140] ss:$16 sps:$4 sm:$0xff]   ;;  %3846 = vmatprep.subr.bf16.mxu0 %v5597_v46  ;;  %v5600_v48 = vld [vmem:[%s7341_s15 + $0x164] ss:$16 sps:$4 sm:$0xff]  }
0x15c3   : > { %3804 = vmatpush1.bf16.msra.mxu1 %v5592_v47  ;;  %v5645_v46 = vld [vmem:[%s6588_s14 + $0x54] ss:$8 sps:$4 sm:$0xff]   ;;  %v5643_v47 = vld [vmem:[%s6588_s14 + $0x50] ss:$8 sps:$4 sm:$0xff]  }
0x15c4   : > { %v3327_v39 = vadd.f32 %v3324_v38, %v3323_v37  ;;  %v3325_v10 = vmul.f32 %v7012_v23, %v7012_v23  ;;  %v3326_v32 = vmul.f32 %v7015_v31, %v7015_v31  ;;  %3805 = vmatprep.subr.bf16.mxu1 %v5600_v48  ;;  %v5646_v48 = vld [vmem:[%s6588_s14 + $0x60] ss:$8 sps:$4 sm:$0xff]  }
0x15c5   : > { %3847 = vmatpush1.bf16.msra.mxu0 %v5595_v36  ;;  %v5648_v36 = vld [vmem:[%s6588_s14 + $0x64] ss:$8 sps:$4 sm:$0xff]  }
0x15c6   : > { %3328 = vadd.xlane.f32.xlu0 %v3327_v39  ;;  %v3330_v42 = vadd.f32 %v3326_v32, %v3325_v10  ;;  %3848 = vmatprep.subr.bf16.mxu0 %v5603_v49  ;;  %v5628_v39 = vld [vmem:[%s6588_s14] ss:$8 sps:$4 sm:$0xff]   ;;  %v5633_v10 = vld [vmem:[%s6588_s14 + $0x14] ss:$8 sps:$4 sm:$0xff]   ;;  %v5631_v32 = vld [vmem:[%s6588_s14 + $0x10] ss:$8 sps:$4 sm:$0xff]  }
0x15c7   : > { %3806 = vmatpush1.bf16.msra.mxu1 %v5598_v50  ;;  %v5651_v49 = vld [vmem:[%s6588_s14 + $0x74] ss:$8 sps:$4 sm:$0xff]   ;;  %v5649_v50 = vld [vmem:[%s6588_s14 + $0x70] ss:$8 sps:$4 sm:$0xff]  }
0x15c8   : > { %3807 = vmatprep.subr.bf16.mxu1 %v5606_v52  ;;  %v5652_v52 = vld [vmem:[%s6588_s14 + $0x80] ss:$8 sps:$4 sm:$0xff]  }
0x15c9   : > { %3849 = vmatpush1.bf16.msra.mxu0 %v5601_v51  ;;  %v5654_v51 = vld [vmem:[%s6588_s14 + $0x84] ss:$8 sps:$4 sm:$0xff]  }
0x15ca   : > { %3331 = vadd.xlane.f32.xlu0 %v3330_v42  ;;  %3850 = vmatprep.subr.bf16.mxu0 %v5609_v21  ;;  %v5636_v42 = vld [vmem:[%s6588_s14 + $0x24] ss:$8 sps:$4 sm:$0xff]   ;;  %v5657_v21 = vld [vmem:[%s6588_s14 + $0x94] ss:$8 sps:$4 sm:$0xff]  }
0x15cb   : > { %3808 = vmatpush1.bf16.msra.mxu1 %v5604_v53  ;;  %v5655_v53 = vld [vmem:[%s6588_s14 + $0x90] ss:$8 sps:$4 sm:$0xff]  }
0x15cc   : > { %3809 = vmatprep.subr.bf16.mxu1 %v5612_v55  ;;  %v5658_v55 = vld [vmem:[%s6588_s14 + $0xa0] ss:$8 sps:$4 sm:$0xff]  }
0x15cd   : > { %3851 = vmatpush1.bf16.msra.mxu0 %v5607_v54  ;;  %v5660_v54 = vld [vmem:[%s6588_s14 + $0xa4] ss:$8 sps:$4 sm:$0xff]  }
0x15ce   : > { %3852 = vmatprep.subr.bf16.mxu0 %v5615_v56  ;;  %v5663_v56 = vld [vmem:[%s6588_s14 + $0xb4] ss:$8 sps:$4 sm:$0xff]  }
0x15cf   : > { %3810 = vmatpush1.bf16.msra.mxu1 %v5610_v57  ;;  %v5661_v57 = vld [vmem:[%s6588_s14 + $0xb0] ss:$8 sps:$4 sm:$0xff]  }
0x15d0   : > { %3811 = vmatprep.subr.bf16.mxu1 %v5618_v61  ;;  %v5669_v61 = vld [vmem:[%s6588_s14 + $0xd4] ss:$8 sps:$4 sm:$0xff]  }
0x15d1   : > { %3853 = vmatpush1.bf16.msra.mxu0 %v5613_v58  ;;  %v5666_v58 = vld [vmem:[%s6588_s14 + $0xc4] ss:$8 sps:$4 sm:$0xff]  }
0x15d2   : > { %3854 = vmatprep.subr.bf16.mxu0 %v5621_v63  ;;  %v5672_v63 = vld [vmem:[%s6588_s14 + $0xe4] ss:$8 sps:$4 sm:$0xff]  }
0x15d3   : > { %3812 = vmatpush1.bf16.msra.mxu1 %v5616_v60  ;;  %v5664_v60 = vld [vmem:[%s6588_s14 + $0xc0] ss:$8 sps:$4 sm:$0xff]  }
0x15d4   : > { %3813 = vmatprep.subr.bf16.mxu1 %v5624_v18  ;;  %v5670_v18 = vld [vmem:[%s6588_s14 + $0xe0] ss:$8 sps:$4 sm:$0xff]  }
0x15d5   : > { %3855 = vmatpush1.bf16.msra.mxu0 %v5619_v62  ;;  %v5667_v62 = vld [vmem:[%s6588_s14 + $0xd0] ss:$8 sps:$4 sm:$0xff]  }
0x15d6   : > { %3856 = vmatprep.subr.bf16.mxu0 %v5627_v19  ;;  %v5675_v19 = vld [vmem:[%s6588_s14 + $0xf4] ss:$8 sps:$4 sm:$0xff]  }
0x15d7   : > { %3814 = vmatpush1.bf16.msra.mxu1 %v5622_v0  ;;  %v5673_v0 = vld [vmem:[%s6588_s14 + $0xf0] ss:$8 sps:$4 sm:$0xff]  }
0x15d8   : > { %4277 = vmatprep.subr.bf16.mxu1 %v5630_v2  ;;  %v3453_v2 = vsub.s32 2, %v6668_v12 }
0x15d9   : > { %3857 = vmatpush1.bf16.msra.mxu0 %v5625_v1  ;;  %v5678_v1 = vld [vmem:[%s6588_s14 + $0x104] ss:$8 sps:$4 sm:$0xff]  }
0x1653   : > { %v3329_v3 = vpop.xlane.xlu0 %3328 }
0x1654   : > { %v3333_v4 = vmul.f32 0.00390625, %v3329_v3  ;;  %v3441_v3 = vld [vmem:[%s6574_s24] sm:$0xf] }
0x1656   : > { %v3335_v5 = vadd.f32 1e-05, %v3333_v4  ;;  %v3457_v4 = vsub.s32 3, %v6668_v12 }
0x1657   : > { %v3332_v7 = vpop.xlane.xlu0 %3331 }
0x1658   : > { %5756 = vrsqrt.f32 %v3335_v5  ;;  %v3334_v8 = vmul.f32 0.00390625, %v3332_v7  ;;  %v3446_v5 = vrot.slane %v3441_v3, %v6671_v13  ;;  %v3454_v7 = vrot.slane %v3441_v3, %v3453_v2  ;;  %v5714_v2 = vld [vmem:[%s6588_s14 + $0x1c4] ss:$8 sps:$4 sm:$0xff]  }
0x165a   : > { %v3336_v9 = vadd.f32 1e-05, %v3334_v8  ;;  %v3450_v8 = vrot.slane %v3441_v3, %v6679_v15 }
0x165c   : > { %5758 = vrsqrt.f32 %v3336_v9  ;;  %v3458_v9 = vrot.slane %v3441_v3, %v3457_v4  ;;  %v5712_v3 = vld [vmem:[%s6588_s14 + $0x1c0] ss:$8 sps:$4 sm:$0xff]   ;;  %v5717_v4 = vld [vmem:[%s6588_s14 + $0x1d4] ss:$8 sps:$4 sm:$0xff]  }
0x1662   : > { %v5757_v16 = vpop.eup %5756 }
0x1663   : > { %v3339_v17 = vmul.f32 %v5757_v16, %v7006_v34  ;;  %v3340_v43 = vmul.f32 %v5757_v16, %v7009_v30 }
0x1665   : > { %v3356_v28 = vmul.f32 %v3352_v11, %v3340_v43  ;;  %v3355_v29 = vmul.f32 %v3348_v20, %v3339_v17 }
0x1666   : > { %v5759_v24 = vpop.eup %5758 }
0x1667   : > { %v3341_v33 = vmul.f32 %v5759_v24, %v7012_v23  ;;  %v3342_v27 = vmul.f32 %v5759_v24, %v7015_v31  ;;  %v7072_v30 = vadd.f32 %v3368_v26, %v3356_v28  ;;  %v7076_v37 = vadd.f32 %v3364_v25, %v3355_v29 }
0x1669   : > { %v3358_v59 = vmul.f32 %v3352_v11, %v3342_v27  ;;  %v3357_v34 = vmul.f32 %v3348_v20, %v3341_v33 }
0x166b   : > { %v7074_v35 = vadd.f32 %v3368_v26, %v3358_v59  ;;  %v7078_v38 = vadd.f32 %v3364_v25, %v3357_v34 }
0x166d   : > { %v3376_v23 = vpack.c.bf16 %v7074_v35, %v7072_v30  ;;  %v3375_v31 = vpack.c.bf16 %v7078_v38, %v7076_v37 }
0x166f   : > { %3815 = vmatprep.mubr.bf16.mxu1 %v3376_v23  ;;  %3858 = vmatprep.mubr.bf16.mxu0 %v3376_v23 }
0x1670   : > { %3816 = vmatmul.mubr.bf16.vlgmr.msra.gmra.mrb[32].mxu1 %v3375_v31  ;;  %3859 = vmatmul.mubr.bf16.vlgmr.msra.gmra.mrb[16].mxu0 %v3375_v31 }
0x1671   : > { %4278 = vmatpush1.bf16.msra.mxu1 %v5628_v39 }
0x1672   : > { %4279 = vmatprep.subr.bf16.mxu1 %v5633_v10 }
0x1675   : > { %4280 = vmatpush1.bf16.msra.mxu1 %v5631_v32 }
0x1676   : > { %4281 = vmatprep.subr.bf16.mxu1 %v5636_v42 }
0x1679   : > { %4282 = vmatpush1.bf16.msra.mxu1 %v5634_v6 }
0x167a   : > { %4283 = vmatprep.subr.bf16.mxu1 %v5639_v40 }
0x167d   : > { %4284 = vmatpush1.bf16.msra.mxu1 %v5637_v41 }
0x167e   : > { %4285 = vmatprep.subr.bf16.mxu1 %v5642_v44 }
0x1681   : > { %4286 = vmatpush1.bf16.msra.mxu1 %v5640_v45 }
0x1682   : > { %4287 = vmatprep.subr.bf16.mxu1 %v5645_v46  ;;  %v5676_v46 = vld [vmem:[%s6588_s14 + $0x100] ss:$8 sps:$4 sm:$0xff]  }
0x1685   : > { %4288 = vmatpush1.bf16.msra.mxu1 %v5643_v47  ;;  %v5681_v47 = vld [vmem:[%s6588_s14 + $0x114] ss:$8 sps:$4 sm:$0xff]  }
0x1686   : > { %4289 = vmatprep.subr.bf16.mxu1 %v5648_v36  ;;  %v5679_v36 = vld [vmem:[%s6588_s14 + $0x110] ss:$8 sps:$4 sm:$0xff]  }
0x1689   : > { %4290 = vmatpush1.bf16.msra.mxu1 %v5646_v48  ;;  %v5684_v48 = vld [vmem:[%s6588_s14 + $0x124] ss:$8 sps:$4 sm:$0xff]  }
0x168a   : > { %4291 = vmatprep.subr.bf16.mxu1 %v5651_v49  ;;  %v5682_v49 = vld [vmem:[%s6588_s14 + $0x120] ss:$8 sps:$4 sm:$0xff]  }
0x168d   : > { %4292 = vmatpush1.bf16.msra.mxu1 %v5649_v50  ;;  %v5687_v50 = vld [vmem:[%s6588_s14 + $0x134] ss:$8 sps:$4 sm:$0xff]  }
0x168e   : > { %4293 = vmatprep.subr.bf16.mxu1 %v5654_v51  ;;  %v5685_v51 = vld [vmem:[%s6588_s14 + $0x130] ss:$8 sps:$4 sm:$0xff]  }
0x1691   : > { %4294 = vmatpush1.bf16.msra.mxu1 %v5652_v52  ;;  %v5690_v52 = vld [vmem:[%s6588_s14 + $0x144] ss:$8 sps:$4 sm:$0xff]  }
0x1692   : > { %4295 = vmatprep.subr.bf16.mxu1 %v5657_v21  ;;  %v5688_v21 = vld [vmem:[%s6588_s14 + $0x140] ss:$8 sps:$4 sm:$0xff]  }
0x1695   : > { %4296 = vmatpush1.bf16.msra.mxu1 %v5655_v53  ;;  %v5693_v53 = vld [vmem:[%s6588_s14 + $0x154] ss:$8 sps:$4 sm:$0xff]  }
0x1696   : > { %4297 = vmatprep.subr.bf16.mxu1 %v5660_v54  ;;  %v5691_v54 = vld [vmem:[%s6588_s14 + $0x150] ss:$8 sps:$4 sm:$0xff]  }
0x1699   : > { %4298 = vmatpush1.bf16.msra.mxu1 %v5658_v55  ;;  %v5696_v55 = vld [vmem:[%s6588_s14 + $0x164] ss:$8 sps:$4 sm:$0xff]  }
0x169a   : > { %4299 = vmatprep.subr.bf16.mxu1 %v5663_v56  ;;  %v5694_v56 = vld [vmem:[%s6588_s14 + $0x160] ss:$8 sps:$4 sm:$0xff]  }
0x169d   : > { %4300 = vmatpush1.bf16.msra.mxu1 %v5661_v57  ;;  %v5699_v57 = vld [vmem:[%s6588_s14 + $0x174] ss:$8 sps:$4 sm:$0xff]  }
0x169e   : > { %4301 = vmatprep.subr.bf16.mxu1 %v5666_v58  ;;  %v5697_v58 = vld [vmem:[%s6588_s14 + $0x170] ss:$8 sps:$4 sm:$0xff]  }
0x16a1   : > { %4302 = vmatpush1.bf16.msra.mxu1 %v5664_v60  ;;  %v5702_v60 = vld [vmem:[%s6588_s14 + $0x184] ss:$8 sps:$4 sm:$0xff]  }
0x16a2   : > { %4303 = vmatprep.subr.bf16.mxu1 %v5669_v61  ;;  %v5700_v61 = vld [vmem:[%s6588_s14 + $0x180] ss:$8 sps:$4 sm:$0xff]  }
0x16a5   : > { %4304 = vmatpush1.bf16.msra.mxu1 %v5667_v62  ;;  %v5705_v62 = vld [vmem:[%s6588_s14 + $0x194] ss:$8 sps:$4 sm:$0xff]  }
0x16a6   : > { %4305 = vmatprep.subr.bf16.mxu1 %v5672_v63  ;;  %v5703_v63 = vld [vmem:[%s6588_s14 + $0x190] ss:$8 sps:$4 sm:$0xff]  }
0x16a9   : > { %4306 = vmatpush1.bf16.msra.mxu1 %v5670_v18  ;;  %v5708_v18 = vld [vmem:[%s6588_s14 + $0x1a4] ss:$8 sps:$4 sm:$0xff]  }
0x16aa   : > { %4307 = vmatprep.subr.bf16.mxu1 %v5675_v19  ;;  %v5706_v19 = vld [vmem:[%s6588_s14 + $0x1a0] ss:$8 sps:$4 sm:$0xff]  }
0x16ad   : > { %4308 = vmatpush1.bf16.msra.mxu1 %v5673_v0  ;;  %v5711_v0 = vld [vmem:[%s6588_s14 + $0x1b4] ss:$8 sps:$4 sm:$0xff]  }
0x16ae   : > { %4320 = vmatprep.subr.bf16.mxu1 %v5678_v1  ;;  %v5709_v1 = vld [vmem:[%s6588_s14 + $0x1b0] ss:$8 sps:$4 sm:$0xff]  }
0x1743   : > { %v3817_v14 = vpop.f32.mrb[32].mxu1  ;;  %v3860_v16 = vpop.f32.mrb[16].mxu0 }
0x1744   : > { %v3818_v17 = vadd.f32 %v3817_v14, %v3446_v5  ;;  %v3861_v43 = vadd.f32 %v3860_v16, %v3454_v7  ;;  %v3819_v20 = vpop.f32.mrb[33].mxu1  ;;  %v3862_v11 = vpop.f32.mrb[17].mxu0  ;;  %v5721_v14 = vld [vmem:[%s6588_s14 + $0x1f0] ss:$8 sps:$4 sm:$0xff]   ;;  %v3945_v16 = vld [vmem:[%s949_s18] sm:$0x3] }
0x1745   : > { %v3820_v22 = vadd.f32 %v3819_v20, %v3450_v8  ;;  %v3863_v24 = vadd.f32 %v3862_v11, %v3458_v9  ;;  %v3821_v25 = vpop.f32.mrb[34].mxu1  ;;  %v3864_v26 = vpop.f32.mrb[18].mxu0 }
0x1746   : > { %v3822_v33 = vadd.f32 %v3821_v25, %v3446_v5  ;;  %v3865_v27 = vadd.f32 %v3864_v26, %v3454_v7  ;;  %v3823_v28 = vpop.f32.mrb[35].mxu1  ;;  %v3866_v12 = vpop.f32.mrb[19].mxu0  ;;  %v3869_v34 = vmax.f32 %v3818_v17, 0.0  ;;  %v3871_v23 = vmax.f32 %v3861_v43, 0.0  ;;  %v5715_v5 = vld [vmem:[%s6588_s14 + $0x1d0] ss:$8 sps:$4 sm:$0xff]  }
0x1747   : > { %v3824_v29 = vadd.f32 %v3823_v28, %v3450_v8  ;;  %v3867_v59 = vadd.f32 %v3866_v12, %v3458_v9  ;;  %v3870_v10 = vmax.f32 %v3820_v22, 0.0  ;;  %v3872_v32 = vmax.f32 %v3863_v24, 0.0  ;;  %v5720_v7 = vld [vmem:[%s6588_s14 + $0x1e4] ss:$8 sps:$4 sm:$0xff]   ;;  %v5718_v8 = vld [vmem:[%s6588_s14 + $0x1e0] ss:$8 sps:$4 sm:$0xff]  }
0x1748   : > { %v3873_v31 = vmax.f32 %v3822_v33, 0.0  ;;  %v3875_v39 = vmax.f32 %v3865_v27, 0.0  ;;  %v5723_v9 = vld [vmem:[%s6588_s14 + $0x1f4] ss:$8 sps:$4 sm:$0xff]   ;;  %v3950_v17 = vrot.slane %v3945_v16, %v6671_v13  ;;  %v3954_v43 = vrot.slane %v3945_v16, %v6679_v15 }
0x1749   : > { %v3874_v42 = vmax.f32 %v3824_v29, 0.0  ;;  %v3876_v6 = vmax.f32 %v3867_v59, 0.0 }
0x174a   : > { %v3877_v40 = vpack.c.bf16 %v3873_v31, %v3869_v34  ;;  %v7121_v41 = vpack.c.bf16 %v3875_v39, %v3871_v23 }
0x174b   : > { %v3878_v44 = vpack.c.bf16 %v3874_v42, %v3870_v10  ;;  %v3880_v45 = vpack.c.bf16 %v3876_v6, %v3872_v32 }
0x174d   : > { %4309 = vmatprep.mubr.bf16.mxu1 %v3878_v44 }
0x174e   : > { %4310 = vmatmul.mubr.bf16.vlgmr.msra.gmra.mrb[36].mxu1 %v3877_v40 }
0x174f   : > { %4321 = vmatpush1.bf16.msra.mxu1 %v5676_v46  ;;  %4352 = vmatprep.mubr.bf16.mxu1 %v3880_v45 }
0x1750   : > { %4322 = vmatprep.subr.bf16.mxu1 %v5681_v47 }
0x1753   : > { %4323 = vmatpush1.bf16.msra.mxu1 %v5679_v36 }
0x1754   : > { %4324 = vmatprep.subr.bf16.mxu1 %v5684_v48 }
0x1757   : > { %4325 = vmatpush1.bf16.msra.mxu1 %v5682_v49 }
0x1758   : > { %4326 = vmatprep.subr.bf16.mxu1 %v5687_v50 }
0x175b   : > { %4327 = vmatpush1.bf16.msra.mxu1 %v5685_v51  ;;  %v4399_v51 = vld [vmem:[%s953_s12] sm:$0x3] }
0x175c   : > { %4328 = vmatprep.subr.bf16.mxu1 %v5690_v52  ;;  %v4415_v52 = vld [vmem:[%s957_s13] sm:$0x3] }
0x175f   : > { %4329 = vmatpush1.bf16.msra.mxu1 %v5688_v21  ;;  %v4404_v21 = vrot.slane %v4399_v51, %v6671_v13 }
0x1760   : > { %4330 = vmatprep.subr.bf16.mxu1 %v5693_v53  ;;  %v4408_v53 = vrot.slane %v4399_v51, %v6679_v15 }
0x1763   : > { %4331 = vmatpush1.bf16.msra.mxu1 %v5691_v54 }
0x1764   : > { %4332 = vmatprep.subr.bf16.mxu1 %v5696_v55  ;;  %v4420_v55 = vrot.slane %v4415_v52, %v6671_v13 }
0x1767   : > { %4333 = vmatpush1.bf16.msra.mxu1 %v5694_v56  ;;  %v4424_v56 = vrot.slane %v4415_v52, %v6679_v15 }
0x1768   : > { %4334 = vmatprep.subr.bf16.mxu1 %v5699_v57 }
0x176b   : > { %4335 = vmatpush1.bf16.msra.mxu1 %v5697_v58 }
0x176c   : > { %4336 = vmatprep.subr.bf16.mxu1 %v5702_v60 }
0x176f   : > { %4337 = vmatpush1.bf16.msra.mxu1 %v5700_v61 }
0x1770   : > { %4338 = vmatprep.subr.bf16.mxu1 %v5705_v62 }
0x1773   : > { %4339 = vmatpush1.bf16.msra.mxu1 %v5703_v63 }
0x1774   : > { %4340 = vmatprep.subr.bf16.mxu1 %v5708_v18 }
0x1777   : > { %4341 = vmatpush1.bf16.msra.mxu1 %v5706_v19 }
0x1778   : > { %4342 = vmatprep.subr.bf16.mxu1 %v5711_v0 }
0x177b   : > { %4343 = vmatpush1.bf16.msra.mxu1 %v5709_v1 }
0x177c   : > { %4344 = vmatprep.subr.bf16.mxu1 %v5714_v2 }
0x177f   : > { %4345 = vmatpush1.bf16.msra.mxu1 %v5712_v3 }
0x1780   : > { %4346 = vmatprep.subr.bf16.mxu1 %v5717_v4 }
0x1783   : > { %4347 = vmatpush1.bf16.msra.mxu1 %v5715_v5 }
0x1784   : > { %4348 = vmatprep.subr.bf16.mxu1 %v5720_v7 }
0x1787   : > { %4349 = vmatpush1.bf16.msra.mxu1 %v5718_v8 }
0x1788   : > { %4350 = vmatprep.subr.bf16.mxu1 %v5723_v9 }
0x178b   : > { %4351 = vmatpush1.bf16.msra.mxu1 %v5721_v14 }
0x178e   : > { %4353 = vmatmul.mubr.bf16.vlgmr.msra.gmra.mrb[36].mxu1 %v7121_v41 }
0x1861   : > { %v4354_v20 = vpop.f32.mrb[36].mxu1 }
0x1862   : > { %v5215_v11 = vadd.f32 %v4354_v20, %v3950_v17  ;;  %v4356_v22 = vpop.f32.mrb[37].mxu1 }
0x1863   : > { %v5216_v24 = vadd.f32 %v4356_v22, %v3954_v43  ;;  %v4358_v25 = vpop.f32.mrb[38].mxu1 }
0x1864   : > { %v4363_v26 = vadd.f32 %v5215_v11, %v7076_v37  ;;  %v5217_v33 = vadd.f32 %v4358_v25, %v3950_v17  ;;  %v4360_v27 = vpop.f32.mrb[39].mxu1 }
0x1865   : > { %v4364_v28 = vadd.f32 %v5216_v24, %v7072_v30  ;;  %v5218_v12 = vadd.f32 %v4360_v27, %v3954_v43 }
0x1866   : > { %v4365_v29 = vadd.f32 %v5217_v33, %v7078_v38 }
0x1867   : > { %v4366_v59 = vadd.f32 %v5218_v12, %v7074_v35  ;;  %v4367_v34 = vadd.f32 %v4364_v28, %v4363_v26 }
0x1869   : > { %4368 = vadd.xlane.f32.xlu0 %v4367_v34  ;;  %v4370_v23 = vadd.f32 %v4366_v59, %v4365_v29 }
0x186d   : > { %4371 = vadd.xlane.f32.xlu0 %v4370_v23 }
0x18f6   : > { %v4369_v31 = vpop.xlane.xlu0 %4368 }
0x18f7   : > { %v4373_v39 = vmul.f32 0.00390625, %v4369_v31 }
0x18f9   : > { %v4375_v10 = vsub.f32 %v4363_v26, %v4373_v39  ;;  %v4376_v32 = vsub.f32 %v4364_v28, %v4373_v39 }
0x18fa   : > { %v4372_v42 = vpop.xlane.xlu0 %4371 }
0x18fb   : > { %v4374_v6 = vmul.f32 0.00390625, %v4372_v42  ;;  %v4379_v37 = vmul.f32 %v4375_v10, %v4375_v10  ;;  %v4380_v40 = vmul.f32 %v4376_v32, %v4376_v32 }
0x18fd   : > { %v4377_v41 = vsub.f32 %v4365_v29, %v4374_v6  ;;  %v4378_v30 = vsub.f32 %v4366_v59, %v4374_v6  ;;  %v4383_v44 = vadd.f32 %v4380_v40, %v4379_v37 }
0x18ff   : > { %4384 = vadd.xlane.f32.xlu0 %v4383_v44  ;;  %v4381_v38 = vmul.f32 %v4377_v41, %v4377_v41  ;;  %v4382_v35 = vmul.f32 %v4378_v30, %v4378_v30 }
0x1901   : > { %v4386_v45 = vadd.f32 %v4382_v35, %v4381_v38 }
0x1903   : > { %4387 = vadd.xlane.f32.xlu0 %v4386_v45 }
0x198c   : > { %v4385_v46 = vpop.xlane.xlu0 %4384 }
0x198d   : > { %v4389_v47 = vmul.f32 0.00390625, %v4385_v46 }
0x198f   : > { %v4391_v36 = vadd.f32 1e-05, %v4389_v47 }
0x1990   : > { %v4388_v48 = vpop.xlane.xlu0 %4387 }
0x1991   : > { %5760 = vrsqrt.f32 %v4391_v36  ;;  %v4390_v49 = vmul.f32 0.00390625, %v4388_v48 }
0x1993   : > { %v4392_v50 = vadd.f32 1e-05, %v4390_v49 }
0x1995   : > { %5762 = vrsqrt.f32 %v4392_v50 }
0x199b   : > { %v5761_v54 = vpop.eup %5760 }
0x199c   : > { %v4395_v57 = vmul.f32 %v5761_v54, %v4375_v10  ;;  %v4396_v58 = vmul.f32 %v5761_v54, %v4376_v32 }
0x199e   : > { %v4411_v60 = vmul.f32 %v4404_v21, %v4395_v57  ;;  %v4412_v61 = vmul.f32 %v4408_v53, %v4396_v58 }
0x199f   : > { %v5763_v62 = vpop.eup %5762 }
0x19a0   : > { %v4427_v63 = vadd.f32 %v4420_v55, %v4411_v60  ;;  %v4428_v18 = vadd.f32 %v4424_v56, %v4412_v61  ;;  %v4397_v19 = vmul.f32 %v5763_v62, %v4377_v41  ;;  %v4398_v0 = vmul.f32 %v5763_v62, %v4378_v30  ;;  %4438 = sbr.rel (%p5088_p4) target bundleno = 6569 (0x19a9), region = 124 }
0x19a2   : > { %4431 = vst [vmem:[#allocation2] sm:$0xff] %v4427_v63  ;;  %4432 = vst [vmem:[#allocation2 + $0x8] sm:$0xff] %v4428_v18  ;;  %v4413_v1 = vmul.f32 %v4404_v21, %v4397_v19  ;;  %v4414_v2 = vmul.f32 %v4408_v53, %v4398_v0  ;;  %v5101_v13 = vpack.c.bf16 (!%p5088_p4), %v4428_v18, %v4427_v63 }
0x19a4   : > { %v4429_v3 = vadd.f32 %v4420_v55, %v4413_v1  ;;  %v4430_v4 = vadd.f32 %v4424_v56, %v4414_v2  ;;  %4451 = vst [vmem:[#allocation15] sm:$0xff] (!%p5088_p4), %v5101_v13 }
0x19a6   : > { %4433 = vst [vmem:[#allocation2 + $0x10] sm:$0xff] %v4429_v3  ;;  %4434 = vst [vmem:[#allocation2 + $0x18] sm:$0xff] %v4430_v4  ;;  %v5102_v15 = vpack.c.bf16 (!%p5088_p4), %v4430_v4, %v4429_v3 }
0x19a8   : > { %4452 = vst [vmem:[#allocation15 + $0x8] sm:$0xff] %v5102_v15 }
0x19a9 PF: > { %s7348_s23 = sld [smem:[#allocation27_spill]]  ;;  %s6084_s12 = smov [#allocation15]  }
0x19aa   : > { %s4463_s13 = sshll.u32 %s6084_s12, 4  ;;  %s4464_s13 = int_to_ptr.vmem [resolvable:$true] %s4463_s13 }
0x19ab   : > { %s5976_s8 = scalar_lea.vmem %s4464_s13, 256  ;;  %p5983_p5 = scmp.lt.s32.totalorder %s4464_s13, %s4464_s13 }
0x19ac   : > { %p5977_p9 = scmp.ne.s32.totalorder %s4464_s13, %s5976_s8  ;;  %p5984_p12 = scmp.lt.s32.totalorder %s5976_s8, %s5976_s8 }
0x19ae   : > { %p5985_p1 = por %p5984_p12, %p5983_p5 }
0x19af   : > { %p5269_p6 = scmp.eq.s32.totalorder %s7348_s23, 1 }
0x19b1   : > { %p5978_p10 = pnand %p5977_p9, %p5269_p6 }
0x19b3   : > { %p5979_p2 = pneg %p5978_p10 }
0x19b5   : > { %p5986_p8 = pnand %p5985_p1, %p5979_p2 }
0x19b7   : > { %5989 = shalt.err (!%p5986_p8)
}
0x19b8   : > { %s7349_s3 = sld [smem:[#allocation45_spill]] }
0x19be   : > { %s5990_s2 = scalar_lea.hbm %s7349_s3, 256 }
0x19bf   : > { %p5991_p11 = scmp.ne.s32.totalorder %s7349_s3, %s5990_s2  ;;  %p5996_p13 = scmp.lt.u32.totalorder %s5990_s2, %s7349_s3 }
0x19c1   : > { %p5992_p0 = pnand %p5991_p11, %p5269_p6 }
0x19c3   : > { %p5993_p3 = pneg %p5992_p0 }
0x19c5   : > { %p5998_p7 = pnand %p5996_p13, %p5993_p3 }
0x19c7   : > { %6001 = shalt.err (!%p5998_p7)
}
0x19c8   : > { %s6085_s16 = smov 128   ;;  %s6086_s15 = smov 8  }
0x19c9   : > { %5240 = dma.vmem_to_hbm [thread:$0]  (%p5269_p6), %s4464_s13, 256, %s7349_s3, [#allocation5], %s6085_s16, %s6085_s16, %s6086_s15  }
0x19ca   : > { %6043 = dma.done.wait (%p5269_p6), [#allocation5], 256  }
0x19cb   : > { %6045 = vsyncadd (%p5269_p6), [#allocation5], 4294967040 }
0x19cc PF: > { %s7350_s6 = sld [smem:[#allocation24_spill]]  ;;  %s7351_s24 = sld [smem:[#allocation21_spill]] }
0x19cd   : > { %s7352_s25 = sld [smem:[#allocation22_spill]]  ;;  %s7353_s26 = sld [smem:[#allocation26_spill]] }
0x19ce   : > { %s7354_s27 = sld [smem:[#allocation23_spill]]  ;;  %s7355_s28 = sld [smem:[#allocation25_spill]] }
0x19d2   : > { %s38_s29 = sadd.s32 1, %s7350_s6  }
0x19d3   : > { %p35_p4 = scmp.ge.s32.totalorder %s38_s29, 4  }
0x19d5   :  { %37 = sbr.rel (!%p35_p4) target bundleno = 28 (0x1c), region = 229 }
0x19dc   :  { %4479 = vsyncpa [#allocation4], 1 }
0x19dd   :  { %4481 = vsyncpa [#allocation4 + $0x1], 1 }
0x19de   :  { %4482 = vsyncpa [#allocation7], 1 }
0x19df   :  { %4484 = vsyncpa [#allocation7 + $0x1], 1 }
0x19e0   :  { %4485 = vsyncpa [#allocation10], 1 }
0x19e1   :  { %4487 = vsyncpa [#allocation10 + $0x1], 1 }
0x19e2   :  { %4488 = vsyncpa [#allocation13], 1 }
0x19e3   :  { %4490 = vsyncpa [#allocation13 + $0x1], 1 }
0x19e4   :  { %4491 = vsyncpa [#allocation5], 1 }
0x19e5   :  { %4493 = vsyncpa [#allocation5 + $0x1], 1 }

</bundles_post_ra>
